<compile_context>
chip_gen: v6e
topology: v6e:2x2x1
jax: 0.10.0
libtpu: 0.0.40
codegen_flags: <defaults>
</compile_context>

<pallas_src>
import jax
import jax.numpy as jnp
from jax import lax
from jax.experimental import pallas as pl
from jax.experimental.pallas import tpu as pltpu

# ---- scaled-down sizes consistent with the module's forward ----
B = 2              # batch (must be > 1: BatchNorm in the projector)
C = 3              # channels
T = 8              # clip_size
IMG = 16           # image_size
D_IN = C * T * IMG * IMG        # 6144 (multiple of 256)
FEAT = 128         # synthetic backbone feature dim (lane-dense)
HID = 128          # projection_hidden_size (4096 in the module), lane-dense
PROJ = 128         # projection_size (512 in the module), lane-dense
# NOTE: on v6e/v7x the real 4096/512 dims fill the 256-wide MXU; the scaled-down
#       128 here uses only half the lanes (v5e's 128-wide MXU is fully matched).
TWO_B = 2 * B
ODE_STEPS = 4      # fixed RK4 steps over t in [0, 1]
DT = 1.0 / ODE_STEPS
MSE_L, STD_L, COV_L = 1.0, 1.0, 0.1
BN_EPS = 1e-5
K_STEPS = 2                    # grid steps over the encoder contraction dim
K_BLK = D_IN // K_STEPS        # 3072

assert HID == PROJ == 128      # one row-iota/mask set serves BN, loss and dt


# --------------------------------------------------------------------------
# Fused kernel: encoder (both views) -> ODE predictor (fwd+bwd) -> vicreg loss
# --------------------------------------------------------------------------
def byol_ode_kernel(x_ref,
                    w0_ref, b0_ref,                    # synthetic backbone
                    w1_ref, b1_ref, g_ref, beta_ref,   # projector L1 + BN
                    w2_ref, b2_ref,                    # projector L2
                    wa_ref, ba_ref, wb_ref, bb_ref,    # ODE-func MLP
                    loss_ref, h_acc_ref):
    f32 = jnp.float32
    bf16 = jnp.bfloat16
    k = pl.program_id(0)

    # ---- encoder GEMM pipelined over K: accumulate x @ w0 into VMEM scratch.
    # rows [0:B) = view1, [B:2B) = view2 (stacked so w0 is pushed only once).
    @pl.when(k == 0)
    def _():
        h_acc_ref[...] = jnp.zeros_like(h_acc_ref)

    h_acc_ref[...] += jnp.dot(x_ref[...], w0_ref[...], preferred_element_type=f32)

    # ---- everything else runs once, on the fully accumulated features.
    @pl.when(k == pl.num_programs(0) - 1)
    def _():
        h = jnp.maximum(h_acc_ref[...] + b0_ref[...], 0.0)          # (2B, FEAT)

        # projector L1 + per-view BatchNorm (train-mode batch stats) + ReLU
        z = jnp.dot(h.astype(bf16), w1_ref[...],
                    preferred_element_type=f32) + b1_ref[...]       # (2B, HID)

        row = lax.broadcasted_iota(jnp.int32, (TWO_B, HID), 0)
        is_v1 = row < B
        m1 = is_v1.astype(f32)
        m2 = 1.0 - m1

        inv_b = 1.0 / float(B)
        mu1 = jnp.sum(z * m1, axis=0, keepdims=True) * inv_b
        mu2 = jnp.sum(z * m2, axis=0, keepdims=True) * inv_b
        zc = z - (m1 * mu1 + m2 * mu2)
        var1 = jnp.sum(zc * zc * m1, axis=0, keepdims=True) * inv_b
        var2 = jnp.sum(zc * zc * m2, axis=0, keepdims=True) * inv_b
        var = m1 * var1 + m2 * var2
        zr = jnp.maximum(zc * lax.rsqrt(var + BN_EPS) * g_ref[...] + beta_ref[...],
                         0.0)                                        # (2B, HID)

        proj = jnp.dot(zr.astype(bf16), w2_ref[...],
                       preferred_element_type=f32) + b2_ref[...]     # (2B, PROJ)
        # proj == [online_proj_one ; online_proj_two] == target projections
        # (target encoder is a bitwise deepcopy applied to the same inputs).

        # ---- LatentODEblock predictor: fixed-step RK4, +t for view1, -t for view2
        wa = wa_ref[...]; ba = ba_ref[...]
        wb = wb_ref[...]; bb = bb_ref[...]

        def ode_f(zz):  # time-independent 2-layer MLP ODE function
            hh = jnp.tanh(jnp.dot(zz.astype(bf16), wa,
                                  preferred_element_type=f32) + ba)
            return jnp.dot(hh.astype(bf16), wb, preferred_element_type=f32) + bb

        dt = jnp.where(is_v1, f32(DT), f32(-DT))      # per-row integration sign
        half_dt = 0.5 * dt                            # hoisted out of the loop
        dt6 = dt * (1.0 / 6.0)

        zt = proj
        for _ in range(ODE_STEPS):                    # static, small trip count
            k1 = ode_f(zt)
            k2 = ode_f(zt + half_dt * k1)
            k3 = ode_f(zt + half_dt * k2)
            k4 = ode_f(zt + dt * k3)
            zt = zt + dt6 * (k1 + 2.0 * k2 + 2.0 * k3 + k4)
        pred = zt                                     # (2B, PROJ)

        # ---- vic_reg_loss(pred_one, proj_two) + vic_reg_loss(pred_two, proj_one)
        # Swap the two view-halves of proj with a tiny (2B,2B) permutation matmul.
        # (pltpu.roll on a 4-row (< 8 sublane) operand is avoided: its sub-tile
        #  sublane-rotate lowering is not guaranteed across generations.)
        prow = lax.broadcasted_iota(jnp.int32, (TWO_B, TWO_B), 0)
        pcol = lax.broadcasted_iota(jnp.int32, (TWO_B, TWO_B), 1)
        perm = (((prow + B) % TWO_B) == pcol).astype(f32)
        target = jnp.dot(perm, proj, preferred_element_type=f32)     # (2B, PROJ)

        diff = pred - target
        repr_loss = jnp.sum(diff * diff) * (1.0 / float(B * PROJ))

        inv_bm1 = 1.0 / float(B - 1)

        def center_and_var(a):
            s1 = jnp.sum(a * m1, axis=0, keepdims=True) * inv_b
            s2 = jnp.sum(a * m2, axis=0, keepdims=True) * inv_b
            ac = a - (m1 * s1 + m2 * s2)
            v1 = jnp.sum(ac * ac * m1, axis=0, keepdims=True) * inv_bm1
            v2 = jnp.sum(ac * ac * m2, axis=0, keepdims=True) * inv_bm1
            return ac, v1, v2

        pred_c, pv1, pv2 = center_and_var(pred)
        proj_c, jv1, jv2 = center_and_var(proj)

        # std hinge terms of both losses (4 blocks)
        std_terms = 0.0
        for v in (pv1, pv2, jv1, jv2):
            std_terms = std_terms + jnp.mean(jnp.maximum(1.0 - jnp.sqrt(v + 1e-4), 0.0))
        std_loss = 0.5 * std_terms

        # off-diagonal covariance terms: sum(C*C) - sum(diag(C)^2),
        # with diag(C) == the matching per-view variance vector (no offdiag mask).
        dims = (((0,), (0,)), ((), ()))               # contract the batch axis
        cov_sq = 0.0
        for ac, m, v in ((pred_c, m1, pv1), (pred_c, m2, pv2),
                         (proj_c, m1, jv1), (proj_c, m2, jv2)):
            am = ac * m                               # zero the other view's rows
            cov = lax.dot_general(am, am, dims, preferred_element_type=f32) * inv_bm1
            cov_sq = cov_sq + (jnp.sum(cov * cov) - jnp.sum(v * v))
        cov_loss = cov_sq * (1.0 / float(PROJ))

        loss_ref[0, 0] = MSE_L * repr_loss + STD_L * std_loss + COV_L * cov_loss


# --------------------------------------------------------------------------
# Wrapper: one pallas_call for the whole forward pass
# --------------------------------------------------------------------------
_COST = pl.CostEstimate(flops=11_300_000, transcendentals=8_500,
                        bytes_accessed=1_720_000)


@jax.jit
def byol_ode_forward(x1, x2, params):
    """BYOL_ODE.forward(x, x2): non-sequential, symmetric, open-loop path."""
    # Views stacked as rows [0:B)=view1, [B:2B)=view2; cast to bf16 here so the
    # kernel DMAs half the activation bytes and skips the in-kernel convert.
    x = jnp.concatenate([x1.reshape(B, -1), x2.reshape(B, -1)],
                        axis=0).astype(jnp.bfloat16)                # (2B, D_IN)

    grid_spec = pltpu.PrefetchScalarGridSpec(
        num_scalar_prefetch=0,
        grid=(K_STEPS,),
        in_specs=[
            pl.BlockSpec((TWO_B, K_BLK), lambda k: (0, k)),   # x   (K-sliced)
            pl.BlockSpec((K_BLK, FEAT),  lambda k: (k, 0)),   # w0  (K-sliced)
            pl.BlockSpec((1, FEAT),      lambda k: (0, 0)),   # b0
            pl.BlockSpec((FEAT, HID),    lambda k: (0, 0)),   # w1
            pl.BlockSpec((1, HID),       lambda k: (0, 0)),   # b1
            pl.BlockSpec((1, HID),       lambda k: (0, 0)),   # gamma
            pl.BlockSpec((1, HID),       lambda k: (0, 0)),   # beta
            pl.BlockSpec((HID, PROJ),    lambda k: (0, 0)),   # w2
            pl.BlockSpec((1, PROJ),      lambda k: (0, 0)),   # b2
            pl.BlockSpec((PROJ, HID),    lambda k: (0, 0)),   # wa
            pl.BlockSpec((1, HID),       lambda k: (0, 0)),   # ba
            pl.BlockSpec((HID, PROJ),    lambda k: (0, 0)),   # wb
            pl.BlockSpec((1, PROJ),      lambda k: (0, 0)),   # bb
        ],
        out_specs=pl.BlockSpec((1, 1), lambda k: (0, 0),
                               memory_space=pltpu.MemorySpace.SMEM),
        scratch_shapes=[pltpu.VMEM((TWO_B, FEAT), jnp.float32)],
    )

    loss = pl.pallas_call(
        byol_ode_kernel,
        out_shape=jax.ShapeDtypeStruct((1, 1), jnp.float32),
        grid_spec=grid_spec,
        compiler_params=pltpu.CompilerParams(
            dimension_semantics=("arbitrary",)),
        cost_estimate=_COST,
    )(x, *params)
    return loss[0, 0]   # scalar; .mean() of a scalar is itself


# --------------------------------------------------------------------------
# Deterministic parameter initialization (weights in bf16, biases/BN in f32)
# --------------------------------------------------------------------------
def init_params(key):
    ks = jax.random.split(key, 5)
    s = lambda fan_in: 1.0 / jnp.sqrt(jnp.float32(fan_in))

    w0 = (jax.random.normal(ks[0], (D_IN, FEAT), jnp.float32) * s(D_IN)).astype(jnp.bfloat16)
    b0 = jnp.zeros((1, FEAT), jnp.float32)
    w1 = (jax.random.normal(ks[1], (FEAT, HID), jnp.float32) * s(FEAT)).astype(jnp.bfloat16)
    b1 = jnp.zeros((1, HID), jnp.float32)
    gamma = jnp.ones((1, HID), jnp.float32)
    beta = jnp.zeros((1, HID), jnp.float32)
    w2 = (jax.random.normal(ks[2], (HID, PROJ), jnp.float32) * s(HID)).astype(jnp.bfloat16)
    b2 = jnp.zeros((1, PROJ), jnp.float32)

    wa = (jax.random.normal(ks[3], (PROJ, HID), jnp.float32) * s(PROJ)).astype(jnp.bfloat16)
    ba = jnp.zeros((1, HID), jnp.float32)
    wb = (jax.random.normal(ks[4], (HID, PROJ), jnp.float32) * s(HID)).astype(jnp.bfloat16)
    bb = jnp.zeros((1, PROJ), jnp.float32)

    return (w0, b0, w1, b1, gamma, beta, w2, b2, wa, ba, wb, bb)


if __name__ == "__main__":
    key = jax.random.PRNGKey(0)
    kx1, kx2, kw = jax.random.split(key, 3)
    x1 = jax.random.normal(kx1, (B, C, T, IMG, IMG), jnp.float32)
    x2 = jax.random.normal(kx2, (B, C, T, IMG, IMG), jnp.float32)
    params = init_params(kw)

    loss = byol_ode_forward(x1, x2, params)
    jax.block_until_ready(loss)
    assert loss.shape == () and bool(jnp.isfinite(loss))
    print("KERNEL_OK")
</pallas_src>

<mosaic_0001>
module attributes {stable_mosaic.version = 11 : i64} {
  func.func @byol_ode_kernel(%arg0: i32, %arg1: memref<4x3072xbf16, #tpu.memory_space<vmem>>, %arg2: memref<3072x128xbf16, #tpu.memory_space<vmem>>, %arg3: memref<1x128xf32, #tpu.memory_space<vmem>>, %arg4: memref<128x128xbf16, #tpu.memory_space<vmem>>, %arg5: memref<1x128xf32, #tpu.memory_space<vmem>>, %arg6: memref<1x128xf32, #tpu.memory_space<vmem>>, %arg7: memref<1x128xf32, #tpu.memory_space<vmem>>, %arg8: memref<128x128xbf16, #tpu.memory_space<vmem>>, %arg9: memref<1x128xf32, #tpu.memory_space<vmem>>, %arg10: memref<128x128xbf16, #tpu.memory_space<vmem>>, %arg11: memref<1x128xf32, #tpu.memory_space<vmem>>, %arg12: memref<128x128xbf16, #tpu.memory_space<vmem>>, %arg13: memref<1x128xf32, #tpu.memory_space<vmem>>, %arg14: memref<1x1xf32, #tpu.memory_space<smem>>, %arg15: memref<4x128xf32, #tpu.memory_space<vmem>>) attributes {dimension_semantics = [#tpu.dimension_semantics<arbitrary>], iteration_bounds = array<i64: 2>, scalar_prefetch = 0 : i64, scratch_operands = 1 : i64, tpu.core_type = #tpu.core_type<tc>, window_params = [{transform_indices = @transform_0, window_bounds = array<i64: 4, 3072>}, {transform_indices = @transform_1, window_bounds = array<i64: 3072, 128>}, {pipeline_mode = #tpu.pipeline_mode<synchronous>, transform_indices = @transform_2, window_bounds = array<i64: 1, 128>}, {pipeline_mode = #tpu.pipeline_mode<synchronous>, transform_indices = @transform_3, window_bounds = array<i64: 128, 128>}, {pipeline_mode = #tpu.pipeline_mode<synchronous>, transform_indices = @transform_4, window_bounds = array<i64: 1, 128>}, {pipeline_mode = #tpu.pipeline_mode<synchronous>, transform_indices = @transform_5, window_bounds = array<i64: 1, 128>}, {pipeline_mode = #tpu.pipeline_mode<synchronous>, transform_indices = @transform_6, window_bounds = array<i64: 1, 128>}, {pipeline_mode = #tpu.pipeline_mode<synchronous>, transform_indices = @transform_7, window_bounds = array<i64: 128, 128>}, {pipeline_mode = #tpu.pipeline_mode<synchronous>, transform_indices = @transform_8, window_bounds = array<i64: 1, 128>}, {pipeline_mode = #tpu.pipeline_mode<synchronous>, transform_indices = @transform_9, window_bounds = array<i64: 128, 128>}, {pipeline_mode = #tpu.pipeline_mode<synchronous>, transform_indices = @transform_10, window_bounds = array<i64: 1, 128>}, {pipeline_mode = #tpu.pipeline_mode<synchronous>, transform_indices = @transform_11, window_bounds = array<i64: 128, 128>}, {pipeline_mode = #tpu.pipeline_mode<synchronous>, transform_indices = @transform_12, window_bounds = array<i64: 1, 128>}, {transform_indices = @transform_13, window_bounds = array<i64: 1, 1>}]} {
    %c0_i32 = arith.constant 0 : i32
    %0 = arith.cmpi eq, %arg0, %c0_i32 : i32
    %1 = arith.extui %0 : i1 to i32
    %c0_i32_0 = arith.constant 0 : i32
    %2 = arith.cmpi ne, %1, %c0_i32_0 : i32
    scf.if %2 {
      %cst_9 = arith.constant 0.000000e+00 : f32
      %12 = vector.broadcast %cst_9 : f32 to vector<4x128xf32>
      %c0_10 = arith.constant 0 : index
      %c0_11 = arith.constant 0 : index
      %13 = vector.load %arg15[%c0_10, %c0_11] : memref<4x128xf32, #tpu.memory_space<vmem>>, vector<4x128xf32>
      tpu.vector_store %arg15[%c0_10, %c0_11], %12 {strides = array<i32>} : memref<4x128xf32, #tpu.memory_space<vmem>>, vector<4x128xf32>,
    } else {
    }
    %c0 = arith.constant 0 : index
    %c0_1 = arith.constant 0 : index
    %3 = vector.load %arg15[%c0, %c0_1] : memref<4x128xf32, #tpu.memory_space<vmem>>, vector<4x128xf32>
    %c0_2 = arith.constant 0 : index
    %c0_3 = arith.constant 0 : index
    %4 = vector.load %arg1[%c0_2, %c0_3] : memref<4x3072xbf16, #tpu.memory_space<vmem>>, vector<4x3072xbf16>
    %c0_4 = arith.constant 0 : index
    %c0_5 = arith.constant 0 : index
    %5 = vector.load %arg2[%c0_4, %c0_5] : memref<3072x128xbf16, #tpu.memory_space<vmem>>, vector<3072x128xbf16>
    %cst = arith.constant dense<0.000000e+00> : vector<4x128xf32>
    %6 = tpu.matmul %4, %5, %cst {dimension_numbers = #tpu.dot_dimension_numbers<[1], [0], [0], [1], [0, 0, 1, 1], [], []>} : vector<4x3072xbf16>, vector<3072x128xbf16>, vector<4x128xf32> -> vector<4x128xf32>
    %7 = arith.addf %3, %6 : vector<4x128xf32>
    %c0_6 = arith.constant 0 : index
    %c0_7 = arith.constant 0 : index
    %8 = vector.load %arg15[%c0_6, %c0_7] : memref<4x128xf32, #tpu.memory_space<vmem>>, vector<4x128xf32>
    tpu.vector_store %arg15[%c0_6, %c0_7], %7 {strides = array<i32>} : memref<4x128xf32, #tpu.memory_space<vmem>>, vector<4x128xf32>,
    %c1_i32 = arith.constant 1 : i32
    %9 = arith.cmpi eq, %arg0, %c1_i32 : i32
    %10 = arith.extui %9 : i1 to i32
    %c0_i32_8 = arith.constant 0 : i32
    %11 = arith.cmpi ne, %10, %c0_i32_8 : i32
    scf.if %11 {
      %c0_9 = arith.constant 0 : index
      %c0_10 = arith.constant 0 : index
      %12 = vector.load %arg15[%c0_9, %c0_10] : memref<4x128xf32, #tpu.memory_space<vmem>>, vector<4x128xf32>
      %c0_11 = arith.constant 0 : index
      %c0_12 = arith.constant 0 : index
      %13 = vector.load %arg3[%c0_11, %c0_12] : memref<1x128xf32, #tpu.memory_space<vmem>>, vector<1x128xf32>
      %14 = vector.broadcast %13 : vector<1x128xf32> to vector<4x128xf32>
      %15 = arith.addf %12, %14 : vector<4x128xf32>
      %cst_13 = arith.constant 0.000000e+00 : f32
      %16 = vector.broadcast %cst_13 : f32 to vector<4x128xf32>
      %17 = arith.maximumf %15, %16 : vector<4x128xf32>
      %18 = arith.truncf %17 : vector<4x128xf32> to vector<4x128xbf16>
      %c0_14 = arith.constant 0 : index
      %c0_15 = arith.constant 0 : index
      %19 = vector.load %arg4[%c0_14, %c0_15] : memref<128x128xbf16, #tpu.memory_space<vmem>>, vector<128x128xbf16>
      %cst_16 = arith.constant dense<0.000000e+00> : vector<4x128xf32>
      %20 = tpu.matmul %18, %19, %cst_16 {dimension_numbers = #tpu.dot_dimension_numbers<[1], [0], [0], [1], [0, 0, 1, 1], [], []>} : vector<4x128xbf16>, vector<128x128xbf16>, vector<4x128xf32> -> vector<4x128xf32>
      %c0_17 = arith.constant 0 : index
      %c0_18 = arith.constant 0 : index
      %21 = vector.load %arg5[%c0_17, %c0_18] : memref<1x128xf32, #tpu.memory_space<vmem>>, vector<1x128xf32>
      %22 = vector.broadcast %21 : vector<1x128xf32> to vector<4x128xf32>
      %23 = arith.addf %20, %22 : vector<4x128xf32>
      %24 = tpu.iota {dimensions = array<i32: 0>} : vector<4x128xi32>
      %c2_i32 = arith.constant 2 : i32
      %25 = vector.broadcast %c2_i32 : i32 to vector<4x128xi32>
      %26 = arith.cmpi slt, %24, %25 : vector<4x128xi32>
      %27 = arith.extui %26 : vector<4x128xi1> to vector<4x128xi32>
      %28 = arith.sitofp %27 : vector<4x128xi32> to vector<4x128xf32>
      %cst_19 = arith.constant 1.000000e+00 : f32
      %29 = vector.broadcast %cst_19 : f32 to vector<4x128xf32>
      %30 = arith.subf %29, %28 : vector<4x128xf32>
      %31 = arith.mulf %23, %28 : vector<4x128xf32>
      %cst_20 = arith.constant dense<0.000000e+00> : vector<128xf32>
      %32 = vector.multi_reduction <add>, %31, %cst_20 [0] : vector<4x128xf32> to vector<128xf32>
      %33 = vector.shape_cast %32 : vector<128xf32> to vector<1x128xf32>
      %cst_21 = arith.constant 5.000000e-01 : f32
      %34 = vector.broadcast %cst_21 : f32 to vector<1x128xf32>
      %35 = arith.mulf %33, %34 : vector<1x128xf32>
      %36 = arith.mulf %23, %30 : vector<4x128xf32>
      %cst_22 = arith.constant dense<0.000000e+00> : vector<128xf32>
      %37 = vector.multi_reduction <add>, %36, %cst_22 [0] : vector<4x128xf32> to vector<128xf32>
      %38 = vector.shape_cast %37 : vector<128xf32> to vector<1x128xf32>
      %cst_23 = arith.constant 5.000000e-01 : f32
      %39 = vector.broadcast %cst_23 : f32 to vector<1x128xf32>
      %40 = arith.mulf %38, %39 : vector<1x128xf32>
      %41 = vector.broadcast %35 : vector<1x128xf32> to vector<4x128xf32>
      %42 = arith.mulf %28, %41 : vector<4x128xf32>
      %43 = vector.broadcast %40 : vector<1x128xf32> to vector<4x128xf32>
      %44 = arith.mulf %30, %43 : vector<4x128xf32>
      %45 = arith.addf %42, %44 : vector<4x128xf32>
      %46 = arith.subf %23, %45 : vector<4x128xf32>
      %47 = arith.mulf %46, %46 : vector<4x128xf32>
      %48 = arith.mulf %47, %28 : vector<4x128xf32>
      %cst_24 = arith.constant dense<0.000000e+00> : vector<128xf32>
      %49 = vector.multi_reduction <add>, %48, %cst_24 [0] : vector<4x128xf32> to vector<128xf32>
      %50 = vector.shape_cast %49 : vector<128xf32> to vector<1x128xf32>
      %cst_25 = arith.constant 5.000000e-01 : f32
      %51 = vector.broadcast %cst_25 : f32 to vector<1x128xf32>
      %52 = arith.mulf %50, %51 : vector<1x128xf32>
      %53 = arith.mulf %46, %46 : vector<4x128xf32>
      %54 = arith.mulf %53, %30 : vector<4x128xf32>
      %cst_26 = arith.constant dense<0.000000e+00> : vector<128xf32>
      %55 = vector.multi_reduction <add>, %54, %cst_26 [0] : vector<4x128xf32> to vector<128xf32>
      %56 = vector.shape_cast %55 : vector<128xf32> to vector<1x128xf32>
      %cst_27 = arith.constant 5.000000e-01 : f32
      %57 = vector.broadcast %cst_27 : f32 to vector<1x128xf32>
      %58 = arith.mulf %56, %57 : vector<1x128xf32>
      %59 = vector.broadcast %52 : vector<1x128xf32> to vector<4x128xf32>
      %60 = arith.mulf %28, %59 : vector<4x128xf32>
      %61 = vector.broadcast %58 : vector<1x128xf32> to vector<4x128xf32>
      %62 = arith.mulf %30, %61 : vector<4x128xf32>
      %63 = arith.addf %60, %62 : vector<4x128xf32>
      %cst_28 = arith.constant 9.99999974E-6 : f32
      %64 = vector.broadcast %cst_28 : f32 to vector<4x128xf32>
      %65 = arith.addf %63, %64 : vector<4x128xf32>
      %66 = math.rsqrt %65 : vector<4x128xf32>
      %67 = arith.mulf %46, %66 : vector<4x128xf32>
      %c0_29 = arith.constant 0 : index
      %c0_30 = arith.constant 0 : index
      %68 = vector.load %arg6[%c0_29, %c0_30] : memref<1x128xf32, #tpu.memory_space<vmem>>, vector<1x128xf32>
      %69 = vector.broadcast %68 : vector<1x128xf32> to vector<4x128xf32>
      %70 = arith.mulf %67, %69 : vector<4x128xf32>
      %c0_31 = arith.constant 0 : index
      %c0_32 = arith.constant 0 : index
      %71 = vector.load %arg7[%c0_31, %c0_32] : memref<1x128xf32, #tpu.memory_space<vmem>>, vector<1x128xf32>
      %72 = vector.broadcast %71 : vector<1x128xf32> to vector<4x128xf32>
      %73 = arith.addf %70, %72 : vector<4x128xf32>
      %cst_33 = arith.constant 0.000000e+00 : f32
      %74 = vector.broadcast %cst_33 : f32 to vector<4x128xf32>
      %75 = arith.maximumf %73, %74 : vector<4x128xf32>
      %76 = arith.truncf %75 : vector<4x128xf32> to vector<4x128xbf16>
      %c0_34 = arith.constant 0 : index
      %c0_35 = arith.constant 0 : index
      %77 = vector.load %arg8[%c0_34, %c0_35] : memref<128x128xbf16, #tpu.memory_space<vmem>>, vector<128x128xbf16>
      %cst_36 = arith.constant dense<0.000000e+00> : vector<4x128xf32>
      %78 = tpu.matmul %76, %77, %cst_36 {dimension_numbers = #tpu.dot_dimension_numbers<[1], [0], [0], [1], [0, 0, 1, 1], [], []>} : vector<4x128xbf16>, vector<128x128xbf16>, vector<4x128xf32> -> vector<4x128xf32>
      %c0_37 = arith.constant 0 : index
      %c0_38 = arith.constant 0 : index
      %79 = vector.load %arg9[%c0_37, %c0_38] : memref<1x128xf32, #tpu.memory_space<vmem>>, vector<1x128xf32>
      %80 = vector.broadcast %79 : vector<1x128xf32> to vector<4x128xf32>
      %81 = arith.addf %78, %80 : vector<4x128xf32>
      %c0_39 = arith.constant 0 : index
      %c0_40 = arith.constant 0 : index
      %82 = vector.load %arg10[%c0_39, %c0_40] : memref<128x128xbf16, #tpu.memory_space<vmem>>, vector<128x128xbf16>
      %c0_41 = arith.constant 0 : index
      %c0_42 = arith.constant 0 : index
      %83 = vector.load %arg11[%c0_41, %c0_42] : memref<1x128xf32, #tpu.memory_space<vmem>>, vector<1x128xf32>
      %c0_43 = arith.constant 0 : index
      %c0_44 = arith.constant 0 : index
      %84 = vector.load %arg12[%c0_43, %c0_44] : memref<128x128xbf16, #tpu.memory_space<vmem>>, vector<128x128xbf16>
      %c0_45 = arith.constant 0 : index
      %c0_46 = arith.constant 0 : index
      %85 = vector.load %arg13[%c0_45, %c0_46] : memref<1x128xf32, #tpu.memory_space<vmem>>, vector<1x128xf32>
      %cst_47 = arith.constant 2.500000e-01 : f32
      %cst_48 = arith.constant -2.500000e-01 : f32
      %86 = vector.broadcast %cst_47 : f32 to vector<4x128xf32>
      %87 = vector.broadcast %cst_48 : f32 to vector<4x128xf32>
      %88 = arith.select %26, %86, %87 : vector<4x128xi1>, vector<4x128xf32>
      %cst_49 = arith.constant 5.000000e-01 : f32
      %89 = vector.broadcast %cst_49 : f32 to vector<4x128xf32>
      %90 = arith.mulf %89, %88 : vector<4x128xf32>
      %cst_50 = arith.constant 0.166666672 : f32
      %91 = vector.broadcast %cst_50 : f32 to vector<4x128xf32>
      %92 = arith.mulf %88, %91 : vector<4x128xf32>
      %93 = arith.truncf %81 : vector<4x128xf32> to vector<4x128xbf16>
      %cst_51 = arith.constant dense<0.000000e+00> : vector<4x128xf32>
      %94 = tpu.matmul %93, %82, %cst_51 {dimension_numbers = #tpu.dot_dimension_numbers<[1], [0], [0], [1], [0, 0, 1, 1], [], []>} : vector<4x128xbf16>, vector<128x128xbf16>, vector<4x128xf32> -> vector<4x128xf32>
      %95 = vector.broadcast %83 : vector<1x128xf32> to vector<4x128xf32>
      %96 = arith.addf %94, %95 : vector<4x128xf32>
      %97 = math.tanh %96 : vector<4x128xf32>
      %98 = arith.truncf %97 : vector<4x128xf32> to vector<4x128xbf16>
      %cst_52 = arith.constant dense<0.000000e+00> : vector<4x128xf32>
      %99 = tpu.matmul %98, %84, %cst_52 {dimension_numbers = #tpu.dot_dimension_numbers<[1], [0], [0], [1], [0, 0, 1, 1], [], []>} : vector<4x128xbf16>, vector<128x128xbf16>, vector<4x128xf32> -> vector<4x128xf32>
      %100 = vector.broadcast %85 : vector<1x128xf32> to vector<4x128xf32>
      %101 = arith.addf %99, %100 : vector<4x128xf32>
      %102 = arith.mulf %90, %101 : vector<4x128xf32>
      %103 = arith.addf %81, %102 : vector<4x128xf32>
      %104 = arith.truncf %103 : vector<4x128xf32> to vector<4x128xbf16>
      %cst_53 = arith.constant dense<0.000000e+00> : vector<4x128xf32>
      %105 = tpu.matmul %104, %82, %cst_53 {dimension_numbers = #tpu.dot_dimension_numbers<[1], [0], [0], [1], [0, 0, 1, 1], [], []>} : vector<4x128xbf16>, vector<128x128xbf16>, vector<4x128xf32> -> vector<4x128xf32>
      %106 = vector.broadcast %83 : vector<1x128xf32> to vector<4x128xf32>
      %107 = arith.addf %105, %106 : vector<4x128xf32>
      %108 = math.tanh %107 : vector<4x128xf32>
      %109 = arith.truncf %108 : vector<4x128xf32> to vector<4x128xbf16>
      %cst_54 = arith.constant dense<0.000000e+00> : vector<4x128xf32>
      %110 = tpu.matmul %109, %84, %cst_54 {dimension_numbers = #tpu.dot_dimension_numbers<[1], [0], [0], [1], [0, 0, 1, 1], [], []>} : vector<4x128xbf16>, vector<128x128xbf16>, vector<4x128xf32> -> vector<4x128xf32>
      %111 = vector.broadcast %85 : vector<1x128xf32> to vector<4x128xf32>
      %112 = arith.addf %110, %111 : vector<4x128xf32>
      %113 = arith.mulf %90, %112 : vector<4x128xf32>
      %114 = arith.addf %81, %113 : vector<4x128xf32>
      %115 = arith.truncf %114 : vector<4x128xf32> to vector<4x128xbf16>
      %cst_55 = arith.constant dense<0.000000e+00> : vector<4x128xf32>
      %116 = tpu.matmul %115, %82, %cst_55 {dimension_numbers = #tpu.dot_dimension_numbers<[1], [0], [0], [1], [0, 0, 1, 1], [], []>} : vector<4x128xbf16>, vector<128x128xbf16>, vector<4x128xf32> -> vector<4x128xf32>
      %117 = vector.broadcast %83 : vector<1x128xf32> to vector<4x128xf32>
      %118 = arith.addf %116, %117 : vector<4x128xf32>
      %119 = math.tanh %118 : vector<4x128xf32>
      %120 = arith.truncf %119 : vector<4x128xf32> to vector<4x128xbf16>
      %cst_56 = arith.constant dense<0.000000e+00> : vector<4x128xf32>
      %121 = tpu.matmul %120, %84, %cst_56 {dimension_numbers = #tpu.dot_dimension_numbers<[1], [0], [0], [1], [0, 0, 1, 1], [], []>} : vector<4x128xbf16>, vector<128x128xbf16>, vector<4x128xf32> -> vector<4x128xf32>
      %122 = vector.broadcast %85 : vector<1x128xf32> to vector<4x128xf32>
      %123 = arith.addf %121, %122 : vector<4x128xf32>
      %124 = arith.mulf %88, %123 : vector<4x128xf32>
      %125 = arith.addf %81, %124 : vector<4x128xf32>
      %126 = arith.truncf %125 : vector<4x128xf32> to vector<4x128xbf16>
      %cst_57 = arith.constant dense<0.000000e+00> : vector<4x128xf32>
      %127 = tpu.matmul %126, %82, %cst_57 {dimension_numbers = #tpu.dot_dimension_numbers<[1], [0], [0], [1], [0, 0, 1, 1], [], []>} : vector<4x128xbf16>, vector<128x128xbf16>, vector<4x128xf32> -> vector<4x128xf32>
      %128 = vector.broadcast %83 : vector<1x128xf32> to vector<4x128xf32>
      %129 = arith.addf %127, %128 : vector<4x128xf32>
      %130 = math.tanh %129 : vector<4x128xf32>
      %131 = arith.truncf %130 : vector<4x128xf32> to vector<4x128xbf16>
      %cst_58 = arith.constant dense<0.000000e+00> : vector<4x128xf32>
      %132 = tpu.matmul %131, %84, %cst_58 {dimension_numbers = #tpu.dot_dimension_numbers<[1], [0], [0], [1], [0, 0, 1, 1], [], []>} : vector<4x128xbf16>, vector<128x128xbf16>, vector<4x128xf32> -> vector<4x128xf32>
      %133 = vector.broadcast %85 : vector<1x128xf32> to vector<4x128xf32>
      %134 = arith.addf %132, %133 : vector<4x128xf32>
      %cst_59 = arith.constant 2.000000e+00 : f32
      %135 = vector.broadcast %cst_59 : f32 to vector<4x128xf32>
      %136 = arith.mulf %135, %112 : vector<4x128xf32>
      %137 = arith.addf %101, %136 : vector<4x128xf32>
      %cst_60 = arith.constant 2.000000e+00 : f32
      %138 = vector.broadcast %cst_60 : f32 to vector<4x128xf32>
      %139 = arith.mulf %138, %123 : vector<4x128xf32>
      %140 = arith.addf %137, %139 : vector<4x128xf32>
      %141 = arith.addf %140, %134 : vector<4x128xf32>
      %142 = arith.mulf %92, %141 : vector<4x128xf32>
      %143 = arith.addf %81, %142 : vector<4x128xf32>
      %144 = arith.truncf %143 : vector<4x128xf32> to vector<4x128xbf16>
      %cst_61 = arith.constant dense<0.000000e+00> : vector<4x128xf32>
      %145 = tpu.matmul %144, %82, %cst_61 {dimension_numbers = #tpu.dot_dimension_numbers<[1], [0], [0], [1], [0, 0, 1, 1], [], []>} : vector<4x128xbf16>, vector<128x128xbf16>, vector<4x128xf32> -> vector<4x128xf32>
      %146 = vector.broadcast %83 : vector<1x128xf32> to vector<4x128xf32>
      %147 = arith.addf %145, %146 : vector<4x128xf32>
      %148 = math.tanh %147 : vector<4x128xf32>
      %149 = arith.truncf %148 : vector<4x128xf32> to vector<4x128xbf16>
      %cst_62 = arith.constant dense<0.000000e+00> : vector<4x128xf32>
      %150 = tpu.matmul %149, %84, %cst_62 {dimension_numbers = #tpu.dot_dimension_numbers<[1], [0], [0], [1], [0, 0, 1, 1], [], []>} : vector<4x128xbf16>, vector<128x128xbf16>, vector<4x128xf32> -> vector<4x128xf32>
      %151 = vector.broadcast %85 : vector<1x128xf32> to vector<4x128xf32>
      %152 = arith.addf %150, %151 : vector<4x128xf32>
      %153 = arith.mulf %90, %152 : vector<4x128xf32>
      %154 = arith.addf %143, %153 : vector<4x128xf32>
      %155 = arith.truncf %154 : vector<4x128xf32> to vector<4x128xbf16>
      %cst_63 = arith.constant dense<0.000000e+00> : vector<4x128xf32>
      %156 = tpu.matmul %155, %82, %cst_63 {dimension_numbers = #tpu.dot_dimension_numbers<[1], [0], [0], [1], [0, 0, 1, 1], [], []>} : vector<4x128xbf16>, vector<128x128xbf16>, vector<4x128xf32> -> vector<4x128xf32>
      %157 = vector.broadcast %83 : vector<1x128xf32> to vector<4x128xf32>
      %158 = arith.addf %156, %157 : vector<4x128xf32>
      %159 = math.tanh %158 : vector<4x128xf32>
      %160 = arith.truncf %159 : vector<4x128xf32> to vector<4x128xbf16>
      %cst_64 = arith.constant dense<0.000000e+00> : vector<4x128xf32>
      %161 = tpu.matmul %160, %84, %cst_64 {dimension_numbers = #tpu.dot_dimension_numbers<[1], [0], [0], [1], [0, 0, 1, 1], [], []>} : vector<4x128xbf16>, vector<128x128xbf16>, vector<4x128xf32> -> vector<4x128xf32>
      %162 = vector.broadcast %85 : vector<1x128xf32> to vector<4x128xf32>
      %163 = arith.addf %161, %162 : vector<4x128xf32>
      %164 = arith.mulf %90, %163 : vector<4x128xf32>
      %165 = arith.addf %143, %164 : vector<4x128xf32>
      %166 = arith.truncf %165 : vector<4x128xf32> to vector<4x128xbf16>
      %cst_65 = arith.constant dense<0.000000e+00> : vector<4x128xf32>
      %167 = tpu.matmul %166, %82, %cst_65 {dimension_numbers = #tpu.dot_dimension_numbers<[1], [0], [0], [1], [0, 0, 1, 1], [], []>} : vector<4x128xbf16>, vector<128x128xbf16>, vector<4x128xf32> -> vector<4x128xf32>
      %168 = vector.broadcast %83 : vector<1x128xf32> to vector<4x128xf32>
      %169 = arith.addf %167, %168 : vector<4x128xf32>
      %170 = math.tanh %169 : vector<4x128xf32>
      %171 = arith.truncf %170 : vector<4x128xf32> to vector<4x128xbf16>
      %cst_66 = arith.constant dense<0.000000e+00> : vector<4x128xf32>
      %172 = tpu.matmul %171, %84, %cst_66 {dimension_numbers = #tpu.dot_dimension_numbers<[1], [0], [0], [1], [0, 0, 1, 1], [], []>} : vector<4x128xbf16>, vector<128x128xbf16>, vector<4x128xf32> -> vector<4x128xf32>
      %173 = vector.broadcast %85 : vector<1x128xf32> to vector<4x128xf32>
      %174 = arith.addf %172, %173 : vector<4x128xf32>
      %175 = arith.mulf %88, %174 : vector<4x128xf32>
      %176 = arith.addf %143, %175 : vector<4x128xf32>
      %177 = arith.truncf %176 : vector<4x128xf32> to vector<4x128xbf16>
      %cst_67 = arith.constant dense<0.000000e+00> : vector<4x128xf32>
      %178 = tpu.matmul %177, %82, %cst_67 {dimension_numbers = #tpu.dot_dimension_numbers<[1], [0], [0], [1], [0, 0, 1, 1], [], []>} : vector<4x128xbf16>, vector<128x128xbf16>, vector<4x128xf32> -> vector<4x128xf32>
      %179 = vector.broadcast %83 : vector<1x128xf32> to vector<4x128xf32>
      %180 = arith.addf %178, %179 : vector<4x128xf32>
      %181 = math.tanh %180 : vector<4x128xf32>
      %182 = arith.truncf %181 : vector<4x128xf32> to vector<4x128xbf16>
      %cst_68 = arith.constant dense<0.000000e+00> : vector<4x128xf32>
      %183 = tpu.matmul %182, %84, %cst_68 {dimension_numbers = #tpu.dot_dimension_numbers<[1], [0], [0], [1], [0, 0, 1, 1], [], []>} : vector<4x128xbf16>, vector<128x128xbf16>, vector<4x128xf32> -> vector<4x128xf32>
      %184 = vector.broadcast %85 : vector<1x128xf32> to vector<4x128xf32>
      %185 = arith.addf %183, %184 : vector<4x128xf32>
      %cst_69 = arith.constant 2.000000e+00 : f32
      %186 = vector.broadcast %cst_69 : f32 to vector<4x128xf32>
      %187 = arith.mulf %186, %163 : vector<4x128xf32>
      %188 = arith.addf %152, %187 : vector<4x128xf32>
      %cst_70 = arith.constant 2.000000e+00 : f32
      %189 = vector.broadcast %cst_70 : f32 to vector<4x128xf32>
      %190 = arith.mulf %189, %174 : vector<4x128xf32>
      %191 = arith.addf %188, %190 : vector<4x128xf32>
      %192 = arith.addf %191, %185 : vector<4x128xf32>
      %193 = arith.mulf %92, %192 : vector<4x128xf32>
      %194 = arith.addf %143, %193 : vector<4x128xf32>
      %195 = arith.truncf %194 : vector<4x128xf32> to vector<4x128xbf16>
      %cst_71 = arith.constant dense<0.000000e+00> : vector<4x128xf32>
      %196 = tpu.matmul %195, %82, %cst_71 {dimension_numbers = #tpu.dot_dimension_numbers<[1], [0], [0], [1], [0, 0, 1, 1], [], []>} : vector<4x128xbf16>, vector<128x128xbf16>, vector<4x128xf32> -> vector<4x128xf32>
      %197 = vector.broadcast %83 : vector<1x128xf32> to vector<4x128xf32>
      %198 = arith.addf %196, %197 : vector<4x128xf32>
      %199 = math.tanh %198 : vector<4x128xf32>
      %200 = arith.truncf %199 : vector<4x128xf32> to vector<4x128xbf16>
      %cst_72 = arith.constant dense<0.000000e+00> : vector<4x128xf32>
      %201 = tpu.matmul %200, %84, %cst_72 {dimension_numbers = #tpu.dot_dimension_numbers<[1], [0], [0], [1], [0, 0, 1, 1], [], []>} : vector<4x128xbf16>, vector<128x128xbf16>, vector<4x128xf32> -> vector<4x128xf32>
      %202 = vector.broadcast %85 : vector<1x128xf32> to vector<4x128xf32>
      %203 = arith.addf %201, %202 : vector<4x128xf32>
      %204 = arith.mulf %90, %203 : vector<4x128xf32>
      %205 = arith.addf %194, %204 : vector<4x128xf32>
      %206 = arith.truncf %205 : vector<4x128xf32> to vector<4x128xbf16>
      %cst_73 = arith.constant dense<0.000000e+00> : vector<4x128xf32>
      %207 = tpu.matmul %206, %82, %cst_73 {dimension_numbers = #tpu.dot_dimension_numbers<[1], [0], [0], [1], [0, 0, 1, 1], [], []>} : vector<4x128xbf16>, vector<128x128xbf16>, vector<4x128xf32> -> vector<4x128xf32>
      %208 = vector.broadcast %83 : vector<1x128xf32> to vector<4x128xf32>
      %209 = arith.addf %207, %208 : vector<4x128xf32>
      %210 = math.tanh %209 : vector<4x128xf32>
      %211 = arith.truncf %210 : vector<4x128xf32> to vector<4x128xbf16>
      %cst_74 = arith.constant dense<0.000000e+00> : vector<4x128xf32>
      %212 = tpu.matmul %211, %84, %cst_74 {dimension_numbers = #tpu.dot_dimension_numbers<[1], [0], [0], [1], [0, 0, 1, 1], [], []>} : vector<4x128xbf16>, vector<128x128xbf16>, vector<4x128xf32> -> vector<4x128xf32>
      %213 = vector.broadcast %85 : vector<1x128xf32> to vector<4x128xf32>
      %214 = arith.addf %212, %213 : vector<4x128xf32>
      %215 = arith.mulf %90, %214 : vector<4x128xf32>
      %216 = arith.addf %194, %215 : vector<4x128xf32>
      %217 = arith.truncf %216 : vector<4x128xf32> to vector<4x128xbf16>
      %cst_75 = arith.constant dense<0.000000e+00> : vector<4x128xf32>
      %218 = tpu.matmul %217, %82, %cst_75 {dimension_numbers = #tpu.dot_dimension_numbers<[1], [0], [0], [1], [0, 0, 1, 1], [], []>} : vector<4x128xbf16>, vector<128x128xbf16>, vector<4x128xf32> -> vector<4x128xf32>
      %219 = vector.broadcast %83 : vector<1x128xf32> to vector<4x128xf32>
      %220 = arith.addf %218, %219 : vector<4x128xf32>
      %221 = math.tanh %220 : vector<4x128xf32>
      %222 = arith.truncf %221 : vector<4x128xf32> to vector<4x128xbf16>
      %cst_76 = arith.constant dense<0.000000e+00> : vector<4x128xf32>
      %223 = tpu.matmul %222, %84, %cst_76 {dimension_numbers = #tpu.dot_dimension_numbers<[1], [0], [0], [1], [0, 0, 1, 1], [], []>} : vector<4x128xbf16>, vector<128x128xbf16>, vector<4x128xf32> -> vector<4x128xf32>
      %224 = vector.broadcast %85 : vector<1x128xf32> to vector<4x128xf32>
      %225 = arith.addf %223, %224 : vector<4x128xf32>
      %226 = arith.mulf %88, %225 : vector<4x128xf32>
      %227 = arith.addf %194, %226 : vector<4x128xf32>
      %228 = arith.truncf %227 : vector<4x128xf32> to vector<4x128xbf16>
      %cst_77 = arith.constant dense<0.000000e+00> : vector<4x128xf32>
      %229 = tpu.matmul %228, %82, %cst_77 {dimension_numbers = #tpu.dot_dimension_numbers<[1], [0], [0], [1], [0, 0, 1, 1], [], []>} : vector<4x128xbf16>, vector<128x128xbf16>, vector<4x128xf32> -> vector<4x128xf32>
      %230 = vector.broadcast %83 : vector<1x128xf32> to vector<4x128xf32>
      %231 = arith.addf %229, %230 : vector<4x128xf32>
      %232 = math.tanh %231 : vector<4x128xf32>
      %233 = arith.truncf %232 : vector<4x128xf32> to vector<4x128xbf16>
      %cst_78 = arith.constant dense<0.000000e+00> : vector<4x128xf32>
      %234 = tpu.matmul %233, %84, %cst_78 {dimension_numbers = #tpu.dot_dimension_numbers<[1], [0], [0], [1], [0, 0, 1, 1], [], []>} : vector<4x128xbf16>, vector<128x128xbf16>, vector<4x128xf32> -> vector<4x128xf32>
      %235 = vector.broadcast %85 : vector<1x128xf32> to vector<4x128xf32>
      %236 = arith.addf %234, %235 : vector<4x128xf32>
      %cst_79 = arith.constant 2.000000e+00 : f32
      %237 = vector.broadcast %cst_79 : f32 to vector<4x128xf32>
      %238 = arith.mulf %237, %214 : vector<4x128xf32>
      %239 = arith.addf %203, %238 : vector<4x128xf32>
      %cst_80 = arith.constant 2.000000e+00 : f32
      %240 = vector.broadcast %cst_80 : f32 to vector<4x128xf32>
      %241 = arith.mulf %240, %225 : vector<4x128xf32>
      %242 = arith.addf %239, %241 : vector<4x128xf32>
      %243 = arith.addf %242, %236 : vector<4x128xf32>
      %244 = arith.mulf %92, %243 : vector<4x128xf32>
      %245 = arith.addf %194, %244 : vector<4x128xf32>
      %246 = arith.truncf %245 : vector<4x128xf32> to vector<4x128xbf16>
      %cst_81 = arith.constant dense<0.000000e+00> : vector<4x128xf32>
      %247 = tpu.matmul %246, %82, %cst_81 {dimension_numbers = #tpu.dot_dimension_numbers<[1], [0], [0], [1], [0, 0, 1, 1], [], []>} : vector<4x128xbf16>, vector<128x128xbf16>, vector<4x128xf32> -> vector<4x128xf32>
      %248 = vector.broadcast %83 : vector<1x128xf32> to vector<4x128xf32>
      %249 = arith.addf %247, %248 : vector<4x128xf32>
      %250 = math.tanh %249 : vector<4x128xf32>
      %251 = arith.truncf %250 : vector<4x128xf32> to vector<4x128xbf16>
      %cst_82 = arith.constant dense<0.000000e+00> : vector<4x128xf32>
      %252 = tpu.matmul %251, %84, %cst_82 {dimension_numbers = #tpu.dot_dimension_numbers<[1], [0], [0], [1], [0, 0, 1, 1], [], []>} : vector<4x128xbf16>, vector<128x128xbf16>, vector<4x128xf32> -> vector<4x128xf32>
      %253 = vector.broadcast %85 : vector<1x128xf32> to vector<4x128xf32>
      %254 = arith.addf %252, %253 : vector<4x128xf32>
      %255 = arith.mulf %90, %254 : vector<4x128xf32>
      %256 = arith.addf %245, %255 : vector<4x128xf32>
      %257 = arith.truncf %256 : vector<4x128xf32> to vector<4x128xbf16>
      %cst_83 = arith.constant dense<0.000000e+00> : vector<4x128xf32>
      %258 = tpu.matmul %257, %82, %cst_83 {dimension_numbers = #tpu.dot_dimension_numbers<[1], [0], [0], [1], [0, 0, 1, 1], [], []>} : vector<4x128xbf16>, vector<128x128xbf16>, vector<4x128xf32> -> vector<4x128xf32>
      %259 = vector.broadcast %83 : vector<1x128xf32> to vector<4x128xf32>
      %260 = arith.addf %258, %259 : vector<4x128xf32>
      %261 = math.tanh %260 : vector<4x128xf32>
      %262 = arith.truncf %261 : vector<4x128xf32> to vector<4x128xbf16>
      %cst_84 = arith.constant dense<0.000000e+00> : vector<4x128xf32>
      %263 = tpu.matmul %262, %84, %cst_84 {dimension_numbers = #tpu.dot_dimension_numbers<[1], [0], [0], [1], [0, 0, 1, 1], [], []>} : vector<4x128xbf16>, vector<128x128xbf16>, vector<4x128xf32> -> vector<4x128xf32>
      %264 = vector.broadcast %85 : vector<1x128xf32> to vector<4x128xf32>
      %265 = arith.addf %263, %264 : vector<4x128xf32>
      %266 = arith.mulf %90, %265 : vector<4x128xf32>
      %267 = arith.addf %245, %266 : vector<4x128xf32>
      %268 = arith.truncf %267 : vector<4x128xf32> to vector<4x128xbf16>
      %cst_85 = arith.constant dense<0.000000e+00> : vector<4x128xf32>
      %269 = tpu.matmul %268, %82, %cst_85 {dimension_numbers = #tpu.dot_dimension_numbers<[1], [0], [0], [1], [0, 0, 1, 1], [], []>} : vector<4x128xbf16>, vector<128x128xbf16>, vector<4x128xf32> -> vector<4x128xf32>
      %270 = vector.broadcast %83 : vector<1x128xf32> to vector<4x128xf32>
      %271 = arith.addf %269, %270 : vector<4x128xf32>
      %272 = math.tanh %271 : vector<4x128xf32>
      %273 = arith.truncf %272 : vector<4x128xf32> to vector<4x128xbf16>
      %cst_86 = arith.constant dense<0.000000e+00> : vector<4x128xf32>
      %274 = tpu.matmul %273, %84, %cst_86 {dimension_numbers = #tpu.dot_dimension_numbers<[1], [0], [0], [1], [0, 0, 1, 1], [], []>} : vector<4x128xbf16>, vector<128x128xbf16>, vector<4x128xf32> -> vector<4x128xf32>
      %275 = vector.broadcast %85 : vector<1x128xf32> to vector<4x128xf32>
      %276 = arith.addf %274, %275 : vector<4x128xf32>
      %277 = arith.mulf %88, %276 : vector<4x128xf32>
      %278 = arith.addf %245, %277 : vector<4x128xf32>
      %279 = arith.truncf %278 : vector<4x128xf32> to vector<4x128xbf16>
      %cst_87 = arith.constant dense<0.000000e+00> : vector<4x128xf32>
      %280 = tpu.matmul %279, %82, %cst_87 {dimension_numbers = #tpu.dot_dimension_numbers<[1], [0], [0], [1], [0, 0, 1, 1], [], []>} : vector<4x128xbf16>, vector<128x128xbf16>, vector<4x128xf32> -> vector<4x128xf32>
      %281 = vector.broadcast %83 : vector<1x128xf32> to vector<4x128xf32>
      %282 = arith.addf %280, %281 : vector<4x128xf32>
      %283 = math.tanh %282 : vector<4x128xf32>
      %284 = arith.truncf %283 : vector<4x128xf32> to vector<4x128xbf16>
      %cst_88 = arith.constant dense<0.000000e+00> : vector<4x128xf32>
      %285 = tpu.matmul %284, %84, %cst_88 {dimension_numbers = #tpu.dot_dimension_numbers<[1], [0], [0], [1], [0, 0, 1, 1], [], []>} : vector<4x128xbf16>, vector<128x128xbf16>, vector<4x128xf32> -> vector<4x128xf32>
      %286 = vector.broadcast %85 : vector<1x128xf32> to vector<4x128xf32>
      %287 = arith.addf %285, %286 : vector<4x128xf32>
      %cst_89 = arith.constant 2.000000e+00 : f32
      %288 = vector.broadcast %cst_89 : f32 to vector<4x128xf32>
      %289 = arith.mulf %288, %265 : vector<4x128xf32>
      %290 = arith.addf %254, %289 : vector<4x128xf32>
      %cst_90 = arith.constant 2.000000e+00 : f32
      %291 = vector.broadcast %cst_90 : f32 to vector<4x128xf32>
      %292 = arith.mulf %291, %276 : vector<4x128xf32>
      %293 = arith.addf %290, %292 : vector<4x128xf32>
      %294 = arith.addf %293, %287 : vector<4x128xf32>
      %295 = arith.mulf %92, %294 : vector<4x128xf32>
      %296 = arith.addf %245, %295 : vector<4x128xf32>
      %297 = tpu.iota {dimensions = array<i32: 0>} : vector<4x4xi32>
      %298 = tpu.iota {dimensions = array<i32: 1>} : vector<4x4xi32>
      %c2_i32_91 = arith.constant 2 : i32
      %299 = vector.broadcast %c2_i32_91 : i32 to vector<4x4xi32>
      %300 = arith.addi %297, %299 : vector<4x4xi32>
      %c4_i32 = arith.constant 4 : i32
      %c0_i32_92 = arith.constant 0 : i32
      %301 = arith.cmpi eq, %c4_i32, %c0_i32_92 : i32
      %c1_i32_93 = arith.constant 1 : i32
      %302 = arith.select %301, %c1_i32_93, %c4_i32 : i32
      %303 = vector.broadcast %302 : i32 to vector<4x4xi32>
      %304 = arith.remsi %300, %303 : vector<4x4xi32>
      %c0_i32_94 = arith.constant 0 : i32
      %305 = vector.broadcast %c0_i32_94 : i32 to vector<4x4xi32>
      %306 = arith.cmpi ne, %304, %305 : vector<4x4xi32>
      %c0_i32_95 = arith.constant 0 : i32
      %307 = vector.broadcast %c0_i32_95 : i32 to vector<4x4xi32>
      %308 = arith.cmpi slt, %304, %307 : vector<4x4xi32>
      %c0_i32_96 = arith.constant 0 : i32
      %309 = arith.cmpi slt, %302, %c0_i32_96 : i32
      %310 = vector.broadcast %309 : i1 to vector<4x4xi1>
      %311 = vector.broadcast %310 : vector<4x4xi1> to vector<4x4xi1>
      %312 = arith.xori %308, %311 : vector<4x4xi1>
      %313 = arith.andi %312, %306 : vector<4x4xi1>
      %314 = vector.broadcast %302 : i32 to vector<4x4xi32>
      %315 = arith.addi %304, %314 : vector<4x4xi32>
      %316 = arith.select %313, %315, %304 : vector<4x4xi1>, vector<4x4xi32>
      %317 = arith.cmpi eq, %316, %298 : vector<4x4xi32>
      %318 = arith.extui %317 : vector<4x4xi1> to vector<4x4xi32>
      %319 = arith.sitofp %318 : vector<4x4xi32> to vector<4x4xf32>
      %cst_97 = arith.constant dense<0.000000e+00> : vector<4x128xf32>
      %320 = tpu.matmul %319, %81, %cst_97 {dimension_numbers = #tpu.dot_dimension_numbers<[1], [0], [0], [1], [0, 0, 1, 1], [], []>} : vector<4x4xf32>, vector<4x128xf32>, vector<4x128xf32> -> vector<4x128xf32>
      %321 = arith.subf %296, %320 : vector<4x128xf32>
      %322 = arith.mulf %321, %321 : vector<4x128xf32>
      %323 = vector.shape_cast %322 : vector<4x128xf32> to vector<1x4x128xf32>
      %cst_98 = arith.constant dense<0.000000e+00> : vector<1xf32>
      %324 = vector.multi_reduction <add>, %323, %cst_98 [1, 2] : vector<1x4x128xf32> to vector<1xf32>
      %325 = vector.shape_cast %324 : vector<1xf32> to vector<1x1x1xf32>
      %326 = vector.extract %325[0, 0, 0] : f32 from vector<1x1x1xf32>
      %cst_99 = arith.constant 3.906250e-03 : f32
      %327 = arith.mulf %326, %cst_99 : f32
      %328 = arith.mulf %296, %28 : vector<4x128xf32>
      %cst_100 = arith.constant dense<0.000000e+00> : vector<128xf32>
      %329 = vector.multi_reduction <add>, %328, %cst_100 [0] : vector<4x128xf32> to vector<128xf32>
      %330 = vector.shape_cast %329 : vector<128xf32> to vector<1x128xf32>
      %cst_101 = arith.constant 5.000000e-01 : f32
      %331 = vector.broadcast %cst_101 : f32 to vector<1x128xf32>
      %332 = arith.mulf %330, %331 : vector<1x128xf32>
      %333 = arith.mulf %296, %30 : vector<4x128xf32>
      %cst_102 = arith.constant dense<0.000000e+00> : vector<128xf32>
      %334 = vector.multi_reduction <add>, %333, %cst_102 [0] : vector<4x128xf32> to vector<128xf32>
      %335 = vector.shape_cast %334 : vector<128xf32> to vector<1x128xf32>
      %cst_103 = arith.constant 5.000000e-01 : f32
      %336 = vector.broadcast %cst_103 : f32 to vector<1x128xf32>
      %337 = arith.mulf %335, %336 : vector<1x128xf32>
      %338 = vector.broadcast %332 : vector<1x128xf32> to vector<4x128xf32>
      %339 = arith.mulf %28, %338 : vector<4x128xf32>
      %340 = vector.broadcast %337 : vector<1x128xf32> to vector<4x128xf32>
      %341 = arith.mulf %30, %340 : vector<4x128xf32>
      %342 = arith.addf %339, %341 : vector<4x128xf32>
      %343 = arith.subf %296, %342 : vector<4x128xf32>
      %344 = arith.mulf %343, %343 : vector<4x128xf32>
      %345 = arith.mulf %344, %28 : vector<4x128xf32>
      %cst_104 = arith.constant dense<0.000000e+00> : vector<128xf32>
      %346 = vector.multi_reduction <add>, %345, %cst_104 [0] : vector<4x128xf32> to vector<128xf32>
      %347 = vector.shape_cast %346 : vector<128xf32> to vector<1x128xf32>
      %cst_105 = arith.constant 1.000000e+00 : f32
      %348 = vector.broadcast %cst_105 : f32 to vector<1x128xf32>
      %349 = arith.mulf %347, %348 : vector<1x128xf32>
      %350 = arith.mulf %343, %343 : vector<4x128xf32>
      %351 = arith.mulf %350, %30 : vector<4x128xf32>
      %cst_106 = arith.constant dense<0.000000e+00> : vector<128xf32>
      %352 = vector.multi_reduction <add>, %351, %cst_106 [0] : vector<4x128xf32> to vector<128xf32>
      %353 = vector.shape_cast %352 : vector<128xf32> to vector<1x128xf32>
      %cst_107 = arith.constant 1.000000e+00 : f32
      %354 = vector.broadcast %cst_107 : f32 to vector<1x128xf32>
      %355 = arith.mulf %353, %354 : vector<1x128xf32>
      %356 = arith.mulf %81, %28 : vector<4x128xf32>
      %cst_108 = arith.constant dense<0.000000e+00> : vector<128xf32>
      %357 = vector.multi_reduction <add>, %356, %cst_108 [0] : vector<4x128xf32> to vector<128xf32>
      %358 = vector.shape_cast %357 : vector<128xf32> to vector<1x128xf32>
      %cst_109 = arith.constant 5.000000e-01 : f32
      %359 = vector.broadcast %cst_109 : f32 to vector<1x128xf32>
      %360 = arith.mulf %358, %359 : vector<1x128xf32>
      %361 = arith.mulf %81, %30 : vector<4x128xf32>
      %cst_110 = arith.constant dense<0.000000e+00> : vector<128xf32>
      %362 = vector.multi_reduction <add>, %361, %cst_110 [0] : vector<4x128xf32> to vector<128xf32>
      %363 = vector.shape_cast %362 : vector<128xf32> to vector<1x128xf32>
      %cst_111 = arith.constant 5.000000e-01 : f32
      %364 = vector.broadcast %cst_111 : f32 to vector<1x128xf32>
      %365 = arith.mulf %363, %364 : vector<1x128xf32>
      %366 = vector.broadcast %360 : vector<1x128xf32> to vector<4x128xf32>
      %367 = arith.mulf %28, %366 : vector<4x128xf32>
      %368 = vector.broadcast %365 : vector<1x128xf32> to vector<4x128xf32>
      %369 = arith.mulf %30, %368 : vector<4x128xf32>
      %370 = arith.addf %367, %369 : vector<4x128xf32>
      %371 = arith.subf %81, %370 : vector<4x128xf32>
      %372 = arith.mulf %371, %371 : vector<4x128xf32>
      %373 = arith.mulf %372, %28 : vector<4x128xf32>
      %cst_112 = arith.constant dense<0.000000e+00> : vector<128xf32>
      %374 = vector.multi_reduction <add>, %373, %cst_112 [0] : vector<4x128xf32> to vector<128xf32>
      %375 = vector.shape_cast %374 : vector<128xf32> to vector<1x128xf32>
      %cst_113 = arith.constant 1.000000e+00 : f32
      %376 = vector.broadcast %cst_113 : f32 to vector<1x128xf32>
      %377 = arith.mulf %375, %376 : vector<1x128xf32>
      %378 = arith.mulf %371, %371 : vector<4x128xf32>
      %379 = arith.mulf %378, %30 : vector<4x128xf32>
      %cst_114 = arith.constant dense<0.000000e+00> : vector<128xf32>
      %380 = vector.multi_reduction <add>, %379, %cst_114 [0] : vector<4x128xf32> to vector<128xf32>
      %381 = vector.shape_cast %380 : vector<128xf32> to vector<1x128xf32>
      %cst_115 = arith.constant 1.000000e+00 : f32
      %382 = vector.broadcast %cst_115 : f32 to vector<1x128xf32>
      %383 = arith.mulf %381, %382 : vector<1x128xf32>
      %cst_116 = arith.constant 9.99999974E-5 : f32
      %384 = vector.broadcast %cst_116 : f32 to vector<1x128xf32>
      %385 = arith.addf %349, %384 : vector<1x128xf32>
      %386 = math.sqrt %385 : vector<1x128xf32>
      %cst_117 = arith.constant 1.000000e+00 : f32
      %387 = vector.broadcast %cst_117 : f32 to vector<1x128xf32>
      %388 = arith.subf %387, %386 : vector<1x128xf32>
      %cst_118 = arith.constant 0.000000e+00 : f32
      %389 = vector.broadcast %cst_118 : f32 to vector<1x128xf32>
      %390 = arith.maximumf %388, %389 : vector<1x128xf32>
      %391 = vector.shape_cast %390 : vector<1x128xf32> to vector<1x1x128xf32>
      %cst_119 = arith.constant dense<0.000000e+00> : vector<1xf32>
      %392 = vector.multi_reduction <add>, %391, %cst_119 [1, 2] : vector<1x1x128xf32> to vector<1xf32>
      %393 = vector.shape_cast %392 : vector<1xf32> to vector<1x1x1xf32>
      %394 = vector.extract %393[0, 0, 0] : f32 from vector<1x1x1xf32>
      %cst_120 = arith.constant 1.280000e+02 : f32
      %395 = arith.divf %394, %cst_120 : f32
      %cst_121 = arith.constant 0.000000e+00 : f32
      %396 = arith.addf %cst_121, %395 : f32
      %cst_122 = arith.constant 9.99999974E-5 : f32
      %397 = vector.broadcast %cst_122 : f32 to vector<1x128xf32>
      %398 = arith.addf %355, %397 : vector<1x128xf32>
      %399 = math.sqrt %398 : vector<1x128xf32>
      %cst_123 = arith.constant 1.000000e+00 : f32
      %400 = vector.broadcast %cst_123 : f32 to vector<1x128xf32>
      %401 = arith.subf %400, %399 : vector<1x128xf32>
      %cst_124 = arith.constant 0.000000e+00 : f32
      %402 = vector.broadcast %cst_124 : f32 to vector<1x128xf32>
      %403 = arith.maximumf %401, %402 : vector<1x128xf32>
      %404 = vector.shape_cast %403 : vector<1x128xf32> to vector<1x1x128xf32>
      %cst_125 = arith.constant dense<0.000000e+00> : vector<1xf32>
      %405 = vector.multi_reduction <add>, %404, %cst_125 [1, 2] : vector<1x1x128xf32> to vector<1xf32>
      %406 = vector.shape_cast %405 : vector<1xf32> to vector<1x1x1xf32>
      %407 = vector.extract %406[0, 0, 0] : f32 from vector<1x1x1xf32>
      %cst_126 = arith.constant 1.280000e+02 : f32
      %408 = arith.divf %407, %cst_126 : f32
      %409 = arith.addf %396, %408 : f32
      %cst_127 = arith.constant 9.99999974E-5 : f32
      %410 = vector.broadcast %cst_127 : f32 to vector<1x128xf32>
      %411 = arith.addf %377, %410 : vector<1x128xf32>
      %412 = math.sqrt %411 : vector<1x128xf32>
      %cst_128 = arith.constant 1.000000e+00 : f32
      %413 = vector.broadcast %cst_128 : f32 to vector<1x128xf32>
      %414 = arith.subf %413, %412 : vector<1x128xf32>
      %cst_129 = arith.constant 0.000000e+00 : f32
      %415 = vector.broadcast %cst_129 : f32 to vector<1x128xf32>
      %416 = arith.maximumf %414, %415 : vector<1x128xf32>
      %417 = vector.shape_cast %416 : vector<1x128xf32> to vector<1x1x128xf32>
      %cst_130 = arith.constant dense<0.000000e+00> : vector<1xf32>
      %418 = vector.multi_reduction <add>, %417, %cst_130 [1, 2] : vector<1x1x128xf32> to vector<1xf32>
      %419 = vector.shape_cast %418 : vector<1xf32> to vector<1x1x1xf32>
      %420 = vector.extract %419[0, 0, 0] : f32 from vector<1x1x1xf32>
      %cst_131 = arith.constant 1.280000e+02 : f32
      %421 = arith.divf %420, %cst_131 : f32
      %422 = arith.addf %409, %421 : f32
      %cst_132 = arith.constant 9.99999974E-5 : f32
      %423 = vector.broadcast %cst_132 : f32 to vector<1x128xf32>
      %424 = arith.addf %383, %423 : vector<1x128xf32>
      %425 = math.sqrt %424 : vector<1x128xf32>
      %cst_133 = arith.constant 1.000000e+00 : f32
      %426 = vector.broadcast %cst_133 : f32 to vector<1x128xf32>
      %427 = arith.subf %426, %425 : vector<1x128xf32>
      %cst_134 = arith.constant 0.000000e+00 : f32
      %428 = vector.broadcast %cst_134 : f32 to vector<1x128xf32>
      %429 = arith.maximumf %427, %428 : vector<1x128xf32>
      %430 = vector.shape_cast %429 : vector<1x128xf32> to vector<1x1x128xf32>
      %cst_135 = arith.constant dense<0.000000e+00> : vector<1xf32>
      %431 = vector.multi_reduction <add>, %430, %cst_135 [1, 2] : vector<1x1x128xf32> to vector<1xf32>
      %432 = vector.shape_cast %431 : vector<1xf32> to vector<1x1x1xf32>
      %433 = vector.extract %432[0, 0, 0] : f32 from vector<1x1x1xf32>
      %cst_136 = arith.constant 1.280000e+02 : f32
      %434 = arith.divf %433, %cst_136 : f32
      %435 = arith.addf %422, %434 : f32
      %cst_137 = arith.constant 5.000000e-01 : f32
      %436 = arith.mulf %cst_137, %435 : f32
      %437 = arith.mulf %343, %28 : vector<4x128xf32>
      %cst_138 = arith.constant dense<0.000000e+00> : vector<128x128xf32>
      %438 = tpu.matmul %437, %437, %cst_138 {dimension_numbers = #tpu.dot_dimension_numbers<[0], [0], [1], [1], [0, 1, 1, 1], [], []>} : vector<4x128xf32>, vector<4x128xf32>, vector<128x128xf32> -> vector<128x128xf32>
      %cst_139 = arith.constant 1.000000e+00 : f32
      %439 = vector.broadcast %cst_139 : f32 to vector<128x128xf32>
      %440 = arith.mulf %438, %439 : vector<128x128xf32>
      %441 = arith.mulf %440, %440 : vector<128x128xf32>
      %442 = vector.shape_cast %441 : vector<128x128xf32> to vector<1x128x128xf32>
      %cst_140 = arith.constant dense<0.000000e+00> : vector<1xf32>
      %443 = vector.multi_reduction <add>, %442, %cst_140 [1, 2] : vector<1x128x128xf32> to vector<1xf32>
      %444 = vector.shape_cast %443 : vector<1xf32> to vector<1x1x1xf32>
      %445 = vector.extract %444[0, 0, 0] : f32 from vector<1x1x1xf32>
      %446 = arith.mulf %349, %349 : vector<1x128xf32>
      %447 = vector.shape_cast %446 : vector<1x128xf32> to vector<1x1x128xf32>
      %cst_141 = arith.constant dense<0.000000e+00> : vector<1xf32>
      %448 = vector.multi_reduction <add>, %447, %cst_141 [1, 2] : vector<1x1x128xf32> to vector<1xf32>
      %449 = vector.shape_cast %448 : vector<1xf32> to vector<1x1x1xf32>
      %450 = vector.extract %449[0, 0, 0] : f32 from vector<1x1x1xf32>
      %451 = arith.subf %445, %450 : f32
      %cst_142 = arith.constant 0.000000e+00 : f32
      %452 = arith.addf %cst_142, %451 : f32
      %453 = arith.mulf %343, %30 : vector<4x128xf32>
      %cst_143 = arith.constant dense<0.000000e+00> : vector<128x128xf32>
      %454 = tpu.matmul %453, %453, %cst_143 {dimension_numbers = #tpu.dot_dimension_numbers<[0], [0], [1], [1], [0, 1, 1, 1], [], []>} : vector<4x128xf32>, vector<4x128xf32>, vector<128x128xf32> -> vector<128x128xf32>
      %cst_144 = arith.constant 1.000000e+00 : f32
      %455 = vector.broadcast %cst_144 : f32 to vector<128x128xf32>
      %456 = arith.mulf %454, %455 : vector<128x128xf32>
      %457 = arith.mulf %456, %456 : vector<128x128xf32>
      %458 = vector.shape_cast %457 : vector<128x128xf32> to vector<1x128x128xf32>
      %cst_145 = arith.constant dense<0.000000e+00> : vector<1xf32>
      %459 = vector.multi_reduction <add>, %458, %cst_145 [1, 2] : vector<1x128x128xf32> to vector<1xf32>
      %460 = vector.shape_cast %459 : vector<1xf32> to vector<1x1x1xf32>
      %461 = vector.extract %460[0, 0, 0] : f32 from vector<1x1x1xf32>
      %462 = arith.mulf %355, %355 : vector<1x128xf32>
      %463 = vector.shape_cast %462 : vector<1x128xf32> to vector<1x1x128xf32>
      %cst_146 = arith.constant dense<0.000000e+00> : vector<1xf32>
      %464 = vector.multi_reduction <add>, %463, %cst_146 [1, 2] : vector<1x1x128xf32> to vector<1xf32>
      %465 = vector.shape_cast %464 : vector<1xf32> to vector<1x1x1xf32>
      %466 = vector.extract %465[0, 0, 0] : f32 from vector<1x1x1xf32>
      %467 = arith.subf %461, %466 : f32
      %468 = arith.addf %452, %467 : f32
      %469 = arith.mulf %371, %28 : vector<4x128xf32>
      %cst_147 = arith.constant dense<0.000000e+00> : vector<128x128xf32>
      %470 = tpu.matmul %469, %469, %cst_147 {dimension_numbers = #tpu.dot_dimension_numbers<[0], [0], [1], [1], [0, 1, 1, 1], [], []>} : vector<4x128xf32>, vector<4x128xf32>, vector<128x128xf32> -> vector<128x128xf32>
      %cst_148 = arith.constant 1.000000e+00 : f32
      %471 = vector.broadcast %cst_148 : f32 to vector<128x128xf32>
      %472 = arith.mulf %470, %471 : vector<128x128xf32>
      %473 = arith.mulf %472, %472 : vector<128x128xf32>
      %474 = vector.shape_cast %473 : vector<128x128xf32> to vector<1x128x128xf32>
      %cst_149 = arith.constant dense<0.000000e+00> : vector<1xf32>
      %475 = vector.multi_reduction <add>, %474, %cst_149 [1, 2] : vector<1x128x128xf32> to vector<1xf32>
      %476 = vector.shape_cast %475 : vector<1xf32> to vector<1x1x1xf32>
      %477 = vector.extract %476[0, 0, 0] : f32 from vector<1x1x1xf32>
      %478 = arith.mulf %377, %377 : vector<1x128xf32>
      %479 = vector.shape_cast %478 : vector<1x128xf32> to vector<1x1x128xf32>
      %cst_150 = arith.constant dense<0.000000e+00> : vector<1xf32>
      %480 = vector.multi_reduction <add>, %479, %cst_150 [1, 2] : vector<1x1x128xf32> to vector<1xf32>
      %481 = vector.shape_cast %480 : vector<1xf32> to vector<1x1x1xf32>
      %482 = vector.extract %481[0, 0, 0] : f32 from vector<1x1x1xf32>
      %483 = arith.subf %477, %482 : f32
      %484 = arith.addf %468, %483 : f32
      %485 = arith.mulf %371, %30 : vector<4x128xf32>
      %cst_151 = arith.constant dense<0.000000e+00> : vector<128x128xf32>
      %486 = tpu.matmul %485, %485, %cst_151 {dimension_numbers = #tpu.dot_dimension_numbers<[0], [0], [1], [1], [0, 1, 1, 1], [], []>} : vector<4x128xf32>, vector<4x128xf32>, vector<128x128xf32> -> vector<128x128xf32>
      %cst_152 = arith.constant 1.000000e+00 : f32
      %487 = vector.broadcast %cst_152 : f32 to vector<128x128xf32>
      %488 = arith.mulf %486, %487 : vector<128x128xf32>
      %489 = arith.mulf %488, %488 : vector<128x128xf32>
      %490 = vector.shape_cast %489 : vector<128x128xf32> to vector<1x128x128xf32>
      %cst_153 = arith.constant dense<0.000000e+00> : vector<1xf32>
      %491 = vector.multi_reduction <add>, %490, %cst_153 [1, 2] : vector<1x128x128xf32> to vector<1xf32>
      %492 = vector.shape_cast %491 : vector<1xf32> to vector<1x1x1xf32>
      %493 = vector.extract %492[0, 0, 0] : f32 from vector<1x1x1xf32>
      %494 = arith.mulf %383, %383 : vector<1x128xf32>
      %495 = vector.shape_cast %494 : vector<1x128xf32> to vector<1x1x128xf32>
      %cst_154 = arith.constant dense<0.000000e+00> : vector<1xf32>
      %496 = vector.multi_reduction <add>, %495, %cst_154 [1, 2] : vector<1x1x128xf32> to vector<1xf32>
      %497 = vector.shape_cast %496 : vector<1xf32> to vector<1x1x1xf32>
      %498 = vector.extract %497[0, 0, 0] : f32 from vector<1x1x1xf32>
      %499 = arith.subf %493, %498 : f32
      %500 = arith.addf %484, %499 : f32
      %cst_155 = arith.constant 7.812500e-03 : f32
      %501 = arith.mulf %500, %cst_155 : f32
      %cst_156 = arith.constant 1.000000e+00 : f32
      %502 = arith.mulf %cst_156, %327 : f32
      %cst_157 = arith.constant 1.000000e+00 : f32
      %503 = arith.mulf %cst_157, %436 : f32
      %504 = arith.addf %502, %503 : f32
      %cst_158 = arith.constant 1.000000e-01 : f32
      %505 = arith.mulf %cst_158, %501 : f32
      %506 = arith.addf %504, %505 : f32
      %c0_159 = arith.constant 0 : index
      %c0_160 = arith.constant 0 : index
      %507 = memref.load %arg14[%c0_159, %c0_160] : memref<1x1xf32, #tpu.memory_space<smem>>
      memref.store %506, %arg14[%c0_159, %c0_160] : memref<1x1xf32, #tpu.memory_space<smem>>
    } else {
    }
    return
  }
  func.func @transform_0(%arg0: i32) -> (i32, i32) {
    %c0_i32 = arith.constant 0 : i32
    %c0_i32_0 = arith.constant 0 : i32
    return %c0_i32, %arg0 : i32, i32
  }
  func.func @transform_1(%arg0: i32) -> (i32, i32) {
    %c0_i32 = arith.constant 0 : i32
    %c0_i32_0 = arith.constant 0 : i32
    return %arg0, %c0_i32 : i32, i32
  }
  func.func @transform_2(%arg0: i32) -> (i32, i32) {
    %c0_i32 = arith.constant 0 : i32
    %c0_i32_0 = arith.constant 0 : i32
    %c0_i32_1 = arith.constant 0 : i32
    return %c0_i32, %c0_i32_0 : i32, i32
  }
  func.func @transform_3(%arg0: i32) -> (i32, i32) {
    %c0_i32 = arith.constant 0 : i32
    %c0_i32_0 = arith.constant 0 : i32
    %c0_i32_1 = arith.constant 0 : i32
    return %c0_i32, %c0_i32_0 : i32, i32
  }
  func.func @transform_4(%arg0: i32) -> (i32, i32) {
    %c0_i32 = arith.constant 0 : i32
    %c0_i32_0 = arith.constant 0 : i32
    %c0_i32_1 = arith.constant 0 : i32
    return %c0_i32, %c0_i32_0 : i32, i32
  }
  func.func @transform_5(%arg0: i32) -> (i32, i32) {
    %c0_i32 = arith.constant 0 : i32
    %c0_i32_0 = arith.constant 0 : i32
    %c0_i32_1 = arith.constant 0 : i32
    return %c0_i32, %c0_i32_0 : i32, i32
  }
  func.func @transform_6(%arg0: i32) -> (i32, i32) {
    %c0_i32 = arith.constant 0 : i32
    %c0_i32_0 = arith.constant 0 : i32
    %c0_i32_1 = arith.constant 0 : i32
    return %c0_i32, %c0_i32_0 : i32, i32
  }
  func.func @transform_7(%arg0: i32) -> (i32, i32) {
    %c0_i32 = arith.constant 0 : i32
    %c0_i32_0 = arith.constant 0 : i32
    %c0_i32_1 = arith.constant 0 : i32
    return %c0_i32, %c0_i32_0 : i32, i32
  }
  func.func @transform_8(%arg0: i32) -> (i32, i32) {
    %c0_i32 = arith.constant 0 : i32
    %c0_i32_0 = arith.constant 0 : i32
    %c0_i32_1 = arith.constant 0 : i32
    return %c0_i32, %c0_i32_0 : i32, i32
  }
  func.func @transform_9(%arg0: i32) -> (i32, i32) {
    %c0_i32 = arith.constant 0 : i32
    %c0_i32_0 = arith.constant 0 : i32
    %c0_i32_1 = arith.constant 0 : i32
    return %c0_i32, %c0_i32_0 : i32, i32
  }
  func.func @transform_10(%arg0: i32) -> (i32, i32) {
    %c0_i32 = arith.constant 0 : i32
    %c0_i32_0 = arith.constant 0 : i32
    %c0_i32_1 = arith.constant 0 : i32
    return %c0_i32, %c0_i32_0 : i32, i32
  }
  func.func @transform_11(%arg0: i32) -> (i32, i32) {
    %c0_i32 = arith.constant 0 : i32
    %c0_i32_0 = arith.constant 0 : i32
    %c0_i32_1 = arith.constant 0 : i32
    return %c0_i32, %c0_i32_0 : i32, i32
  }
  func.func @transform_12(%arg0: i32) -> (i32, i32) {
    %c0_i32 = arith.constant 0 : i32
    %c0_i32_0 = arith.constant 0 : i32
    %c0_i32_1 = arith.constant 0 : i32
    return %c0_i32, %c0_i32_0 : i32, i32
  }
  func.func @transform_13(%arg0: i32) -> (i32, i32) {
    %c0_i32 = arith.constant 0 : i32
    %c0_i32_0 = arith.constant 0 : i32
    %c0_i32_1 = arith.constant 0 : i32
    return %c0_i32, %c0_i32_0 : i32, i32
  }
}

</mosaic_0001>

<bundles_post_ra>
// kernel: byol_ode_forward.1
= control target key start
LH: loop header
LB: loop body
LE: loop exit
PB: predicated region body
PF: predicated region fallthrough
CT: control target
= control target key end

     0   :  { %s9513_s0 = inlined_call_operand.vmem [shape: bf16[4,6144], index: 0, kind: input, shape index: {}]   ;;  %s9514_s1 = inlined_call_operand.vmem [shape: bf16[6144,128], index: 1, kind: input, shape index: {}]   ;;  %s9515_s2 = inlined_call_operand.vmem [shape: f32[1,128], index: 2, kind: input, shape index: {}]   ;;  %s9516_s3 = inlined_call_operand.vmem [shape: bf16[128,128], index: 3, kind: input, shape index: {}]   ;;  %s9517_s4 = inlined_call_operand.vmem [shape: f32[1,128], index: 4, kind: input, shape index: {}]   ;;  %s9518_s5 = inlined_call_operand.vmem [shape: f32[1,128], index: 5, kind: input, shape index: {}]   ;;  %s9519_s6 = inlined_call_operand.vmem [shape: f32[1,128], index: 6, kind: input, shape index: {}]   ;;  %s9520_s7 = inlined_call_operand.vmem [shape: bf16[128,128], index: 7, kind: input, shape index: {}]   ;;  %s9521_s8 = inlined_call_operand.vmem [shape: f32[1,128], index: 8, kind: input, shape index: {}]   ;;  %s9522_s9 = inlined_call_operand.vmem [shape: bf16[128,128], index: 9, kind: input, shape index: {}]   ;;  %s9523_s10 = inlined_call_operand.vmem [shape: f32[1,128], index: 10, kind: input, shape index: {}]   ;;  %s9524_s11 = inlined_call_operand.vmem [shape: bf16[128,128], index: 11, kind: input, shape index: {}]   ;;  %s9525_s12 = inlined_call_operand.vmem [shape: f32[1,128], index: 12, kind: input, shape index: {}]   ;;  %s9526_s13 = inlined_call_operand.hbm [shape: f32[1,1], index: 13, kind: output, shape index: {}]  }
   0x1   :  { %9527 = sst [smem:[#allocation6_spill]] %s9513_s0 }
   0x2   :  { %9528 = sst [smem:[#allocation7_spill]] %s9514_s1 }
   0x3   :  { %9529 = sst [smem:[#allocation8_spill]] %s9515_s2 }
   0x4   :  { %9530 = sst [smem:[#allocation9_spill]] %s9516_s3 }
   0x5   :  { %9531 = sst [smem:[#allocation10_spill]] %s9517_s4 }
   0x6   :  { %9532 = sst [smem:[#allocation11_spill]] %s9518_s5 }
   0x7   :  { %9533 = sst [smem:[#allocation12_spill]] %s9519_s6 }
   0x8   :  { %9534 = sst [smem:[#allocation13_spill]] %s9520_s7 }
   0x9   :  { %9535 = sst [smem:[#allocation14_spill]] %s9521_s8 }
   0xa   :  { %9536 = sst [smem:[#allocation15_spill]] %s9522_s9 }
   0xb   :  { %9537 = sst [smem:[#allocation16_spill]] %s9523_s10 }
   0xc   :  { %9538 = sst [smem:[#allocation17_spill]] %s9524_s11 }
   0xd   :  { %9539 = sst [smem:[#allocation18_spill]] %s9525_s12 }
   0xe   :  { %18 = vsyncpa [#allocation4], 0  ;;  %s8101_s25 = smov 0  }
   0xf LB: > { %s8107_s26 = sadd.s32 4294967295, %s8023_s25   ;;  %p5926_p0 = scmp.ge.s32.totalorder %s8023_s25, 1  ;;  %s8023_s25 = sphi %s8101_s25, %s24_s25  }
  0x10   : > { %p395_p1 = scmp.lt.s32.totalorder %s8023_s25, 3 }
  0x12   : > { %p396_p2 = pnand %p5926_p0, %p395_p1 }
  0x13   : > { %s439_s27 = smul.u32 (!%p396_p2), 24, %s8107_s26  ;;  %s9540_s0 = sld [smem:[#allocation6_spill]] (!%p396_p2) }
  0x14   : > { %399 = sbr.rel (%p396_p2) target bundleno = 8253 (0x203d), region = 72  ;;  %s9541_s1 = sld [smem:[#allocation7_spill]] (!%p396_p2) }
  0x15   : > { %s445_s28 = smul.u32 (!%p396_p2), 384, %s8107_s26  ;;  %p440_p3 = scmp.lt.s32.totalorder (!%p396_p2), %s439_s27, 47 }
  0x16   : > { %p5929_p5 = scmp.ne.s32.totalorder (!%p396_p2), %s8107_s26, 0 }
  0x17   : > { %p446_p4 = scmp.lt.s32.totalorder (!%p396_p2), %s445_s28, 767 }
  0x19   : > { %s9554_s27 = smov (!%p440_p3, %s439_s27), 47  ;;  %s9556_s28 = smov (!%p446_p4, %s445_s28), 767 }
  0x1a   : > { %s5927_s29 = sshll.u32 %s9554_s27, 1  ;;  %s5928_s16 = sshll.u32 %s9556_s28, 2 }
  0x1b   : > { %s8116_s15 = scalar_lea.vmem %s9540_s0, %s5927_s29  ;;  %s8121_s19 = scalar_lea.vmem %s9541_s1, %s5928_s16 }
  0x1c   : > { %455 = sbr.rel (%p5929_p5) target bundleno = 35 (0x23), region = 76 }
  0x21   : > { %v8025_v0 = vmov 0.0  }
  0x22   : > { %456 = vst [vmem:[#allocation2] sm:$0xf] %v8025_v0 }
  0x23 PF: > { %v7713_v1 = vld [vmem:[%s8121_s19 + $0x78] sm:$0xff]   ;;  %v7717_v5 = vld [vmem:[%s8121_s19 + $0x70] sm:$0xff]   ;;  %v7721_v9 = vld [vmem:[%s8121_s19 + $0x68] sm:$0xff]   ;;  %v858_v29 = vlaneseq  ;;  %v8026_v37 = vmov 1983009808   ;;  %p6122_p6 = scmp.ne.s32.totalorder %s8107_s26, 1 }
  0x24   : > { %v7714_v2 = vld [vmem:[%s8121_s19 + $0xf8] sm:$0xff]   ;;  %6238 = vmatprep.subr.bf16.mxu0 %v7713_v1  ;;  %v7718_v6 = vld [vmem:[%s8121_s19 + $0xf0] sm:$0xff]   ;;  %v7722_v10 = vld [vmem:[%s8121_s19 + $0xe8] sm:$0xff]   ;;  %v856_v38 = vunpack.c.l.s4 %v8026_v37  ;;  %s9542_s3 = sld [smem:[#allocation9_spill]] (!%p6122_p6) }
  0x25   : > { %v7715_v3 = vld [vmem:[%s8121_s19 + $0x38] sm:$0xff]   ;;  %6260 = vmatprep.subr.bf16.mxu1 %v7714_v2  ;;  %v7719_v7 = vld [vmem:[%s8121_s19 + $0x30] sm:$0xff]   ;;  %v7723_v11 = vld [vmem:[%s8121_s19 + $0x28] sm:$0xff]   ;;  %v8157_v34 = vshrl.u32 %v858_v29, 7  ;;  %s9543_s2 = sld [smem:[#allocation8_spill]] (!%p6122_p6) }
  0x26   : > { %v7716_v4 = vld [vmem:[%s8121_s19 + $0xb8] sm:$0xff]   ;;  %6239 = vmatpush3.bf16.msra.mxu0 %v7715_v3  ;;  %v7720_v8 = vld [vmem:[%s8121_s19 + $0xb0] sm:$0xff]   ;;  %v7724_v12 = vld [vmem:[%s8121_s19 + $0xa8] sm:$0xff]   ;;  %v857_v40 = vunpack.c.0.s8 %v856_v38  ;;  %s9544_s7 = sld [smem:[#allocation13_spill]] (!%p6122_p6) }
  0x27   : > { %6261 = vmatpush3.bf16.msra.mxu1 %v7716_v4  ;;  %6240 = vmatprep.subr.bf16.mxu0 %v7717_v5  ;;  %v7725_v13 = vld [vmem:[%s8121_s19 + $0x60] sm:$0xff]   ;;  %v7729_v17 = vld [vmem:[%s8121_s19 + $0x58] sm:$0xff]   ;;  %v7733_v21 = vld [vmem:[%s8121_s19 + $0x50] sm:$0xff]   ;;  %s9545_s9 = sld [smem:[#allocation15_spill]] (!%p6122_p6) }
  0x28   : > { %6262 = vmatprep.subr.bf16.mxu1 %v7718_v6  ;;  %v7726_v14 = vld [vmem:[%s8121_s19 + $0xe0] sm:$0xff]   ;;  %v7730_v18 = vld [vmem:[%s8121_s19 + $0xd8] sm:$0xff]   ;;  %v7734_v22 = vld [vmem:[%s8121_s19 + $0xd0] sm:$0xff]   ;;  %v8163_v42 = vsub.s32 %v857_v40, %v8157_v34  ;;  %s9546_s4 = sld [smem:[#allocation10_spill]] (!%p6122_p6) }
  0x29   : > { %v7727_v15 = vld [vmem:[%s8121_s19 + $0x20] sm:$0xff]   ;;  %v7731_v19 = vld [vmem:[%s8121_s19 + $0x18] sm:$0xff]   ;;  %v7735_v23 = vld [vmem:[%s8121_s19 + $0x10] sm:$0xff]   ;;  %s9547_s5 = sld [smem:[#allocation11_spill]] (!%p6122_p6) }
  0x2a   : > { %6241 = vmatpush3.bf16.msra.mxu0 %v7719_v7  ;;  %v7728_v16 = vld [vmem:[%s8121_s19 + $0xa0] sm:$0xff]   ;;  %v7732_v20 = vld [vmem:[%s8121_s19 + $0x98] sm:$0xff]   ;;  %v7736_v24 = vld [vmem:[%s8121_s19 + $0x90] sm:$0xff]   ;;  %s9548_s6 = sld [smem:[#allocation12_spill]] (!%p6122_p6) }
  0x2b   : > { %6263 = vmatpush3.bf16.msra.mxu1 %v7720_v8  ;;  %6242 = vmatprep.subr.bf16.mxu0 %v7721_v9  ;;  %v7737_v25 = vld [vmem:[%s8121_s19 + $0x48] sm:$0xff]   ;;  %v7741_v30 = vld [vmem:[%s8121_s19 + $0x40] sm:$0xff]   ;;  %v7746_v36 = vld [vmem:[%s8121_s19 + $0x178] sm:$0xff]   ;;  %s9549_s11 = sld [smem:[#allocation17_spill]] (!%p6122_p6) }
  0x2c   : > { %6264 = vmatprep.subr.bf16.mxu1 %v7722_v10  ;;  %v7738_v26 = vld [vmem:[%s8121_s19 + $0xc8] sm:$0xff]   ;;  %v7742_v31 = vld [vmem:[%s8121_s19 + $0xc0] sm:$0xff]   ;;  %v7747_v39 = vld [vmem:[%s8121_s19 + $0x1f8] sm:$0xff]   ;;  %s9550_s8 = sld [smem:[#allocation14_spill]] (!%p6122_p6) }
  0x2d   : > { %v7739_v27 = vld [vmem:[%s8121_s19 + $0x8] sm:$0xff]   ;;  %v7743_v32 = vld [vmem:[%s8121_s19] sm:$0xff]   ;;  %v7748_v45 = vld [vmem:[%s8121_s19 + $0x138] sm:$0xff]   ;;  %s9551_s10 = sld [smem:[#allocation16_spill]] (!%p6122_p6) }
  0x2e   : > { %6243 = vmatpush3.bf16.msra.mxu0 %v7723_v11  ;;  %v7740_v28 = vld [vmem:[%s8121_s19 + $0x88] sm:$0xff]   ;;  %v7744_v33 = vld [vmem:[%s8121_s19 + $0x80] sm:$0xff]   ;;  %v7749_v46 = vld [vmem:[%s8121_s19 + $0x1b8] sm:$0xff]   ;;  %s9552_s12 = sld [smem:[#allocation18_spill]] (!%p6122_p6) }
  0x2f   : > { %6265 = vmatpush3.bf16.msra.mxu1 %v7724_v12  ;;  %6244 = vmatprep.subr.bf16.mxu0 %v7725_v13  ;;  %v458_v35 = vld [vmem:[%s8116_s15] sm:$0xff]  ;;  %v7750_v49 = vld [vmem:[%s8121_s19 + $0x170] sm:$0xff]   ;;  %v7754_v53 = vld [vmem:[%s8121_s19 + $0x168] sm:$0xff]  }
  0x30   : > { %6266 = vmatprep.subr.bf16.mxu1 %v7726_v14  ;;  %v854_v41 = vcombine.high %v458_v35, %v458_v35  ;;  %v861_v43 = vrot.slane %v458_v35, %v8163_v42  ;;  %v7751_v50 = vld [vmem:[%s8121_s19 + $0x1f0] sm:$0xff]   ;;  %v7755_v54 = vld [vmem:[%s8121_s19 + $0x1e8] sm:$0xff]   ;;  %v7758_v57 = vld [vmem:[%s8121_s19 + $0x160] sm:$0xff]  }
  0x31   : > { %v7752_v51 = vld [vmem:[%s8121_s19 + $0x130] sm:$0xff]   ;;  %v7756_v55 = vld [vmem:[%s8121_s19 + $0x128] sm:$0xff]   ;;  %v7759_v58 = vld [vmem:[%s8121_s19 + $0x1e0] sm:$0xff]  }
  0x32   : > { %6245 = vmatpush3.bf16.msra.mxu0 %v7727_v15  ;;  %v868_v44 = vrot.slane %v854_v41, %v8163_v42  ;;  %v869_v47 = vcombine.high %v861_v43, %v861_v43  ;;  %v7753_v52 = vld [vmem:[%s8121_s19 + $0x1b0] sm:$0xff]   ;;  %v7757_v56 = vld [vmem:[%s8121_s19 + $0x1a8] sm:$0xff]   ;;  %v7760_v59 = vld [vmem:[%s8121_s19 + $0x120] sm:$0xff]  }
  0x33   : > { %6267 = vmatpush3.bf16.msra.mxu1 %v7728_v16  ;;  %6246 = vmatprep.subr.bf16.mxu0 %v7729_v17  ;;  %v7761_v60 = vld [vmem:[%s8121_s19 + $0x1a0] sm:$0xff]   ;;  %v7762_v61 = vld [vmem:[%s8121_s19 + $0x158] sm:$0xff]   ;;  %v7766_v1 = vld [vmem:[%s8121_s19 + $0x150] sm:$0xff]  }
  0x34   : > { %6268 = vmatprep.subr.bf16.mxu1 %v7730_v18  ;;  %v870_v48 = vcombine.high %v868_v44, %v868_v44  ;;  %2164 = vmatprep.mubr.bf16.mxu0 %v869_v47  ;;  %v7763_v62 = vld [vmem:[%s8121_s19 + $0x1d8] sm:$0xff]   ;;  %v7767_v2 = vld [vmem:[%s8121_s19 + $0x1d0] sm:$0xff]   ;;  %v7770_v5 = vld [vmem:[%s8121_s19 + $0x148] sm:$0xff]  }
  0x35   : > { %v7764_v63 = vld [vmem:[%s8121_s19 + $0x118] sm:$0xff]   ;;  %v7768_v3 = vld [vmem:[%s8121_s19 + $0x110] sm:$0xff]   ;;  %v7771_v6 = vld [vmem:[%s8121_s19 + $0x1c8] sm:$0xff]  }
  0x36   : > { %6247 = vmatpush3.bf16.msra.mxu0 %v7731_v19  ;;  %2204 = vmatprep.mubr.bf16.mxu1 %v870_v48  ;;  %v7765_v0 = vld [vmem:[%s8121_s19 + $0x198] sm:$0xff]   ;;  %v7769_v4 = vld [vmem:[%s8121_s19 + $0x190] sm:$0xff]   ;;  %v7772_v7 = vld [vmem:[%s8121_s19 + $0x108] sm:$0xff]  }
  0x37   : > { %6269 = vmatpush3.bf16.msra.mxu1 %v7732_v20  ;;  %6248 = vmatprep.subr.bf16.mxu0 %v7733_v21  ;;  %v7773_v8 = vld [vmem:[%s8121_s19 + $0x188] sm:$0xff]   ;;  %v7774_v10 = vld [vmem:[%s8121_s19 + $0x140] sm:$0xff]   ;;  %v7779_v19 = vld [vmem:[%s8121_s19 + $0x278] sm:$0xff]  }
  0x38   : > { %6270 = vmatprep.subr.bf16.mxu1 %v7734_v22  ;;  %v459_v9 = vld [vmem:[%s8116_s15 + $0x8] sm:$0xff]  ;;  %v7775_v13 = vld [vmem:[%s8121_s19 + $0x1c0] sm:$0xff]   ;;  %v7780_v20 = vld [vmem:[%s8121_s19 + $0x2f8] sm:$0xff]  }
  0x39   : > { %v878_v11 = vrot.slane %v459_v9, %v8163_v42  ;;  %v871_v12 = vcombine.high %v459_v9, %v459_v9  ;;  %v7776_v14 = vld [vmem:[%s8121_s19 + $0x100] sm:$0xff]   ;;  %v7781_v21 = vld [vmem:[%s8121_s19 + $0x238] sm:$0xff]   ;;  %v7799_v41 = vld [vmem:[%s8121_s19 + $0x250] sm:$0xff]  }
  0x3a   : > { %6249 = vmatpush3.bf16.msra.mxu0 %v7735_v23  ;;  %v7777_v17 = vld [vmem:[%s8121_s19 + $0x180] sm:$0xff]   ;;  %v7782_v22 = vld [vmem:[%s8121_s19 + $0x2b8] sm:$0xff]   ;;  %v7783_v23 = vld [vmem:[%s8121_s19 + $0x270] sm:$0xff]  }
  0x3b   : > { %6271 = vmatpush3.bf16.msra.mxu1 %v7736_v24  ;;  %6250 = vmatprep.subr.bf16.mxu0 %v7737_v25  ;;  %v886_v15 = vcombine.high %v878_v11, %v878_v11  ;;  %v885_v16 = vrot.slane %v871_v12, %v8163_v42  ;;  %v7784_v24 = vld [vmem:[%s8121_s19 + $0x2f0] sm:$0xff]   ;;  %v7793_v35 = vld [vmem:[%s8121_s19 + $0x220] sm:$0xff]   ;;  %v7795_v37 = vld [vmem:[%s8121_s19 + $0x258] sm:$0xff]  }
  0x3c   : > { %6272 = vmatprep.subr.bf16.mxu1 %v7738_v26  ;;  %v7785_v25 = vld [vmem:[%s8121_s19 + $0x230] sm:$0xff]   ;;  %v7796_v38 = vld [vmem:[%s8121_s19 + $0x2d8] sm:$0xff]   ;;  %v7804_v47 = vld [vmem:[%s8121_s19 + $0x2c8] sm:$0xff]  }
  0x3d   : > { %v887_v18 = vcombine.high %v885_v16, %v885_v16  ;;  %v7786_v26 = vld [vmem:[%s8121_s19 + $0x2b0] sm:$0xff]   ;;  %v7798_v40 = vld [vmem:[%s8121_s19 + $0x298] sm:$0xff]   ;;  %v7805_v48 = vld [vmem:[%s8121_s19 + $0x208] sm:$0xff]  }
  0x3e   : > { %6251 = vmatpush3.bf16.msra.mxu0 %v7739_v27  ;;  %v7787_v27 = vld [vmem:[%s8121_s19 + $0x268] sm:$0xff]   ;;  %v7825_v9 = vld [vmem:[%s8121_s19 + $0x3e0] sm:$0xff]   ;;  %v7828_v12 = vld [vmem:[%s8121_s19 + $0x358] sm:$0xff]  }
  0x3f   : > { %6273 = vmatpush3.bf16.msra.mxu1 %v7740_v28  ;;  %6252 = vmatprep.subr.bf16.mxu0 %v7741_v30  ;;  %v7788_v28 = vld [vmem:[%s8121_s19 + $0x2e8] sm:$0xff]  }
  0x40   : > { %6274 = vmatprep.subr.bf16.mxu1 %v7742_v31  ;;  %v7789_v30 = vld [vmem:[%s8121_s19 + $0x228] sm:$0xff]  }
  0x41   : > { %v7790_v31 = vld [vmem:[%s8121_s19 + $0x2a8] sm:$0xff]  }
  0x42   : > { %6253 = vmatpush3.bf16.msra.mxu0 %v7743_v32  ;;  %v7791_v32 = vld [vmem:[%s8121_s19 + $0x260] sm:$0xff]  }
  0x43   : > { %6275 = vmatpush3.bf16.msra.mxu1 %v7744_v33  ;;  %6282 = vmatprep.subr.bf16.mxu0 %v7746_v36  ;;  %v7792_v33 = vld [vmem:[%s8121_s19 + $0x2e0] sm:$0xff]  }
  0x44   : > { %6304 = vmatprep.subr.bf16.mxu1 %v7747_v39  ;;  %v7794_v36 = vld [vmem:[%s8121_s19 + $0x2a0] sm:$0xff]   ;;  %v7797_v39 = vld [vmem:[%s8121_s19 + $0x218] sm:$0xff]  }
  0x45   : > { %2165 = vmatmul.mubr.bf16.vlgmr.msra.gmra.mxu0 %v861_v43  ;;  %v7800_v43 = vld [vmem:[%s8121_s19 + $0x2d0] sm:$0xff]  }
  0x46   : > { %2205 = vmatmul.mubr.bf16.vlgmr.msra.gmra.mxu1 %v868_v44  ;;  %6283 = vmatpush3.bf16.msra.mxu0 %v7748_v45  ;;  %v7801_v44 = vld [vmem:[%s8121_s19 + $0x210] sm:$0xff]  }
  0x47   : > { %6305 = vmatpush3.bf16.msra.mxu1 %v7749_v46  ;;  %6284 = vmatprep.subr.bf16.mxu0 %v7750_v49  ;;  %v7802_v45 = vld [vmem:[%s8121_s19 + $0x290] sm:$0xff]   ;;  %v7803_v46 = vld [vmem:[%s8121_s19 + $0x248] sm:$0xff]  }
  0x48   : > { %6306 = vmatprep.subr.bf16.mxu1 %v7751_v50  ;;  %2244 = vmatprep.mubr.bf16.mxu0 %v886_v15  ;;  %v7806_v49 = vld [vmem:[%s8121_s19 + $0x288] sm:$0xff]   ;;  %v460_v50 = vld [vmem:[%s8116_s15 + $0x10] sm:$0xff]  ;;  %v7831_v15 = vld [vmem:[%s8121_s19 + $0x398] sm:$0xff]  }
  0x49   : > { %2284 = vmatprep.mubr.bf16.mxu1 %v887_v18  ;;  %v7834_v18 = vld [vmem:[%s8121_s19 + $0x310] sm:$0xff]  }
  0x4a   : > { %6285 = vmatpush3.bf16.msra.mxu0 %v7752_v51  ;;  %v7807_v51 = vld [vmem:[%s8121_s19 + $0x240] sm:$0xff]  }
  0x4b   : > { %6307 = vmatpush3.bf16.msra.mxu1 %v7753_v52  ;;  %6286 = vmatprep.subr.bf16.mxu0 %v7754_v53  ;;  %v895_v52 = vrot.slane %v460_v50, %v8163_v42  ;;  %v888_v53 = vcombine.high %v460_v50, %v460_v50  ;;  %v7858_v50 = vld [vmem:[%s8121_s19 + $0x4e0] sm:$0xff]  }
  0x4c   : > { %6308 = vmatprep.subr.bf16.mxu1 %v7755_v54  ;;  %v7808_v54 = vld [vmem:[%s8121_s19 + $0x2c0] sm:$0xff]  }
  0x4e   : > { %6287 = vmatpush3.bf16.msra.mxu0 %v7756_v55  ;;  %v7809_v55 = vld [vmem:[%s8121_s19 + $0x200] sm:$0xff]  }
  0x4f   : > { %6309 = vmatpush3.bf16.msra.mxu1 %v7757_v56  ;;  %6288 = vmatprep.subr.bf16.mxu0 %v7758_v57  ;;  %v903_v56 = vcombine.high %v895_v52, %v895_v52  ;;  %v902_v57 = vrot.slane %v888_v53, %v8163_v42  ;;  %v7861_v53 = vld [vmem:[%s8121_s19 + $0x458] sm:$0xff]  }
  0x50   : > { %6310 = vmatprep.subr.bf16.mxu1 %v7759_v58  ;;  %v7810_v58 = vld [vmem:[%s8121_s19 + $0x280] sm:$0xff]  }
  0x52   : > { %6289 = vmatpush3.bf16.msra.mxu0 %v7760_v59  ;;  %v904_v59 = vcombine.high %v902_v57, %v902_v57 }
  0x53   : > { %6311 = vmatpush3.bf16.msra.mxu1 %v7761_v60  ;;  %6290 = vmatprep.subr.bf16.mxu0 %v7762_v61  ;;  %v7812_v60 = vld [vmem:[%s8121_s19 + $0x378] sm:$0xff]  }
  0x54   : > { %6312 = vmatprep.subr.bf16.mxu1 %v7763_v62  ;;  %v7813_v61 = vld [vmem:[%s8121_s19 + $0x3f8] sm:$0xff]  }
  0x55   : > { %v7814_v62 = vld [vmem:[%s8121_s19 + $0x338] sm:$0xff]  }
  0x56   : > { %6291 = vmatpush3.bf16.msra.mxu0 %v7764_v63  ;;  %v7815_v63 = vld [vmem:[%s8121_s19 + $0x3b8] sm:$0xff]  }
  0x57   : > { %6313 = vmatpush3.bf16.msra.mxu1 %v7765_v0  ;;  %6292 = vmatprep.subr.bf16.mxu0 %v7766_v1  ;;  %v7816_v0 = vld [vmem:[%s8121_s19 + $0x370] sm:$0xff]  }
  0x58   : > { %6314 = vmatprep.subr.bf16.mxu1 %v7767_v2  ;;  %v7817_v1 = vld [vmem:[%s8121_s19 + $0x3f0] sm:$0xff]  }
  0x59   : > { %v7818_v2 = vld [vmem:[%s8121_s19 + $0x330] sm:$0xff]  }
  0x5a   : > { %6293 = vmatpush3.bf16.msra.mxu0 %v7768_v3  ;;  %v7819_v3 = vld [vmem:[%s8121_s19 + $0x3b0] sm:$0xff]  }
  0x5b   : > { %6315 = vmatpush3.bf16.msra.mxu1 %v7769_v4  ;;  %6294 = vmatprep.subr.bf16.mxu0 %v7770_v5  ;;  %v7820_v4 = vld [vmem:[%s8121_s19 + $0x368] sm:$0xff]  }
  0x5c   : > { %6316 = vmatprep.subr.bf16.mxu1 %v7771_v6  ;;  %v7821_v5 = vld [vmem:[%s8121_s19 + $0x3e8] sm:$0xff]  }
  0x5d   : > { %v7822_v6 = vld [vmem:[%s8121_s19 + $0x328] sm:$0xff]  }
  0x5e   : > { %6295 = vmatpush3.bf16.msra.mxu0 %v7772_v7  ;;  %v7823_v7 = vld [vmem:[%s8121_s19 + $0x3a8] sm:$0xff]  }
  0x5f   : > { %6317 = vmatpush3.bf16.msra.mxu1 %v7773_v8  ;;  %6296 = vmatprep.subr.bf16.mxu0 %v7774_v10  ;;  %v7824_v8 = vld [vmem:[%s8121_s19 + $0x360] sm:$0xff]  }
  0x60   : > { %6318 = vmatprep.subr.bf16.mxu1 %v7775_v13  ;;  %v7826_v10 = vld [vmem:[%s8121_s19 + $0x320] sm:$0xff]   ;;  %v7829_v13 = vld [vmem:[%s8121_s19 + $0x3d8] sm:$0xff]  }
  0x62   : > { %6297 = vmatpush3.bf16.msra.mxu0 %v7776_v14  ;;  %v7830_v14 = vld [vmem:[%s8121_s19 + $0x318] sm:$0xff]  }
  0x63   : > { %6319 = vmatpush3.bf16.msra.mxu1 %v7777_v17  ;;  %6326 = vmatprep.subr.bf16.mxu0 %v7779_v19  ;;  %v7833_v17 = vld [vmem:[%s8121_s19 + $0x3d0] sm:$0xff]  }
  0x64   : > { %6348 = vmatprep.subr.bf16.mxu1 %v7780_v20  ;;  %v7835_v19 = vld [vmem:[%s8121_s19 + $0x390] sm:$0xff]   ;;  %v7836_v20 = vld [vmem:[%s8121_s19 + $0x348] sm:$0xff]  }
  0x65   : > { %2245 = vmatmul.mubr.bf16.vlgmr.msra.gmra.mxu0 %v878_v11  ;;  %v7827_v11 = vld [vmem:[%s8121_s19 + $0x3a0] sm:$0xff]  }
  0x66   : > { %2285 = vmatmul.mubr.bf16.vlgmr.msra.gmra.mxu1 %v885_v16  ;;  %6327 = vmatpush3.bf16.msra.mxu0 %v7781_v21  ;;  %v7832_v16 = vld [vmem:[%s8121_s19 + $0x350] sm:$0xff]   ;;  %v7837_v21 = vld [vmem:[%s8121_s19 + $0x3c8] sm:$0xff]  }
  0x67   : > { %6349 = vmatpush3.bf16.msra.mxu1 %v7782_v22  ;;  %6328 = vmatprep.subr.bf16.mxu0 %v7783_v23  ;;  %v7838_v22 = vld [vmem:[%s8121_s19 + $0x308] sm:$0xff]  }
  0x68   : > { %6350 = vmatprep.subr.bf16.mxu1 %v7784_v24  ;;  %2324 = vmatprep.mubr.bf16.mxu0 %v903_v56  ;;  %v7839_v23 = vld [vmem:[%s8121_s19 + $0x388] sm:$0xff]   ;;  %v7840_v24 = vld [vmem:[%s8121_s19 + $0x340] sm:$0xff]   ;;  %v7864_v56 = vld [vmem:[%s8121_s19 + $0x498] sm:$0xff]  }
  0x69   : > { %2364 = vmatprep.mubr.bf16.mxu1 %v904_v59  ;;  %v7867_v59 = vld [vmem:[%s8121_s19 + $0x410] sm:$0xff]  }
  0x6a   : > { %6329 = vmatpush3.bf16.msra.mxu0 %v7785_v25  ;;  %v461_v25 = vld [vmem:[%s8116_s15 + $0x18] sm:$0xff] }
  0x6b   : > { %6351 = vmatpush3.bf16.msra.mxu1 %v7786_v26  ;;  %6330 = vmatprep.subr.bf16.mxu0 %v7787_v27  ;;  %v7841_v26 = vld [vmem:[%s8121_s19 + $0x3c0] sm:$0xff]   ;;  %v912_v27 = vrot.slane %v461_v25, %v8163_v42 }
  0x6c   : > { %6352 = vmatprep.subr.bf16.mxu1 %v7788_v28  ;;  %v905_v28 = vcombine.high %v461_v25, %v461_v25  ;;  %v7892_v25 = vld [vmem:[%s8121_s19 + $0x520] sm:$0xff]  }
  0x6e   : > { %6331 = vmatpush3.bf16.msra.mxu0 %v7789_v30  ;;  %v7842_v30 = vld [vmem:[%s8121_s19 + $0x300] sm:$0xff]  }
  0x6f   : > { %6353 = vmatpush3.bf16.msra.mxu1 %v7790_v31  ;;  %6332 = vmatprep.subr.bf16.mxu0 %v7791_v32  ;;  %v7843_v31 = vld [vmem:[%s8121_s19 + $0x380] sm:$0xff]   ;;  %v920_v32 = vcombine.high %v912_v27, %v912_v27 }
  0x70   : > { %6354 = vmatprep.subr.bf16.mxu1 %v7792_v33  ;;  %v919_v33 = vrot.slane %v905_v28, %v8163_v42  ;;  %v7895_v28 = vld [vmem:[%s8121_s19 + $0x5d8] sm:$0xff]  }
  0x72   : > { %6333 = vmatpush3.bf16.msra.mxu0 %v7793_v35  ;;  %v7845_v35 = vld [vmem:[%s8121_s19 + $0x478] sm:$0xff]  }
  0x73   : > { %6355 = vmatpush3.bf16.msra.mxu1 %v7794_v36  ;;  %6334 = vmatprep.subr.bf16.mxu0 %v7795_v37  ;;  %v921_v36 = vcombine.high %v919_v33, %v919_v33  ;;  %v7846_v37 = vld [vmem:[%s8121_s19 + $0x4f8] sm:$0xff]  }
  0x74   : > { %6356 = vmatprep.subr.bf16.mxu1 %v7796_v38  ;;  %v7847_v38 = vld [vmem:[%s8121_s19 + $0x438] sm:$0xff]  }
  0x76   : > { %6335 = vmatpush3.bf16.msra.mxu0 %v7797_v39  ;;  %v7848_v39 = vld [vmem:[%s8121_s19 + $0x4b8] sm:$0xff]  }
  0x77   : > { %6357 = vmatpush3.bf16.msra.mxu1 %v7798_v40  ;;  %6336 = vmatprep.subr.bf16.mxu0 %v7799_v41  ;;  %v7849_v40 = vld [vmem:[%s8121_s19 + $0x470] sm:$0xff]  }
  0x78   : > { %6358 = vmatprep.subr.bf16.mxu1 %v7800_v43  ;;  %v7850_v41 = vld [vmem:[%s8121_s19 + $0x4f0] sm:$0xff]  }
  0x79   : > { %v7851_v43 = vld [vmem:[%s8121_s19 + $0x430] sm:$0xff]  }
  0x7a   : > { %6337 = vmatpush3.bf16.msra.mxu0 %v7801_v44  ;;  %v7852_v44 = vld [vmem:[%s8121_s19 + $0x4b0] sm:$0xff]  }
  0x7b   : > { %6359 = vmatpush3.bf16.msra.mxu1 %v7802_v45  ;;  %6338 = vmatprep.subr.bf16.mxu0 %v7803_v46  ;;  %v7853_v45 = vld [vmem:[%s8121_s19 + $0x468] sm:$0xff]  }
  0x7c   : > { %6360 = vmatprep.subr.bf16.mxu1 %v7804_v47  ;;  %v7854_v46 = vld [vmem:[%s8121_s19 + $0x4e8] sm:$0xff]  }
  0x7d   : > { %v7855_v47 = vld [vmem:[%s8121_s19 + $0x428] sm:$0xff]  }
  0x7e   : > { %6339 = vmatpush3.bf16.msra.mxu0 %v7805_v48  ;;  %v7856_v48 = vld [vmem:[%s8121_s19 + $0x4a8] sm:$0xff]  }
  0x7f   : > { %6361 = vmatpush3.bf16.msra.mxu1 %v7806_v49  ;;  %6340 = vmatprep.subr.bf16.mxu0 %v7807_v51  ;;  %v7857_v49 = vld [vmem:[%s8121_s19 + $0x460] sm:$0xff]  }
  0x80   : > { %6362 = vmatprep.subr.bf16.mxu1 %v7808_v54  ;;  %v7859_v51 = vld [vmem:[%s8121_s19 + $0x420] sm:$0xff]   ;;  %v7862_v54 = vld [vmem:[%s8121_s19 + $0x4d8] sm:$0xff]  }
  0x82   : > { %6341 = vmatpush3.bf16.msra.mxu0 %v7809_v55  ;;  %v7863_v55 = vld [vmem:[%s8121_s19 + $0x418] sm:$0xff]  }
  0x83   : > { %6363 = vmatpush3.bf16.msra.mxu1 %v7810_v58  ;;  %6370 = vmatprep.subr.bf16.mxu0 %v7812_v60  ;;  %v7866_v58 = vld [vmem:[%s8121_s19 + $0x4d0] sm:$0xff]  }
  0x84   : > { %6392 = vmatprep.subr.bf16.mxu1 %v7813_v61  ;;  %v7868_v60 = vld [vmem:[%s8121_s19 + $0x490] sm:$0xff]   ;;  %v7869_v61 = vld [vmem:[%s8121_s19 + $0x448] sm:$0xff]  }
  0x85   : > { %2325 = vmatmul.mubr.bf16.vlgmr.msra.gmra.mxu0 %v895_v52  ;;  %v7860_v52 = vld [vmem:[%s8121_s19 + $0x4a0] sm:$0xff]  }
  0x86   : > { %2365 = vmatmul.mubr.bf16.vlgmr.msra.gmra.mxu1 %v902_v57  ;;  %6371 = vmatpush3.bf16.msra.mxu0 %v7814_v62  ;;  %v7865_v57 = vld [vmem:[%s8121_s19 + $0x450] sm:$0xff]   ;;  %v7870_v62 = vld [vmem:[%s8121_s19 + $0x4c8] sm:$0xff]  }
  0x87   : > { %6393 = vmatpush3.bf16.msra.mxu1 %v7815_v63  ;;  %6372 = vmatprep.subr.bf16.mxu0 %v7816_v0  ;;  %v7871_v63 = vld [vmem:[%s8121_s19 + $0x408] sm:$0xff]  }
  0x88   : > { %6394 = vmatprep.subr.bf16.mxu1 %v7817_v1  ;;  %2404 = vmatprep.mubr.bf16.mxu0 %v920_v32  ;;  %v7872_v0 = vld [vmem:[%s8121_s19 + $0x488] sm:$0xff]   ;;  %v7873_v1 = vld [vmem:[%s8121_s19 + $0x440] sm:$0xff]   ;;  %v7898_v32 = vld [vmem:[%s8121_s19 + $0x550] sm:$0xff]  }
  0x89   : > { %2444 = vmatprep.mubr.bf16.mxu1 %v921_v36  ;;  %v7901_v36 = vld [vmem:[%s8121_s19 + $0x590] sm:$0xff]  }
  0x8a   : > { %6373 = vmatpush3.bf16.msra.mxu0 %v7818_v2  ;;  %v462_v2 = vld [vmem:[%s8116_s15 + $0x20] sm:$0xff] }
  0x8b   : > { %6395 = vmatpush3.bf16.msra.mxu1 %v7819_v3  ;;  %6374 = vmatprep.subr.bf16.mxu0 %v7820_v4  ;;  %v7874_v3 = vld [vmem:[%s8121_s19 + $0x4c0] sm:$0xff]   ;;  %v929_v4 = vrot.slane %v462_v2, %v8163_v42 }
  0x8c   : > { %6396 = vmatprep.subr.bf16.mxu1 %v7821_v5  ;;  %v922_v5 = vcombine.high %v462_v2, %v462_v2 }
  0x8e   : > { %6375 = vmatpush3.bf16.msra.mxu0 %v7822_v6  ;;  %v7875_v6 = vld [vmem:[%s8121_s19 + $0x400] sm:$0xff]  }
  0x8f   : > { %6397 = vmatpush3.bf16.msra.mxu1 %v7823_v7  ;;  %6376 = vmatprep.subr.bf16.mxu0 %v7824_v8  ;;  %v7876_v7 = vld [vmem:[%s8121_s19 + $0x480] sm:$0xff]   ;;  %v937_v8 = vcombine.high %v929_v4, %v929_v4 }
  0x90   : > { %6398 = vmatprep.subr.bf16.mxu1 %v7825_v9  ;;  %v936_v9 = vrot.slane %v922_v5, %v8163_v42 }
  0x92   : > { %6377 = vmatpush3.bf16.msra.mxu0 %v7826_v10  ;;  %v7878_v10 = vld [vmem:[%s8121_s19 + $0x578] sm:$0xff]  }
  0x93   : > { %6399 = vmatpush3.bf16.msra.mxu1 %v7827_v11  ;;  %6378 = vmatprep.subr.bf16.mxu0 %v7828_v12  ;;  %v938_v11 = vcombine.high %v936_v9, %v936_v9  ;;  %v7879_v12 = vld [vmem:[%s8121_s19 + $0x5f8] sm:$0xff]  }
  0x94   : > { %6400 = vmatprep.subr.bf16.mxu1 %v7829_v13  ;;  %v7880_v13 = vld [vmem:[%s8121_s19 + $0x538] sm:$0xff]  }
  0x96   : > { %6379 = vmatpush3.bf16.msra.mxu0 %v7830_v14  ;;  %v7881_v14 = vld [vmem:[%s8121_s19 + $0x5b8] sm:$0xff]  }
  0x97   : > { %6401 = vmatpush3.bf16.msra.mxu1 %v7831_v15  ;;  %6380 = vmatprep.subr.bf16.mxu0 %v7832_v16  ;;  %v7882_v15 = vld [vmem:[%s8121_s19 + $0x570] sm:$0xff]  }
  0x98   : > { %6402 = vmatprep.subr.bf16.mxu1 %v7833_v17  ;;  %v7883_v16 = vld [vmem:[%s8121_s19 + $0x5f0] sm:$0xff]  }
  0x99   : > { %v7884_v17 = vld [vmem:[%s8121_s19 + $0x530] sm:$0xff]  }
  0x9a   : > { %6381 = vmatpush3.bf16.msra.mxu0 %v7834_v18  ;;  %v7885_v18 = vld [vmem:[%s8121_s19 + $0x5b0] sm:$0xff]  }
  0x9b   : > { %6403 = vmatpush3.bf16.msra.mxu1 %v7835_v19  ;;  %6382 = vmatprep.subr.bf16.mxu0 %v7836_v20  ;;  %v7886_v19 = vld [vmem:[%s8121_s19 + $0x568] sm:$0xff]  }
  0x9c   : > { %6404 = vmatprep.subr.bf16.mxu1 %v7837_v21  ;;  %v7887_v20 = vld [vmem:[%s8121_s19 + $0x5e8] sm:$0xff]  }
  0x9d   : > { %v7888_v21 = vld [vmem:[%s8121_s19 + $0x528] sm:$0xff]  }
  0x9e   : > { %6383 = vmatpush3.bf16.msra.mxu0 %v7838_v22  ;;  %v7889_v22 = vld [vmem:[%s8121_s19 + $0x5a8] sm:$0xff]  }
  0x9f   : > { %6405 = vmatpush3.bf16.msra.mxu1 %v7839_v23  ;;  %6384 = vmatprep.subr.bf16.mxu0 %v7840_v24  ;;  %v7890_v23 = vld [vmem:[%s8121_s19 + $0x560] sm:$0xff]  }
  0xa0   : > { %6406 = vmatprep.subr.bf16.mxu1 %v7841_v26  ;;  %v7891_v24 = vld [vmem:[%s8121_s19 + $0x5e0] sm:$0xff]  }
  0xa1   : > { %v7893_v26 = vld [vmem:[%s8121_s19 + $0x5a0] sm:$0xff]  }
  0xa2   : > { %6385 = vmatpush3.bf16.msra.mxu0 %v7842_v30  ;;  %v7896_v30 = vld [vmem:[%s8121_s19 + $0x518] sm:$0xff]  }
  0xa3   : > { %6407 = vmatpush3.bf16.msra.mxu1 %v7843_v31  ;;  %6414 = vmatprep.subr.bf16.mxu0 %v7845_v35  ;;  %v7897_v31 = vld [vmem:[%s8121_s19 + $0x598] sm:$0xff]   ;;  %v7900_v35 = vld [vmem:[%s8121_s19 + $0x510] sm:$0xff]  }
  0xa4   : > { %6436 = vmatprep.subr.bf16.mxu1 %v7846_v37  ;;  %v7902_v37 = vld [vmem:[%s8121_s19 + $0x548] sm:$0xff]  }
  0xa5   : > { %2405 = vmatmul.mubr.bf16.vlgmr.msra.gmra.mxu0 %v912_v27  ;;  %v7894_v27 = vld [vmem:[%s8121_s19 + $0x558] sm:$0xff]  }
  0xa6   : > { %2445 = vmatmul.mubr.bf16.vlgmr.msra.gmra.mxu1 %v919_v33  ;;  %6415 = vmatpush3.bf16.msra.mxu0 %v7847_v38  ;;  %v7899_v33 = vld [vmem:[%s8121_s19 + $0x5d0] sm:$0xff]   ;;  %v7903_v38 = vld [vmem:[%s8121_s19 + $0x5c8] sm:$0xff]  }
  0xa7   : > { %6437 = vmatpush3.bf16.msra.mxu1 %v7848_v39  ;;  %6416 = vmatprep.subr.bf16.mxu0 %v7849_v40  ;;  %v7904_v39 = vld [vmem:[%s8121_s19 + $0x508] sm:$0xff]  }
  0xa8   : > { %6438 = vmatprep.subr.bf16.mxu1 %v7850_v41  ;;  %2484 = vmatprep.mubr.bf16.mxu0 %v937_v8  ;;  %v7905_v40 = vld [vmem:[%s8121_s19 + $0x588] sm:$0xff]  }
  0xa9   : > { %2524 = vmatprep.mubr.bf16.mxu1 %v938_v11  ;;  %v463_v41 = vld [vmem:[%s8116_s15 + $0x28] sm:$0xff] }
  0xaa   : > { %6417 = vmatpush3.bf16.msra.mxu0 %v7851_v43  ;;  %v7906_v43 = vld [vmem:[%s8121_s19 + $0x540] sm:$0xff]  }
  0xab   : > { %6439 = vmatpush3.bf16.msra.mxu1 %v7852_v44  ;;  %6418 = vmatprep.subr.bf16.mxu0 %v7853_v45  ;;  %v7907_v44 = vld [vmem:[%s8121_s19 + $0x5c0] sm:$0xff]   ;;  %v946_v45 = vrot.slane %v463_v41, %v8163_v42 }
  0xac   : > { %6440 = vmatprep.subr.bf16.mxu1 %v7854_v46  ;;  %v939_v46 = vcombine.high %v463_v41, %v463_v41 }
  0xae   : > { %6419 = vmatpush3.bf16.msra.mxu0 %v7855_v47  ;;  %v954_v47 = vcombine.high %v946_v45, %v946_v45 }
  0xaf   : > { %6441 = vmatpush3.bf16.msra.mxu1 %v7856_v48  ;;  %6420 = vmatprep.subr.bf16.mxu0 %v7857_v49  ;;  %v953_v48 = vrot.slane %v939_v46, %v8163_v42  ;;  %v7908_v49 = vld [vmem:[%s8121_s19 + $0x500] sm:$0xff]  }
  0xb0   : > { %6442 = vmatprep.subr.bf16.mxu1 %v7858_v50  ;;  %v7909_v50 = vld [vmem:[%s8121_s19 + $0x580] sm:$0xff]  }
  0xb2   : > { %6421 = vmatpush3.bf16.msra.mxu0 %v7859_v51  ;;  %v955_v51 = vcombine.high %v953_v48, %v953_v48 }
  0xb3   : > { %6443 = vmatpush3.bf16.msra.mxu1 %v7860_v52  ;;  %6422 = vmatprep.subr.bf16.mxu0 %v7861_v53 }
  0xb4   : > { %6444 = vmatprep.subr.bf16.mxu1 %v7862_v54 }
  0xb6   : > { %6423 = vmatpush3.bf16.msra.mxu0 %v7863_v55 }
  0xb7   : > { %6445 = vmatpush3.bf16.msra.mxu1 %v7864_v56  ;;  %6424 = vmatprep.subr.bf16.mxu0 %v7865_v57 }
  0xb8   : > { %6446 = vmatprep.subr.bf16.mxu1 %v7866_v58 }
  0xba   : > { %6425 = vmatpush3.bf16.msra.mxu0 %v7867_v59 }
  0xbb   : > { %6447 = vmatpush3.bf16.msra.mxu1 %v7868_v60  ;;  %6426 = vmatprep.subr.bf16.mxu0 %v7869_v61 }
  0xbc   : > { %6448 = vmatprep.subr.bf16.mxu1 %v7870_v62 }
  0xbe   : > { %6427 = vmatpush3.bf16.msra.mxu0 %v7871_v63 }
  0xbf   : > { %6449 = vmatpush3.bf16.msra.mxu1 %v7872_v0  ;;  %6428 = vmatprep.subr.bf16.mxu0 %v7873_v1 }
  0xc0   : > { %6450 = vmatprep.subr.bf16.mxu1 %v7874_v3 }
  0xc2   : > { %6429 = vmatpush3.bf16.msra.mxu0 %v7875_v6 }
  0xc3   : > { %6451 = vmatpush3.bf16.msra.mxu1 %v7876_v7  ;;  %6458 = vmatprep.subr.bf16.mxu0 %v7878_v10 }
  0xc4   : > { %6480 = vmatprep.subr.bf16.mxu1 %v7879_v12 }
  0xc5   : > { %2485 = vmatmul.mubr.bf16.vlgmr.msra.gmra.mxu0 %v929_v4 }
  0xc6   : > { %2525 = vmatmul.mubr.bf16.vlgmr.msra.gmra.mxu1 %v936_v9  ;;  %6459 = vmatpush3.bf16.msra.mxu0 %v7880_v13 }
  0xc7   : > { %6481 = vmatpush3.bf16.msra.mxu1 %v7881_v14  ;;  %6460 = vmatprep.subr.bf16.mxu0 %v7882_v15 }
  0xc8   : > { %6482 = vmatprep.subr.bf16.mxu1 %v7883_v16  ;;  %2564 = vmatprep.mubr.bf16.mxu0 %v954_v47 }
  0xc9   : > { %2604 = vmatprep.mubr.bf16.mxu1 %v955_v51 }
  0xca   : > { %6461 = vmatpush3.bf16.msra.mxu0 %v7884_v17 }
  0xcb   : > { %6483 = vmatpush3.bf16.msra.mxu1 %v7885_v18  ;;  %6462 = vmatprep.subr.bf16.mxu0 %v7886_v19 }
  0xcc   : > { %6484 = vmatprep.subr.bf16.mxu1 %v7887_v20 }
  0xce   : > { %6463 = vmatpush3.bf16.msra.mxu0 %v7888_v21 }
  0xcf   : > { %6485 = vmatpush3.bf16.msra.mxu1 %v7889_v22  ;;  %6464 = vmatprep.subr.bf16.mxu0 %v7890_v23 }
  0xd0   : > { %6486 = vmatprep.subr.bf16.mxu1 %v7891_v24 }
  0xd2   : > { %6465 = vmatpush3.bf16.msra.mxu0 %v7892_v25 }
  0xd3   : > { %6487 = vmatpush3.bf16.msra.mxu1 %v7893_v26  ;;  %6466 = vmatprep.subr.bf16.mxu0 %v7894_v27 }
  0xd4   : > { %6488 = vmatprep.subr.bf16.mxu1 %v7895_v28 }
  0xd6   : > { %6467 = vmatpush3.bf16.msra.mxu0 %v7896_v30 }
  0xd7   : > { %6489 = vmatpush3.bf16.msra.mxu1 %v7897_v31  ;;  %6468 = vmatprep.subr.bf16.mxu0 %v7898_v32 }
  0xd8   : > { %6490 = vmatprep.subr.bf16.mxu1 %v7899_v33 }
  0xda   : > { %6469 = vmatpush3.bf16.msra.mxu0 %v7900_v35 }
  0xdb   : > { %6491 = vmatpush3.bf16.msra.mxu1 %v7901_v36  ;;  %6470 = vmatprep.subr.bf16.mxu0 %v7902_v37 }
  0xdc   : > { %6492 = vmatprep.subr.bf16.mxu1 %v7903_v38 }
  0xde   : > { %6471 = vmatpush3.bf16.msra.mxu0 %v7904_v39 }
  0xdf   : > { %6493 = vmatpush3.bf16.msra.mxu1 %v7905_v40  ;;  %6472 = vmatprep.subr.bf16.mxu0 %v7906_v43 }
  0xe0   : > { %6494 = vmatprep.subr.bf16.mxu1 %v7907_v44 }
  0xe2   : > { %6473 = vmatpush3.bf16.msra.mxu0 %v7908_v49 }
  0xe3   : > { %6495 = vmatpush3.bf16.msra.mxu1 %v7909_v50 }
  0xe5   : > { %2565 = vmatmul.mubr.bf16.vlgmr.msra.gmra.mxu0 %v946_v45 }
  0xe6   : > { %2605 = vmatmul.mubr.bf16.vlgmr.msra.gmra.mxu1 %v953_v48 }
 0x105   : > { %v6254_v52 = vpop.f32.mrf.mxu0 }
 0x106   : > { %v6276_v53 = vpop.f32.mrf.mxu1 }
 0x107   : > { %v6255_v54 = vpop.f32.mrf.mxu0 }
 0x108   : > { %v6277_v55 = vpop.f32.mrf.mxu1  ;;  %v6256_v56 = vadd.f32 %v6255_v54, %v6254_v52 }
 0x109   : > { %v6278_v57 = vadd.f32 %v6277_v55, %v6276_v53  ;;  %v6257_v42 = vpop.f32.mrf.mxu0 }
 0x10a   : > { %v6279_v58 = vpop.f32.mrf.mxu1  ;;  %v457_v42 = vld [vmem:[#allocation2] sm:$0xf] }
 0x10b   : > { %v2207_v59 = vadd.f32 %v6278_v57, %v6256_v56  ;;  %v6258_v60 = vpop.f32.mrf.mxu0 }
 0x10c   : > { %v6280_v61 = vpop.f32.mrf.mxu1 }
 0x125   : > { %v6298_v62 = vpop.f32.mrf.mxu0 }
 0x126   : > { %v6320_v63 = vpop.f32.mrf.mxu1 }
 0x127   : > { %v6299_v0 = vpop.f32.mrf.mxu0 }
 0x128   : > { %v6321_v1 = vpop.f32.mrf.mxu1  ;;  %v6300_v2 = vadd.f32 %v6299_v0, %v6298_v62 }
 0x129   : > { %v6322_v3 = vadd.f32 %v6321_v1, %v6320_v63  ;;  %v6301_v4 = vpop.f32.mrf.mxu0 }
 0x12a   : > { %v6323_v5 = vpop.f32.mrf.mxu1  ;;  %v2247_v6 = vadd.f32 %v6300_v2, %v2207_v59 }
 0x12b   : > { %v6302_v7 = vpop.f32.mrf.mxu0 }
 0x12c   : > { %v6324_v8 = vpop.f32.mrf.mxu1  ;;  %v2287_v9 = vadd.f32 %v6322_v3, %v2247_v6 }
 0x145   : > { %v6342_v10 = vpop.f32.mrf.mxu0 }
 0x146   : > { %v6364_v11 = vpop.f32.mrf.mxu1 }
 0x147   : > { %v6343_v12 = vpop.f32.mrf.mxu0 }
 0x148   : > { %v6365_v13 = vpop.f32.mrf.mxu1  ;;  %v6344_v14 = vadd.f32 %v6343_v12, %v6342_v10 }
 0x149   : > { %v6366_v15 = vadd.f32 %v6365_v13, %v6364_v11  ;;  %v6345_v16 = vpop.f32.mrf.mxu0 }
 0x14a   : > { %v6367_v17 = vpop.f32.mrf.mxu1  ;;  %v2327_v18 = vadd.f32 %v6344_v14, %v2287_v9 }
 0x14b   : > { %v6346_v19 = vpop.f32.mrf.mxu0 }
 0x14c   : > { %v6368_v20 = vpop.f32.mrf.mxu1  ;;  %v2367_v21 = vadd.f32 %v6366_v15, %v2327_v18 }
 0x165   : > { %v6386_v22 = vpop.f32.mrf.mxu0 }
 0x166   : > { %v6408_v23 = vpop.f32.mrf.mxu1 }
 0x167   : > { %v6387_v24 = vpop.f32.mrf.mxu0 }
 0x168   : > { %v6409_v25 = vpop.f32.mrf.mxu1  ;;  %v6388_v40 = vadd.f32 %v6387_v24, %v6386_v22 }
 0x169   : > { %v6389_v26 = vpop.f32.mrf.mxu0  ;;  %v6410_v43 = vadd.f32 %v6409_v25, %v6408_v23 }
 0x16a   : > { %v6411_v27 = vpop.f32.mrf.mxu1  ;;  %v2407_v41 = vadd.f32 %v6388_v40, %v2367_v21 }
 0x16b   : > { %v6390_v28 = vpop.f32.mrf.mxu0 }
 0x16c   : > { %v6412_v30 = vpop.f32.mrf.mxu1  ;;  %v2447_v45 = vadd.f32 %v6410_v43, %v2407_v41 }
 0x185   : > { %v6430_v31 = vpop.f32.mrf.mxu0 }
 0x186   : > { %v6452_v32 = vpop.f32.mrf.mxu1 }
 0x187   : > { %v6431_v33 = vpop.f32.mrf.mxu0 }
 0x188   : > { %v6453_v35 = vpop.f32.mrf.mxu1  ;;  %v6432_v44 = vadd.f32 %v6431_v33, %v6430_v31 }
 0x189   : > { %v6433_v36 = vpop.f32.mrf.mxu0  ;;  %v6454_v47 = vadd.f32 %v6453_v35, %v6452_v32 }
 0x18a   : > { %v6455_v37 = vpop.f32.mrf.mxu1  ;;  %v2487_v46 = vadd.f32 %v6432_v44, %v2447_v45 }
 0x18b   : > { %v6434_v38 = vpop.f32.mrf.mxu0 }
 0x18c   : > { %v6456_v39 = vpop.f32.mrf.mxu1  ;;  %v2527_v52 = vadd.f32 %v6454_v47, %v2487_v46 }
 0x1a5   : > { %v6474_v48 = vpop.f32.mrf.mxu0 }
 0x1a6   : > { %v6496_v49 = vpop.f32.mrf.mxu1 }
 0x1a7   : > { %v6475_v50 = vpop.f32.mrf.mxu0 }
 0x1a8   : > { %v6497_v51 = vpop.f32.mrf.mxu1  ;;  %v6476_v53 = vadd.f32 %v6475_v50, %v6474_v48 }
 0x1a9   : > { %v6477_v54 = vpop.f32.mrf.mxu0  ;;  %v6498_v57 = vadd.f32 %v6497_v51, %v6496_v49 }
 0x1aa   : > { %v6499_v55 = vpop.f32.mrf.mxu1  ;;  %v2567_v56 = vadd.f32 %v6476_v53, %v2527_v52 }
 0x1ab   : > { %v6478_v58 = vpop.f32.mrf.mxu0 }
 0x1ac   : > { %v6500_v59 = vpop.f32.mrf.mxu1  ;;  %v2607_v60 = vadd.f32 %v6498_v57, %v2567_v56  ;;  %2617 = sbr.rel (%p6122_p6) target bundleno = 8247 (0x2037), region = 80 }
 0x1ae   : > { %v2612_v61 = vadd.f32 %v2607_v60, %v457_v42 }
 0x1b0   : > { %2613 = vst [vmem:[#allocation2] sm:$0xf] %v2612_v61 }
 0x1b1   : > { %v7911_v62 = vld [vmem:[%s9542_s3 + $0x38] sm:$0xff]   ;;  %v8027_v63 = vmov 0.0   ;;  %v7912_v0 = vld [vmem:[%s9542_s3 + $0x30] sm:$0xff]   ;;  %vm8028_vm0 = vmmov 0   ;;  %v7913_v1 = vld [vmem:[%s9542_s3 + $0x28] sm:$0xff]   ;;  %vm2742_vm1 = vcmp.lt.s32.totalorder %v8157_v34, 2 }
 0x1b2   : > { %6878 = vmatprep.subr.bf16.mxu0 %v8027_v63  ;;  %6898 = vmatprep.subr.bf16.mxu1 %v8027_v63  ;;  %v7914_v2 = vld [vmem:[%s9542_s3 + $0x20] sm:$0xff]   ;;  %v7915_v3 = vld [vmem:[%s9542_s3 + $0x18] sm:$0xff]   ;;  %v7916_v4 = vld [vmem:[%s9542_s3 + $0x10] sm:$0xff]   ;;  %v8469_v27 = vsel %vm2742_vm1, 1.0, %v8027_v63  ;;  %vm2747_vm2 = vcmask 1043456   ;;  %vm4644_vm5 = vcmask 1040384  }
 0x1b3   : > { %6879 = vmatpush3.bf16.msra.mxu0 %v7911_v62  ;;  %6894 = vmatprep.mubr.msk.bf16.mxu0 %vm8028_vm0, %v8027_v63  ;;  %v6123_v6 = vld [vmem:[%s9543_s2] ss:$0 sm:$0xff]  ;;  %v7917_v7 = vld [vmem:[%s9542_s3 + $0x8] sm:$0xff]   ;;  %v7919_v12 = vld [vmem:[%s9544_s7 + $0x38] sm:$0xff]   ;;  %v8475_v30 = vsub.f32 1.0, %v8469_v27  ;;  %vm4466_vm6 = vcmask 31744  }
 0x1b4   : > { %6880 = vmatprep.subr.bf16.mxu0 %v8027_v63  ;;  %6914 = vmatprep.mubr.msk.bf16.mxu1 %vm8028_vm0, %v8027_v63  ;;  %v7918_v10 = vld [vmem:[%s9542_s3] sm:$0xff]   ;;  %v7920_v13 = vld [vmem:[%s9544_s7 + $0x30] sm:$0xff]   ;;  %v7921_v14 = vld [vmem:[%s9544_s7 + $0x28] sm:$0xff]  }
 0x1b5   : > { %6899 = vmatpush3.bf16.msra.mxu1 %v7919_v12  ;;  %v7922_v15 = vld [vmem:[%s9544_s7 + $0x20] sm:$0xff]   ;;  %v7923_v16 = vld [vmem:[%s9544_s7 + $0x18] sm:$0xff]   ;;  %v7924_v17 = vld [vmem:[%s9544_s7 + $0x10] sm:$0xff]  }
 0x1b6   : > { %6900 = vmatprep.subr.bf16.mxu1 %v8027_v63  ;;  %v7925_v18 = vld [vmem:[%s9544_s7 + $0x8] sm:$0xff]   ;;  %v7926_v19 = vld [vmem:[%s9544_s7] sm:$0xff]   ;;  %v8419_v20 = vld [vmem:[%s9545_s9 + $0x38] sm:$0xff]  }
 0x1b7   : > { %6881 = vmatpush3.bf16.msra.mxu0 %v7912_v0  ;;  %v2618_v5 = vld [vmem:[#allocation2] sm:$0xf]  ;;  %v8425_v21 = vld [vmem:[%s9545_s9 + $0x30] sm:$0xff]   ;;  %v8432_v22 = vld [vmem:[%s9545_s9 + $0x28] sm:$0xff]  }
 0x1b8   : > { %6882 = vmatprep.subr.bf16.mxu0 %v8027_v63  ;;  %v2626_v8 = vadd.f32 %v6123_v6, %v2618_v5  ;;  %v8439_v23 = vld [vmem:[%s9545_s9 + $0x20] sm:$0xff]   ;;  %v8446_v24 = vld [vmem:[%s9545_s9 + $0x18] sm:$0xff]   ;;  %v8453_v25 = vld [vmem:[%s9545_s9 + $0x10] sm:$0xff]  }
 0x1b9   : > { %6901 = vmatpush3.bf16.msra.mxu1 %v7920_v13  ;;  %v8460_v26 = vld [vmem:[%s9545_s9 + $0x8] sm:$0xff]   ;;  %v6124_v28 = vld [vmem:[%s9546_s4] ss:$0 sm:$0xff] }
 0x1ba   : > { %v2627_v9 = vmax.f32 %v2626_v8, 0.0  ;;  %6902 = vmatprep.subr.bf16.mxu1 %v8027_v63 }
 0x1bb   : > { %6883 = vmatpush3.bf16.msra.mxu0 %v7913_v1 }
 0x1bc   : > { %6884 = vmatprep.subr.bf16.mxu0 %v8027_v63  ;;  %v2628_v11 = vpack.c.bf16 %v2627_v9, %v2627_v9 }
 0x1bd   : > { %6903 = vmatpush3.bf16.msra.mxu1 %v7921_v14 }
 0x1be   : > { %6904 = vmatprep.subr.bf16.mxu1 %v8027_v63 }
 0x1bf   : > { %6885 = vmatpush3.bf16.msra.mxu0 %v7914_v2 }
 0x1c0   : > { %6886 = vmatprep.subr.bf16.mxu0 %v8027_v63 }
 0x1c1   : > { %6905 = vmatpush3.bf16.msra.mxu1 %v7922_v15 }
 0x1c2   : > { %6906 = vmatprep.subr.bf16.mxu1 %v8027_v63 }
 0x1c3   : > { %6887 = vmatpush3.bf16.msra.mxu0 %v7915_v3 }
 0x1c4   : > { %6888 = vmatprep.subr.bf16.mxu0 %v8027_v63 }
 0x1c5   : > { %6907 = vmatpush3.bf16.msra.mxu1 %v7923_v16 }
 0x1c6   : > { %6908 = vmatprep.subr.bf16.mxu1 %v8027_v63 }
 0x1c7   : > { %6889 = vmatpush3.bf16.msra.mxu0 %v7916_v4 }
 0x1c8   : > { %6890 = vmatprep.subr.bf16.mxu0 %v8027_v63 }
 0x1c9   : > { %6909 = vmatpush3.bf16.msra.mxu1 %v7924_v17 }
 0x1ca   : > { %6910 = vmatprep.subr.bf16.mxu1 %v8027_v63 }
 0x1cb   : > { %6891 = vmatpush3.bf16.msra.mxu0 %v7917_v7 }
 0x1cc   : > { %6892 = vmatprep.subr.bf16.mxu0 %v8027_v63 }
 0x1cd   : > { %6911 = vmatpush3.bf16.msra.mxu1 %v7925_v18 }
 0x1ce   : > { %6912 = vmatprep.subr.bf16.mxu1 %v8027_v63 }
 0x1cf   : > { %6893 = vmatpush3.bf16.msra.mxu0 %v7918_v10 }
 0x1d0   : > { %6918 = vmatprep.subr.bf16.mxu0 %v8027_v63 }
 0x1d1   : > { %6913 = vmatpush3.bf16.msra.mxu1 %v7926_v19 }
 0x1d2   : > { %6895 = vmatmul.mubr.bf16.vlgmr.msra.gmra.mxu0 %v2628_v11  ;;  %6938 = vmatprep.subr.bf16.mxu1 %v8027_v63 }
 0x1d3   : > { %6934 = vmatprep.mubr.msk.bf16.mxu0 %vm8028_vm0, %v8027_v63  ;;  %6919 = vmatpush3.bf16.msra.mxu0 %v8419_v20 }
 0x1d4   : > { %6920 = vmatprep.subr.bf16.mxu0 %v8027_v63 }
 0x1d7   : > { %6921 = vmatpush3.bf16.msra.mxu0 %v8425_v21 }
 0x1d8   : > { %6922 = vmatprep.subr.bf16.mxu0 %v8027_v63 }
 0x1db   : > { %6923 = vmatpush3.bf16.msra.mxu0 %v8432_v22 }
 0x1dc   : > { %6924 = vmatprep.subr.bf16.mxu0 %v8027_v63 }
 0x1df   : > { %6925 = vmatpush3.bf16.msra.mxu0 %v8439_v23 }
 0x1e0   : > { %6926 = vmatprep.subr.bf16.mxu0 %v8027_v63 }
 0x1e3   : > { %6927 = vmatpush3.bf16.msra.mxu0 %v8446_v24 }
 0x1e4   : > { %6928 = vmatprep.subr.bf16.mxu0 %v8027_v63 }
 0x1e7   : > { %6929 = vmatpush3.bf16.msra.mxu0 %v8453_v25 }
 0x1e8   : > { %6930 = vmatprep.subr.bf16.mxu0 %v8027_v63 }
 0x1eb   : > { %6931 = vmatpush3.bf16.msra.mxu0 %v8460_v26 }
 0x1ec   : > { %6932 = vmatprep.subr.bf16.mxu0 %v8027_v63 }
 0x292   : > { %v2734_v31 = vpop.f32.mrf.mxu0 }
 0x293   : > { %v2735_v32 = vadd.f32 %v6124_v28, %v2734_v31  ;;  %v6134_v28 = vld [vmem:[%s9547_s5] ss:$0 sm:$0xff] }
 0x294   : > { %v6896_v33 = vpop.f32.mrf.mxu0 }
 0x295   : > { %v2746_v35 = vmul.f32 %v8469_v27, %v2735_v32  ;;  %v2756_v36 = vmul.f32 %v8475_v30, %v2735_v32 }
 0x296   : > { %v2737_v37 = vpop.f32.mrf.mxu0 }
 0x297   : > { %v2748_v38 = vsel %vm2747_vm2, %v2746_v35, 0.0  ;;  %v2757_v39 = vsel %vm2747_vm2, %v2756_v36, 0.0 }
 0x298   : > { %v2749_v40 = vrot.slane %v2748_v38, 4  ;;  %v2758_v41 = vrot.slane %v2757_v39, 4  ;;  %v6897_v43 = vpop.f32.mrf.mxu0 }
 0x29a   : > { %v2750_v44 = vadd.f32 %v2749_v40, %v2748_v38  ;;  %v2759_v45 = vadd.f32 %v2758_v41, %v2757_v39  ;;  %v8500_v38 = vld [vmem:[%s9545_s9] sm:$0xff]   ;;  %v8507_v39 = vld [vmem:[%s9549_s11 + $0x38] sm:$0xff]  }
 0x29b   : > { %6933 = vmatpush3.bf16.msra.mxu0 %v8500_v38  ;;  %v6136_v40 = vld [vmem:[%s9550_s8] ss:$0 sm:$0xff] }
 0x29c   : > { %v2751_v46 = vrot.slane %v2750_v44, 2  ;;  %v2760_v47 = vrot.slane %v2759_v45, 2  ;;  %6958 = vmatprep.subr.bf16.mxu0 %v8027_v63 }
 0x29e   : > { %v2752_v48 = vadd.f32 %v2751_v46, %v2750_v44  ;;  %v2761_v49 = vadd.f32 %v2760_v47, %v2759_v45 }
 0x2a0   : > { %v2753_v50 = vrot.slane %v2752_v48, 1  ;;  %v2762_v51 = vrot.slane %v2761_v49, 1 }
 0x2a2   : > { %v2754_v52 = vadd.f32 %v2753_v50, %v2752_v48  ;;  %v2763_v53 = vadd.f32 %v2762_v51, %v2761_v49 }
 0x2a4   : > { %v2755_v54 = vmul.f32 0.5, %v2754_v52  ;;  %v2764_v55 = vmul.f32 0.5, %v2763_v53 }
 0x2a6   : > { %v2765_v56 = vmul.f32 %v8469_v27, %v2755_v54  ;;  %v2766_v57 = vmul.f32 %v2764_v55, %v8475_v30 }
 0x2a8   : > { %v2767_v42 = vadd.f32 %v2766_v57, %v2765_v56 }
 0x2aa   : > { %v2768_v58 = vsub.f32 %v2735_v32, %v2767_v42  ;;  %v6135_v32 = vld [vmem:[%s9548_s6] ss:$0 sm:$0xff] }
 0x2ac   : > { %v2769_v59 = vmul.f32 %v2768_v58, %v2768_v58 }
 0x2ae   : > { %v2770_v60 = vmul.f32 %v8469_v27, %v2769_v59  ;;  %v2779_v61 = vmul.f32 %v2769_v59, %v8475_v30 }
 0x2b0   : > { %v2771_v62 = vsel %vm2747_vm2, %v2770_v60, 0.0  ;;  %v2780_v0 = vsel %vm2747_vm2, %v2779_v61, 0.0 }
 0x2b1   : > { %v2772_v1 = vrot.slane %v2771_v62, 4  ;;  %v2781_v2 = vrot.slane %v2780_v0, 4 }
 0x2b3   : > { %v2773_v3 = vadd.f32 %v2772_v1, %v2771_v62  ;;  %v2782_v4 = vadd.f32 %v2781_v2, %v2780_v0 }
 0x2b5   : > { %v2774_v5 = vrot.slane %v2773_v3, 2  ;;  %v2783_v6 = vrot.slane %v2782_v4, 2 }
 0x2b7   : > { %v2775_v7 = vadd.f32 %v2774_v5, %v2773_v3  ;;  %v2784_v8 = vadd.f32 %v2783_v6, %v2782_v4 }
 0x2b9   : > { %v2776_v9 = vrot.slane %v2775_v7, 1  ;;  %v2785_v10 = vrot.slane %v2784_v8, 1 }
 0x2bb   : > { %v2777_v11 = vadd.f32 %v2776_v9, %v2775_v7  ;;  %v2786_v12 = vadd.f32 %v2785_v10, %v2784_v8  ;;  %v8552_v7 = vld [vmem:[%s9549_s11 + $0x30] sm:$0xff]   ;;  %v8558_v8 = vld [vmem:[%s9549_s11 + $0x28] sm:$0xff]   ;;  %v8565_v9 = vld [vmem:[%s9549_s11 + $0x20] sm:$0xff]  }
 0x2bc   : > { %v8573_v10 = vld [vmem:[%s9549_s11 + $0x18] sm:$0xff]  }
 0x2bd   : > { %v2778_v13 = vmul.f32 0.5, %v2777_v11  ;;  %v2787_v14 = vmul.f32 0.5, %v2786_v12  ;;  %v8580_v11 = vld [vmem:[%s9549_s11 + $0x10] sm:$0xff]   ;;  %v8587_v12 = vld [vmem:[%s9549_s11 + $0x8] sm:$0xff]  }
 0x2bf   : > { %v2788_v15 = vmul.f32 %v8469_v27, %v2778_v13  ;;  %v2789_v16 = vmul.f32 %v2787_v14, %v8475_v30  ;;  %v8594_v13 = vld [vmem:[%s9549_s11] sm:$0xff]  }
 0x2c1   : > { %v2790_v17 = vadd.f32 %v2789_v16, %v2788_v15 }
 0x2c3   : > { %v2791_v18 = vadd.f32 1e-05, %v2790_v17 }
 0x2c5   : > { %7943 = vrsqrt.f32 %v2791_v18 }
 0x2d2   : > { %v7944_v19 = vpop.eup %7943 }
 0x2d3   : > { %v2793_v31 = vmul.f32 %v7944_v19, %v2768_v58 }
 0x2d5   : > { %v2801_v33 = vmul.f32 %v6134_v28, %v2793_v31 }
 0x2d7   : > { %v2809_v35 = vadd.f32 %v6135_v32, %v2801_v33 }
 0x2d9   : > { %v2810_v36 = vmax.f32 %v2809_v35, 0.0 }
 0x2db   : > { %v2811_v37 = vpack.c.bf16 %v2810_v36, %v2810_v36 }
 0x2dd   : > { %6915 = vmatmul.mubr.bf16.vlgmr.msra.gmra.mxu1 %v2811_v37 }
 0x2de   : > { %6954 = vmatprep.mubr.msk.bf16.mxu1 %vm8028_vm0, %v8027_v63  ;;  %6939 = vmatpush3.bf16.msra.mxu1 %v8507_v39 }
 0x2df   : > { %6940 = vmatprep.subr.bf16.mxu1 %v8027_v63 }
 0x2e2   : > { %6941 = vmatpush3.bf16.msra.mxu1 %v8552_v7 }
 0x2e3   : > { %6942 = vmatprep.subr.bf16.mxu1 %v8027_v63 }
 0x2e6   : > { %6943 = vmatpush3.bf16.msra.mxu1 %v8558_v8 }
 0x2e7   : > { %6944 = vmatprep.subr.bf16.mxu1 %v8027_v63 }
 0x2ea   : > { %6945 = vmatpush3.bf16.msra.mxu1 %v8565_v9 }
 0x2eb   : > { %6946 = vmatprep.subr.bf16.mxu1 %v8027_v63 }
 0x2ee   : > { %6947 = vmatpush3.bf16.msra.mxu1 %v8573_v10 }
 0x2ef   : > { %6948 = vmatprep.subr.bf16.mxu1 %v8027_v63 }
 0x2f2   : > { %6949 = vmatpush3.bf16.msra.mxu1 %v8580_v11 }
 0x2f3   : > { %6950 = vmatprep.subr.bf16.mxu1 %v8027_v63 }
 0x2f6   : > { %6951 = vmatpush3.bf16.msra.mxu1 %v8587_v12 }
 0x2f7   : > { %6952 = vmatprep.subr.bf16.mxu1 %v8027_v63 }
 0x2fa   : > { %6953 = vmatpush3.bf16.msra.mxu1 %v8594_v13 }
 0x2fb   : > { %6978 = vmatprep.subr.bf16.mxu1 %v8027_v63 }
 0x39d   : > { %v2917_v41 = vpop.f32.mrf.mxu1 }
 0x39e   : > { %v8514_v43 = vadd.f32 %v6136_v40, %v2917_v41 }
 0x39f   : > { %v6916_v44 = vpop.f32.mrf.mxu1 }
 0x3a0   : > { %v2960_v45 = vpack.c.bf16 %v8514_v43, %v8514_v43  ;;  %v4595_v46 = vmul.f32 %v8469_v27, %v8514_v43  ;;  %v4604_v47 = vmul.f32 %v8514_v43, %v8475_v30 }
 0x3a1   : > { %v2920_v48 = vpop.f32.mrf.mxu1 }
 0x3a2   : > { %6935 = vmatmul.mubr.bf16.vlgmr.msra.gmra.mxu0 %v2960_v45  ;;  %v4596_v49 = vsel %vm2747_vm2, %v4595_v46, 0.0  ;;  %v4605_v50 = vsel %vm2747_vm2, %v4604_v47, 0.0  ;;  %v8614_v48 = vld [vmem:[%s9551_s10] ss:$0 sm:$0xff] }
 0x3a3   : > { %v6917_v51 = vpop.f32.mrf.mxu1  ;;  %v4597_v52 = vrot.slane %v4596_v49, 4  ;;  %v4606_v53 = vrot.slane %v4605_v50, 4  ;;  %6959 = vmatpush3.bf16.msra.mxu0 %v8419_v20  ;;  %6974 = vmatprep.mubr.msk.bf16.mxu0 %vm8028_vm0, %v8027_v63 }
 0x3a4   : > { %6960 = vmatprep.subr.bf16.mxu0 %v8027_v63 }
 0x3a5   : > { %v4598_v54 = vadd.f32 %v4597_v52, %v4596_v49  ;;  %v4607_v55 = vadd.f32 %v4606_v53, %v4605_v50 }
 0x3a7   : > { %v4599_v56 = vrot.slane %v4598_v54, 2  ;;  %v4608_v57 = vrot.slane %v4607_v55, 2  ;;  %6961 = vmatpush3.bf16.msra.mxu0 %v8425_v21 }
 0x3a8   : > { %6962 = vmatprep.subr.bf16.mxu0 %v8027_v63 }
 0x3a9   : > { %v4600_v42 = vadd.f32 %v4599_v56, %v4598_v54  ;;  %v4609_v58 = vadd.f32 %v4608_v57, %v4607_v55  ;;  %v8029_v56 = vmov -0.25  }
 0x3aa   : > { %v8637_v57 = vsel %vm2742_vm1, 0.25, %v8029_v56 }
 0x3ab   : > { %v4601_v59 = vrot.slane %v4600_v42, 1  ;;  %v4610_v60 = vrot.slane %v4609_v58, 1  ;;  %6963 = vmatpush3.bf16.msra.mxu0 %v8432_v22 }
 0x3ac   : > { %6964 = vmatprep.subr.bf16.mxu0 %v8027_v63 }
 0x3ad   : > { %v4602_v61 = vadd.f32 %v4601_v59, %v4600_v42  ;;  %v4611_v62 = vadd.f32 %v4610_v60, %v4609_v58  ;;  %v8642_v42 = vld [vmem:[%s9552_s12] ss:$0 sm:$0xff]  ;;  %v8645_v58 = vmul.f32 0.5, %v8637_v57 }
 0x3af   : > { %v4603_v0 = vmul.f32 0.5, %v4602_v61  ;;  %v4612_v1 = vmul.f32 0.5, %v4611_v62  ;;  %6965 = vmatpush3.bf16.msra.mxu0 %v8439_v23 }
 0x3b0   : > { %6966 = vmatprep.subr.bf16.mxu0 %v8027_v63 }
 0x3b1   : > { %v4613_v2 = vmul.f32 %v8469_v27, %v4603_v0  ;;  %v4614_v3 = vmul.f32 %v4612_v1, %v8475_v30 }
 0x3b3   : > { %v4615_v4 = vadd.f32 %v4614_v3, %v4613_v2  ;;  %6967 = vmatpush3.bf16.msra.mxu0 %v8446_v24 }
 0x3b4   : > { %6968 = vmatprep.subr.bf16.mxu0 %v8027_v63 }
 0x3b5   : > { %v4616_v5 = vsub.f32 %v8514_v43, %v4615_v4 }
 0x3b7   : > { %v8540_v6 = vmul.f32 %v8469_v27, %v4616_v5  ;;  %6969 = vmatpush3.bf16.msra.mxu0 %v8453_v25  ;;  %v8599_v14 = vmul.f32 %v4616_v5, %v8475_v30  ;;  %v8602_v15 = vmul.f32 %v4616_v5, %v4616_v5 }
 0x3b8   : > { %6970 = vmatprep.subr.bf16.mxu0 %v8027_v63 }
 0x3b9   : > { %5297 = vxpose.xlu1.b32.start.end [1/1] (short) %v8540_v6, 128  ;;  %v4618_v16 = vmul.f32 %v8469_v27, %v8602_v15 }
 0x3bb   : > { %6971 = vmatpush3.bf16.msra.mxu0 %v8460_v26  ;;  %v4619_v17 = vsel %vm2747_vm2, %v4618_v16, 0.0 }
 0x3bc   : > { %6972 = vmatprep.subr.bf16.mxu0 %v8027_v63  ;;  %v4620_v18 = vrot.slane %v4619_v17, 4 }
 0x3be   : > { %v4621_v19 = vadd.f32 %v4620_v18, %v4619_v17 }
 0x3bf   : > { %6973 = vmatpush3.bf16.msra.mxu0 %v8500_v38 }
 0x3c0   : > { %6998 = vmatprep.subr.bf16.mxu0 %v8027_v63  ;;  %v4622_v28 = vrot.slane %v4621_v19, 2 }
 0x3c2   : > { %v4623_v31 = vadd.f32 %v4622_v28, %v4621_v19 }
 0x3c4   : > { %v4624_v32 = vrot.slane %v4623_v31, 1 }
 0x3c6   : > { %v8607_v33 = vadd.f32 %v4624_v32, %v4623_v31 }
 0x3c8   : > { %v4683_v35 = vadd.f32 0.0001, %v8607_v33 }
 0x3ca   : > { %7945 = vrsqrt.f32 %v4683_v35  ;;  %vm4686_vm3 = vcmp.eq.f32.partialorder %v4683_v35, inf  ;;  %v4689_v41 = vand.u32 2147483648, %v4683_v35  ;;  %vm4688_vm4 = vcmp.eq.f32.partialorder %v4683_v35, 0.0 }
 0x3d7   : > { %v7946_v36 = vpop.eup %7945 }
 0x3d8   : > { %v4685_v37 = vmul.f32 %v7946_v36, %v4683_v35 }
 0x3da   : > { %v4687_v40 = vsel %vm4686_vm3, %v4683_v35, %v4685_v37 }
 0x3db   : > { %v4690_v44 = vsel %vm4688_vm4, %v4689_v41, %v4687_v40 }
 0x3dc   : > { %v4691_v45 = vsub.f32 1.0, %v4690_v44 }
 0x3de   : > { %v4692_v46 = vmax.f32 %v4691_v45, 0.0 }
 0x3e0   : > { %v4693_v47 = vsel %vm4644_vm5, %v4692_v46, 0.0 }
 0x3f6   : > { %5579 = vxpose.xlu1.b32.start.end [1/1] (short) %v8599_v14, 128 }
 0x459   : > { %4694 = vadd.xlane.f32.xlu1 %v4693_v47 }
 0x462   : > { %v3049_v49 = vpop.f32.mrf.mxu0 }
 0x463   : > { %v3050_v50 = vadd.f32 %v8614_v48, %v3049_v49 }
 0x464   : > { %v6936_v51 = vpop.f32.mrf.mxu0 }
 0x465   : > { %7947 = vtanh.f32 %v3050_v50 }
 0x466   : > { %v3052_v52 = vpop.f32.mrf.mxu0 }
 0x468   : > { %v6937_v53 = vpop.f32.mrf.mxu0 }
 0x472   : > { %v7948_v54 = vpop.eup %7947 }
 0x473   : > { %v3056_v55 = vpack.c.bf16 %v7948_v54, %v7948_v54 }
 0x475   : > { %6955 = vmatmul.mubr.bf16.vlgmr.msra.gmra.mxu1 %v3056_v55 }
 0x476   : > { %6979 = vmatpush3.bf16.msra.mxu1 %v8507_v39  ;;  %6994 = vmatprep.mubr.msk.bf16.mxu1 %vm8028_vm0, %v8027_v63 }
 0x477   : > { %6980 = vmatprep.subr.bf16.mxu1 %v8027_v63 }
 0x47a   : > { %6981 = vmatpush3.bf16.msra.mxu1 %v8552_v7 }
 0x47b   : > { %6982 = vmatprep.subr.bf16.mxu1 %v8027_v63 }
 0x47e   : > { %6983 = vmatpush3.bf16.msra.mxu1 %v8558_v8 }
 0x47f   : > { %6984 = vmatprep.subr.bf16.mxu1 %v8027_v63 }
 0x482   : > { %6985 = vmatpush3.bf16.msra.mxu1 %v8565_v9 }
 0x483   : > { %6986 = vmatprep.subr.bf16.mxu1 %v8027_v63 }
 0x486   : > { %6987 = vmatpush3.bf16.msra.mxu1 %v8573_v10 }
 0x487   : > { %6988 = vmatprep.subr.bf16.mxu1 %v8027_v63 }
 0x48a   : > { %6989 = vmatpush3.bf16.msra.mxu1 %v8580_v11 }
 0x48b   : > { %6990 = vmatprep.subr.bf16.mxu1 %v8027_v63 }
 0x48e   : > { %6991 = vmatpush3.bf16.msra.mxu1 %v8587_v12 }
 0x48f   : > { %6992 = vmatprep.subr.bf16.mxu1 %v8027_v63 }
 0x492   : > { %6993 = vmatpush3.bf16.msra.mxu1 %v8594_v13 }
 0x493   : > { %7018 = vmatprep.subr.bf16.mxu1 %v8027_v63 }
 0x535   : > { %v3145_v59 = vpop.f32.mrf.mxu1 }
 0x536   : > { %v8648_v60 = vadd.f32 %v8642_v42, %v3145_v59 }
 0x537   : > { %v6956_v61 = vpop.f32.mrf.mxu1 }
 0x538   : > { %v3151_v62 = vmul.f32 %v8648_v60, %v8645_v58 }
 0x539   : > { %v3148_v0 = vpop.f32.mrf.mxu1 }
 0x53a   : > { %v3152_v1 = vadd.f32 %v3151_v62, %v8514_v43 }
 0x53b   : > { %v6957_v2 = vpop.f32.mrf.mxu1 }
 0x53c   : > { %v3153_v3 = vpack.c.bf16 %v3152_v1, %v3152_v1 }
 0x53e   : > { %6975 = vmatmul.mubr.bf16.vlgmr.msra.gmra.mxu0 %v3153_v3 }
 0x53f   : > { %6999 = vmatpush3.bf16.msra.mxu0 %v8419_v20  ;;  %7014 = vmatprep.mubr.msk.bf16.mxu0 %vm8028_vm0, %v8027_v63 }
 0x540   : > { %7000 = vmatprep.subr.bf16.mxu0 %v8027_v63 }
 0x543   : > { %7001 = vmatpush3.bf16.msra.mxu0 %v8425_v21 }
 0x544   : > { %7002 = vmatprep.subr.bf16.mxu0 %v8027_v63 }
 0x547   : > { %7003 = vmatpush3.bf16.msra.mxu0 %v8432_v22 }
 0x548   : > { %7004 = vmatprep.subr.bf16.mxu0 %v8027_v63 }
 0x54b   : > { %7005 = vmatpush3.bf16.msra.mxu0 %v8439_v23 }
 0x54c   : > { %7006 = vmatprep.subr.bf16.mxu0 %v8027_v63 }
 0x54f   : > { %7007 = vmatpush3.bf16.msra.mxu0 %v8446_v24 }
 0x550   : > { %7008 = vmatprep.subr.bf16.mxu0 %v8027_v63 }
 0x553   : > { %7009 = vmatpush3.bf16.msra.mxu0 %v8453_v25 }
 0x554   : > { %7010 = vmatprep.subr.bf16.mxu0 %v8027_v63 }
 0x557   : > { %7011 = vmatpush3.bf16.msra.mxu0 %v8460_v26 }
 0x558   : > { %7012 = vmatprep.subr.bf16.mxu0 %v8027_v63 }
 0x55b   : > { %7013 = vmatpush3.bf16.msra.mxu0 %v8500_v38 }
 0x55c   : > { %7038 = vmatprep.subr.bf16.mxu0 %v8027_v63 }
 0x5fe   : > { %v3188_v4 = vpop.f32.mrf.mxu0 }
 0x5ff   : > { %v3189_v5 = vadd.f32 %v8614_v48, %v3188_v4 }
 0x600   : > { %v6976_v16 = vpop.f32.mrf.mxu0 }
 0x601   : > { %7949 = vtanh.f32 %v3189_v5 }
 0x602   : > { %v3191_v17 = vpop.f32.mrf.mxu0 }
 0x604   : > { %v6977_v18 = vpop.f32.mrf.mxu0 }
 0x60e   : > { %v7950_v19 = vpop.eup %7949 }
 0x60f   : > { %v3195_v28 = vpack.c.bf16 %v7950_v19, %v7950_v19 }
 0x611   : > { %6995 = vmatmul.mubr.bf16.vlgmr.msra.gmra.mxu1 %v3195_v28 }
 0x612   : > { %7019 = vmatpush3.bf16.msra.mxu1 %v8507_v39  ;;  %7034 = vmatprep.mubr.msk.bf16.mxu1 %vm8028_vm0, %v8027_v63 }
 0x613   : > { %7020 = vmatprep.subr.bf16.mxu1 %v8027_v63 }
 0x616   : > { %7021 = vmatpush3.bf16.msra.mxu1 %v8552_v7 }
 0x617   : > { %7022 = vmatprep.subr.bf16.mxu1 %v8027_v63 }
 0x61a   : > { %7023 = vmatpush3.bf16.msra.mxu1 %v8558_v8 }
 0x61b   : > { %7024 = vmatprep.subr.bf16.mxu1 %v8027_v63 }
 0x61e   : > { %7025 = vmatpush3.bf16.msra.mxu1 %v8565_v9 }
 0x61f   : > { %7026 = vmatprep.subr.bf16.mxu1 %v8027_v63 }
 0x622   : > { %7027 = vmatpush3.bf16.msra.mxu1 %v8573_v10 }
 0x623   : > { %7028 = vmatprep.subr.bf16.mxu1 %v8027_v63 }
 0x626   : > { %7029 = vmatpush3.bf16.msra.mxu1 %v8580_v11 }
 0x627   : > { %7030 = vmatprep.subr.bf16.mxu1 %v8027_v63 }
 0x62a   : > { %7031 = vmatpush3.bf16.msra.mxu1 %v8587_v12 }
 0x62b   : > { %7032 = vmatprep.subr.bf16.mxu1 %v8027_v63 }
 0x62e   : > { %7033 = vmatpush3.bf16.msra.mxu1 %v8594_v13 }
 0x62f   : > { %7058 = vmatprep.subr.bf16.mxu1 %v8027_v63 }
 0x6d1   : > { %v3230_v31 = vpop.f32.mrf.mxu1 }
 0x6d2   : > { %v3231_v32 = vadd.f32 %v8642_v42, %v3230_v31 }
 0x6d3   : > { %v6996_v35 = vpop.f32.mrf.mxu1 }
 0x6d4   : > { %v3236_v36 = vmul.f32 %v3231_v32, %v8645_v58  ;;  %v3406_v53 = vmul.f32 2.0, %v3231_v32  ;;  %v8772_v32 = vmul.f32 0.16666667, %v8637_v57 }
 0x6d5   : > { %v3233_v37 = vpop.f32.mrf.mxu1 }
 0x6d6   : > { %v3237_v40 = vadd.f32 %v3236_v36, %v8514_v43  ;;  %v3407_v59 = vadd.f32 %v3406_v53, %v8648_v60 }
 0x6d7   : > { %v6997_v41 = vpop.f32.mrf.mxu1 }
 0x6d8   : > { %v3238_v44 = vpack.c.bf16 %v3237_v40, %v3237_v40 }
 0x6da   : > { %7015 = vmatmul.mubr.bf16.vlgmr.msra.gmra.mxu0 %v3238_v44 }
 0x6db   : > { %7039 = vmatpush3.bf16.msra.mxu0 %v8419_v20  ;;  %7054 = vmatprep.mubr.msk.bf16.mxu0 %vm8028_vm0, %v8027_v63 }
 0x6dc   : > { %7040 = vmatprep.subr.bf16.mxu0 %v8027_v63 }
 0x6df   : > { %7041 = vmatpush3.bf16.msra.mxu0 %v8425_v21 }
 0x6e0   : > { %7042 = vmatprep.subr.bf16.mxu0 %v8027_v63 }
 0x6e3   : > { %7043 = vmatpush3.bf16.msra.mxu0 %v8432_v22 }
 0x6e4   : > { %7044 = vmatprep.subr.bf16.mxu0 %v8027_v63 }
 0x6e7   : > { %7045 = vmatpush3.bf16.msra.mxu0 %v8439_v23 }
 0x6e8   : > { %7046 = vmatprep.subr.bf16.mxu0 %v8027_v63 }
 0x6eb   : > { %7047 = vmatpush3.bf16.msra.mxu0 %v8446_v24 }
 0x6ec   : > { %7048 = vmatprep.subr.bf16.mxu0 %v8027_v63 }
 0x6ef   : > { %7049 = vmatpush3.bf16.msra.mxu0 %v8453_v25 }
 0x6f0   : > { %7050 = vmatprep.subr.bf16.mxu0 %v8027_v63 }
 0x6f3   : > { %7051 = vmatpush3.bf16.msra.mxu0 %v8460_v26 }
 0x6f4   : > { %7052 = vmatprep.subr.bf16.mxu0 %v8027_v63 }
 0x6f7   : > { %7053 = vmatpush3.bf16.msra.mxu0 %v8500_v38 }
 0x6f8   : > { %7078 = vmatprep.subr.bf16.mxu0 %v8027_v63 }
 0x79a   : > { %v3273_v45 = vpop.f32.mrf.mxu0 }
 0x79b   : > { %v3274_v46 = vadd.f32 %v8614_v48, %v3273_v45 }
 0x79c   : > { %v7016_v47 = vpop.f32.mrf.mxu0 }
 0x79d   : > { %7951 = vtanh.f32 %v3274_v46 }
 0x79e   : > { %v3276_v49 = vpop.f32.mrf.mxu0 }
 0x7a0   : > { %v7017_v50 = vpop.f32.mrf.mxu0 }
 0x7aa   : > { %v7952_v51 = vpop.eup %7951 }
 0x7ab   : > { %v3280_v52 = vpack.c.bf16 %v7952_v51, %v7952_v51 }
 0x7ad   : > { %7035 = vmatmul.mubr.bf16.vlgmr.msra.gmra.mxu1 %v3280_v52 }
 0x7ae   : > { %7059 = vmatpush3.bf16.msra.mxu1 %v8507_v39  ;;  %7074 = vmatprep.mubr.msk.bf16.mxu1 %vm8028_vm0, %v8027_v63 }
 0x7af   : > { %7060 = vmatprep.subr.bf16.mxu1 %v8027_v63 }
 0x7b2   : > { %7061 = vmatpush3.bf16.msra.mxu1 %v8552_v7 }
 0x7b3   : > { %7062 = vmatprep.subr.bf16.mxu1 %v8027_v63 }
 0x7b6   : > { %7063 = vmatpush3.bf16.msra.mxu1 %v8558_v8 }
 0x7b7   : > { %7064 = vmatprep.subr.bf16.mxu1 %v8027_v63 }
 0x7ba   : > { %7065 = vmatpush3.bf16.msra.mxu1 %v8565_v9 }
 0x7bb   : > { %7066 = vmatprep.subr.bf16.mxu1 %v8027_v63 }
 0x7be   : > { %7067 = vmatpush3.bf16.msra.mxu1 %v8573_v10 }
 0x7bf   : > { %7068 = vmatprep.subr.bf16.mxu1 %v8027_v63 }
 0x7c2   : > { %7069 = vmatpush3.bf16.msra.mxu1 %v8580_v11 }
 0x7c3   : > { %7070 = vmatprep.subr.bf16.mxu1 %v8027_v63 }
 0x7c6   : > { %7071 = vmatpush3.bf16.msra.mxu1 %v8587_v12 }
 0x7c7   : > { %7072 = vmatprep.subr.bf16.mxu1 %v8027_v63 }
 0x7ca   : > { %7073 = vmatpush3.bf16.msra.mxu1 %v8594_v13 }
 0x7cb   : > { %7098 = vmatprep.subr.bf16.mxu1 %v8027_v63 }
 0x86d   : > { %v3315_v54 = vpop.f32.mrf.mxu1 }
 0x86e   : > { %v3316_v55 = vadd.f32 %v8642_v42, %v3315_v54 }
 0x86f   : > { %v7036_v56 = vpop.f32.mrf.mxu1 }
 0x870   : > { %v3321_v61 = vmul.f32 %v3316_v55, %v8637_v57  ;;  %v3408_v62 = vmul.f32 2.0, %v3316_v55 }
 0x871   : > { %v3318_v0 = vpop.f32.mrf.mxu1 }
 0x872   : > { %v3322_v1 = vadd.f32 %v3321_v61, %v8514_v43  ;;  %v3409_v2 = vadd.f32 %v3408_v62, %v3407_v59 }
 0x873   : > { %v7037_v3 = vpop.f32.mrf.mxu1 }
 0x874   : > { %v3323_v4 = vpack.c.bf16 %v3322_v1, %v3322_v1 }
 0x876   : > { %7055 = vmatmul.mubr.bf16.vlgmr.msra.gmra.mxu0 %v3323_v4 }
 0x877   : > { %7079 = vmatpush3.bf16.msra.mxu0 %v8419_v20  ;;  %7094 = vmatprep.mubr.msk.bf16.mxu0 %vm8028_vm0, %v8027_v63 }
 0x878   : > { %7080 = vmatprep.subr.bf16.mxu0 %v8027_v63 }
 0x87b   : > { %7081 = vmatpush3.bf16.msra.mxu0 %v8425_v21 }
 0x87c   : > { %7082 = vmatprep.subr.bf16.mxu0 %v8027_v63 }
 0x87f   : > { %7083 = vmatpush3.bf16.msra.mxu0 %v8432_v22 }
 0x880   : > { %7084 = vmatprep.subr.bf16.mxu0 %v8027_v63 }
 0x883   : > { %7085 = vmatpush3.bf16.msra.mxu0 %v8439_v23 }
 0x884   : > { %7086 = vmatprep.subr.bf16.mxu0 %v8027_v63 }
 0x887   : > { %7087 = vmatpush3.bf16.msra.mxu0 %v8446_v24 }
 0x888   : > { %7088 = vmatprep.subr.bf16.mxu0 %v8027_v63 }
 0x88b   : > { %7089 = vmatpush3.bf16.msra.mxu0 %v8453_v25 }
 0x88c   : > { %7090 = vmatprep.subr.bf16.mxu0 %v8027_v63 }
 0x88f   : > { %7091 = vmatpush3.bf16.msra.mxu0 %v8460_v26 }
 0x890   : > { %7092 = vmatprep.subr.bf16.mxu0 %v8027_v63 }
 0x893   : > { %7093 = vmatpush3.bf16.msra.mxu0 %v8500_v38 }
 0x894   : > { %7118 = vmatprep.subr.bf16.mxu0 %v8027_v63 }
 0x936   : > { %v3358_v60 = vpop.f32.mrf.mxu0 }
 0x937   : > { %v3359_v5 = vadd.f32 %v8614_v48, %v3358_v60 }
 0x938   : > { %v7056_v16 = vpop.f32.mrf.mxu0 }
 0x939   : > { %7953 = vtanh.f32 %v3359_v5 }
 0x93a   : > { %v3361_v17 = vpop.f32.mrf.mxu0 }
 0x93c   : > { %v7057_v18 = vpop.f32.mrf.mxu0 }
 0x946   : > { %v7954_v19 = vpop.eup %7953 }
 0x947   : > { %v3365_v28 = vpack.c.bf16 %v7954_v19, %v7954_v19 }
 0x949   : > { %7075 = vmatmul.mubr.bf16.vlgmr.msra.gmra.mxu1 %v3365_v28 }
 0x94a   : > { %7099 = vmatpush3.bf16.msra.mxu1 %v8507_v39  ;;  %7114 = vmatprep.mubr.msk.bf16.mxu1 %vm8028_vm0, %v8027_v63 }
 0x94b   : > { %7100 = vmatprep.subr.bf16.mxu1 %v8027_v63 }
 0x94e   : > { %7101 = vmatpush3.bf16.msra.mxu1 %v8552_v7 }
 0x94f   : > { %7102 = vmatprep.subr.bf16.mxu1 %v8027_v63 }
 0x952   : > { %7103 = vmatpush3.bf16.msra.mxu1 %v8558_v8 }
 0x953   : > { %7104 = vmatprep.subr.bf16.mxu1 %v8027_v63 }
 0x956   : > { %7105 = vmatpush3.bf16.msra.mxu1 %v8565_v9 }
 0x957   : > { %7106 = vmatprep.subr.bf16.mxu1 %v8027_v63 }
 0x95a   : > { %7107 = vmatpush3.bf16.msra.mxu1 %v8573_v10 }
 0x95b   : > { %7108 = vmatprep.subr.bf16.mxu1 %v8027_v63 }
 0x95e   : > { %7109 = vmatpush3.bf16.msra.mxu1 %v8580_v11 }
 0x95f   : > { %7110 = vmatprep.subr.bf16.mxu1 %v8027_v63 }
 0x962   : > { %7111 = vmatpush3.bf16.msra.mxu1 %v8587_v12 }
 0x963   : > { %7112 = vmatprep.subr.bf16.mxu1 %v8027_v63 }
 0x966   : > { %7113 = vmatpush3.bf16.msra.mxu1 %v8594_v13 }
 0x967   : > { %7138 = vmatprep.subr.bf16.mxu1 %v8027_v63 }
 0xa09   : > { %v3400_v31 = vpop.f32.mrf.mxu1 }
 0xa0a   : > { %v3401_v35 = vadd.f32 %v8642_v42, %v3400_v31 }
 0xa0b   : > { %v7076_v36 = vpop.f32.mrf.mxu1 }
 0xa0c   : > { %v3410_v37 = vadd.f32 %v3409_v2, %v3401_v35 }
 0xa0d   : > { %v3403_v40 = vpop.f32.mrf.mxu1 }
 0xa0e   : > { %v3411_v41 = vmul.f32 %v3410_v37, %v8772_v32 }
 0xa0f   : > { %v7077_v44 = vpop.f32.mrf.mxu1 }
 0xa10   : > { %v8777_v45 = vadd.f32 %v3411_v41, %v8514_v43 }
 0xa12   : > { %v3413_v46 = vpack.c.bf16 %v8777_v45, %v8777_v45 }
 0xa14   : > { %7095 = vmatmul.mubr.bf16.vlgmr.msra.gmra.mxu0 %v3413_v46 }
 0xa15   : > { %7119 = vmatpush3.bf16.msra.mxu0 %v8419_v20  ;;  %7134 = vmatprep.mubr.msk.bf16.mxu0 %vm8028_vm0, %v8027_v63 }
 0xa16   : > { %7120 = vmatprep.subr.bf16.mxu0 %v8027_v63 }
 0xa19   : > { %7121 = vmatpush3.bf16.msra.mxu0 %v8425_v21 }
 0xa1a   : > { %7122 = vmatprep.subr.bf16.mxu0 %v8027_v63 }
 0xa1d   : > { %7123 = vmatpush3.bf16.msra.mxu0 %v8432_v22 }
 0xa1e   : > { %7124 = vmatprep.subr.bf16.mxu0 %v8027_v63 }
 0xa21   : > { %7125 = vmatpush3.bf16.msra.mxu0 %v8439_v23 }
 0xa22   : > { %7126 = vmatprep.subr.bf16.mxu0 %v8027_v63 }
 0xa25   : > { %7127 = vmatpush3.bf16.msra.mxu0 %v8446_v24 }
 0xa26   : > { %7128 = vmatprep.subr.bf16.mxu0 %v8027_v63 }
 0xa29   : > { %7129 = vmatpush3.bf16.msra.mxu0 %v8453_v25 }
 0xa2a   : > { %7130 = vmatprep.subr.bf16.mxu0 %v8027_v63 }
 0xa2d   : > { %7131 = vmatpush3.bf16.msra.mxu0 %v8460_v26 }
 0xa2e   : > { %7132 = vmatprep.subr.bf16.mxu0 %v8027_v63 }
 0xa31   : > { %7133 = vmatpush3.bf16.msra.mxu0 %v8500_v38 }
 0xa32   : > { %7158 = vmatprep.subr.bf16.mxu0 %v8027_v63 }
 0xad4   : > { %v3448_v47 = vpop.f32.mrf.mxu0 }
 0xad5   : > { %v3449_v49 = vadd.f32 %v8614_v48, %v3448_v47 }
 0xad6   : > { %v7096_v50 = vpop.f32.mrf.mxu0 }
 0xad7   : > { %7955 = vtanh.f32 %v3449_v49 }
 0xad8   : > { %v3451_v51 = vpop.f32.mrf.mxu0 }
 0xada   : > { %v7097_v52 = vpop.f32.mrf.mxu0 }
 0xae4   : > { %v7956_v53 = vpop.eup %7955 }
 0xae5   : > { %v3455_v54 = vpack.c.bf16 %v7956_v53, %v7956_v53 }
 0xae7   : > { %7115 = vmatmul.mubr.bf16.vlgmr.msra.gmra.mxu1 %v3455_v54 }
 0xae8   : > { %7139 = vmatpush3.bf16.msra.mxu1 %v8507_v39  ;;  %7154 = vmatprep.mubr.msk.bf16.mxu1 %vm8028_vm0, %v8027_v63 }
 0xae9   : > { %7140 = vmatprep.subr.bf16.mxu1 %v8027_v63 }
 0xaec   : > { %7141 = vmatpush3.bf16.msra.mxu1 %v8552_v7 }
 0xaed   : > { %7142 = vmatprep.subr.bf16.mxu1 %v8027_v63 }
 0xaf0   : > { %7143 = vmatpush3.bf16.msra.mxu1 %v8558_v8 }
 0xaf1   : > { %7144 = vmatprep.subr.bf16.mxu1 %v8027_v63 }
 0xaf4   : > { %7145 = vmatpush3.bf16.msra.mxu1 %v8565_v9 }
 0xaf5   : > { %7146 = vmatprep.subr.bf16.mxu1 %v8027_v63 }
 0xaf8   : > { %7147 = vmatpush3.bf16.msra.mxu1 %v8573_v10 }
 0xaf9   : > { %7148 = vmatprep.subr.bf16.mxu1 %v8027_v63 }
 0xafc   : > { %7149 = vmatpush3.bf16.msra.mxu1 %v8580_v11 }
 0xafd   : > { %7150 = vmatprep.subr.bf16.mxu1 %v8027_v63 }
 0xb00   : > { %7151 = vmatpush3.bf16.msra.mxu1 %v8587_v12 }
 0xb01   : > { %7152 = vmatprep.subr.bf16.mxu1 %v8027_v63 }
 0xb04   : > { %7153 = vmatpush3.bf16.msra.mxu1 %v8594_v13 }
 0xb05   : > { %7178 = vmatprep.subr.bf16.mxu1 %v8027_v63 }
 0xba7   : > { %v3490_v55 = vpop.f32.mrf.mxu1 }
 0xba8   : > { %v8819_v56 = vadd.f32 %v8642_v42, %v3490_v55 }
 0xba9   : > { %v7116_v59 = vpop.f32.mrf.mxu1 }
 0xbaa   : > { %v3496_v61 = vmul.f32 %v8819_v56, %v8645_v58 }
 0xbab   : > { %v3493_v62 = vpop.f32.mrf.mxu1 }
 0xbac   : > { %v3497_v0 = vadd.f32 %v3496_v61, %v8777_v45  ;;  %v8908_v62 = vld [vmem:[%s9545_s9 + $0x38] sm:$0xff]  }
 0xbad   : > { %v7117_v1 = vpop.f32.mrf.mxu1 }
 0xbae   : > { %v3498_v2 = vpack.c.bf16 %v3497_v0, %v3497_v0  ;;  %v8924_v0 = vld [vmem:[%s9545_s9 + $0x28] sm:$0xff]   ;;  %v8931_v1 = vld [vmem:[%s9545_s9 + $0x20] sm:$0xff]  }
 0xbb0   : > { %7135 = vmatmul.mubr.bf16.vlgmr.msra.gmra.mxu0 %v3498_v2  ;;  %v8938_v2 = vld [vmem:[%s9545_s9 + $0x18] sm:$0xff]  }
 0xbb1   : > { %7159 = vmatpush3.bf16.msra.mxu0 %v8419_v20  ;;  %7174 = vmatprep.mubr.msk.bf16.mxu0 %vm8028_vm0, %v8027_v63 }
 0xbb2   : > { %7160 = vmatprep.subr.bf16.mxu0 %v8027_v63 }
 0xbb5   : > { %7161 = vmatpush3.bf16.msra.mxu0 %v8425_v21 }
 0xbb6   : > { %7162 = vmatprep.subr.bf16.mxu0 %v8027_v63 }
 0xbb9   : > { %7163 = vmatpush3.bf16.msra.mxu0 %v8432_v22 }
 0xbba   : > { %7164 = vmatprep.subr.bf16.mxu0 %v8027_v63 }
 0xbbd   : > { %7165 = vmatpush3.bf16.msra.mxu0 %v8439_v23 }
 0xbbe   : > { %7166 = vmatprep.subr.bf16.mxu0 %v8027_v63 }
 0xbc1   : > { %7167 = vmatpush3.bf16.msra.mxu0 %v8446_v24 }
 0xbc2   : > { %7168 = vmatprep.subr.bf16.mxu0 %v8027_v63 }
 0xbc5   : > { %7169 = vmatpush3.bf16.msra.mxu0 %v8453_v25 }
 0xbc6   : > { %7170 = vmatprep.subr.bf16.mxu0 %v8027_v63 }
 0xbc9   : > { %7171 = vmatpush3.bf16.msra.mxu0 %v8460_v26 }
 0xbca   : > { %7172 = vmatprep.subr.bf16.mxu0 %v8027_v63 }
 0xbcd   : > { %7173 = vmatpush3.bf16.msra.mxu0 %v8500_v38 }
 0xbce   : > { %7198 = vmatprep.subr.bf16.mxu0 %v8027_v63 }
 0xc70   : > { %v3533_v3 = vpop.f32.mrf.mxu0 }
 0xc71   : > { %v3534_v4 = vadd.f32 %v8614_v48, %v3533_v3  ;;  %v8945_v3 = vld [vmem:[%s9545_s9 + $0x10] sm:$0xff]  }
 0xc72   : > { %v7136_v60 = vpop.f32.mrf.mxu0 }
 0xc73   : > { %7957 = vtanh.f32 %v3534_v4  ;;  %v8952_v4 = vld [vmem:[%s9545_s9 + $0x8] sm:$0xff]  }
 0xc74   : > { %v3536_v5 = vpop.f32.mrf.mxu0 }
 0xc76   : > { %v7137_v16 = vpop.f32.mrf.mxu0 }
 0xc80   : > { %v7958_v17 = vpop.eup %7957 }
 0xc81   : > { %v3540_v18 = vpack.c.bf16 %v7958_v17, %v7958_v17 }
 0xc83   : > { %7155 = vmatmul.mubr.bf16.vlgmr.msra.gmra.mxu1 %v3540_v18 }
 0xc84   : > { %7179 = vmatpush3.bf16.msra.mxu1 %v8507_v39  ;;  %7194 = vmatprep.mubr.msk.bf16.mxu1 %vm8028_vm0, %v8027_v63 }
 0xc85   : > { %7180 = vmatprep.subr.bf16.mxu1 %v8027_v63 }
 0xc88   : > { %7181 = vmatpush3.bf16.msra.mxu1 %v8552_v7 }
 0xc89   : > { %7182 = vmatprep.subr.bf16.mxu1 %v8027_v63 }
 0xc8c   : > { %7183 = vmatpush3.bf16.msra.mxu1 %v8558_v8 }
 0xc8d   : > { %7184 = vmatprep.subr.bf16.mxu1 %v8027_v63 }
 0xc90   : > { %7185 = vmatpush3.bf16.msra.mxu1 %v8565_v9 }
 0xc91   : > { %7186 = vmatprep.subr.bf16.mxu1 %v8027_v63 }
 0xc94   : > { %7187 = vmatpush3.bf16.msra.mxu1 %v8573_v10 }
 0xc95   : > { %7188 = vmatprep.subr.bf16.mxu1 %v8027_v63 }
 0xc98   : > { %7189 = vmatpush3.bf16.msra.mxu1 %v8580_v11 }
 0xc99   : > { %7190 = vmatprep.subr.bf16.mxu1 %v8027_v63 }
 0xc9c   : > { %7191 = vmatpush3.bf16.msra.mxu1 %v8587_v12 }
 0xc9d   : > { %7192 = vmatprep.subr.bf16.mxu1 %v8027_v63 }
 0xca0   : > { %7193 = vmatpush3.bf16.msra.mxu1 %v8594_v13 }
 0xca1   : > { %7218 = vmatprep.subr.bf16.mxu1 %v8027_v63 }
 0xd43   : > { %v3575_v19 = vpop.f32.mrf.mxu1 }
 0xd44   : > { %v3576_v28 = vadd.f32 %v8642_v42, %v3575_v19 }
 0xd45   : > { %v7156_v31 = vpop.f32.mrf.mxu1 }
 0xd46   : > { %v3581_v35 = vmul.f32 %v3576_v28, %v8645_v58 }
 0xd47   : > { %v3578_v36 = vpop.f32.mrf.mxu1 }
 0xd48   : > { %v3582_v37 = vadd.f32 %v3581_v35, %v8777_v45 }
 0xd49   : > { %v7157_v40 = vpop.f32.mrf.mxu1 }
 0xd4a   : > { %v3583_v41 = vpack.c.bf16 %v3582_v37, %v3582_v37 }
 0xd4c   : > { %7175 = vmatmul.mubr.bf16.vlgmr.msra.gmra.mxu0 %v3583_v41 }
 0xd4d   : > { %7199 = vmatpush3.bf16.msra.mxu0 %v8419_v20  ;;  %7214 = vmatprep.mubr.msk.bf16.mxu0 %vm8028_vm0, %v8027_v63 }
 0xd4e   : > { %7200 = vmatprep.subr.bf16.mxu0 %v8027_v63 }
 0xd51   : > { %7201 = vmatpush3.bf16.msra.mxu0 %v8425_v21 }
 0xd52   : > { %7202 = vmatprep.subr.bf16.mxu0 %v8027_v63 }
 0xd55   : > { %7203 = vmatpush3.bf16.msra.mxu0 %v8432_v22 }
 0xd56   : > { %7204 = vmatprep.subr.bf16.mxu0 %v8027_v63 }
 0xd59   : > { %7205 = vmatpush3.bf16.msra.mxu0 %v8439_v23 }
 0xd5a   : > { %7206 = vmatprep.subr.bf16.mxu0 %v8027_v63 }
 0xd5d   : > { %7207 = vmatpush3.bf16.msra.mxu0 %v8446_v24 }
 0xd5e   : > { %7208 = vmatprep.subr.bf16.mxu0 %v8027_v63 }
 0xd61   : > { %7209 = vmatpush3.bf16.msra.mxu0 %v8453_v25  ;;  %v3751_v25 = vmul.f32 2.0, %v3576_v28 }
 0xd62   : > { %7210 = vmatprep.subr.bf16.mxu0 %v8027_v63 }
 0xd63   : > { %v3752_v50 = vadd.f32 %v3751_v25, %v8819_v56  ;;  %v8917_v56 = vld [vmem:[%s9545_s9 + $0x30] sm:$0xff]  }
 0xd65   : > { %7211 = vmatpush3.bf16.msra.mxu0 %v8460_v26 }
 0xd66   : > { %7212 = vmatprep.subr.bf16.mxu0 %v8027_v63 }
 0xd69   : > { %7213 = vmatpush3.bf16.msra.mxu0 %v8500_v38 }
 0xd6a   : > { %7238 = vmatprep.subr.bf16.mxu0 %v8027_v63 }
 0xe0c   : > { %v3618_v20 = vpop.f32.mrf.mxu0 }
 0xe0d   : > { %v3619_v21 = vadd.f32 %v8614_v48, %v3618_v20 }
 0xe0e   : > { %v7176_v22 = vpop.f32.mrf.mxu0 }
 0xe0f   : > { %7959 = vtanh.f32 %v3619_v21 }
 0xe10   : > { %v3621_v23 = vpop.f32.mrf.mxu0 }
 0xe12   : > { %v7177_v24 = vpop.f32.mrf.mxu0 }
 0xe1c   : > { %v7960_v44 = vpop.eup %7959 }
 0xe1d   : > { %v3625_v46 = vpack.c.bf16 %v7960_v44, %v7960_v44 }
 0xe1f   : > { %7195 = vmatmul.mubr.bf16.vlgmr.msra.gmra.mxu1 %v3625_v46 }
 0xe20   : > { %7219 = vmatpush3.bf16.msra.mxu1 %v8507_v39  ;;  %7234 = vmatprep.mubr.msk.bf16.mxu1 %vm8028_vm0, %v8027_v63 }
 0xe21   : > { %7220 = vmatprep.subr.bf16.mxu1 %v8027_v63 }
 0xe24   : > { %7221 = vmatpush3.bf16.msra.mxu1 %v8552_v7 }
 0xe25   : > { %7222 = vmatprep.subr.bf16.mxu1 %v8027_v63 }
 0xe28   : > { %7223 = vmatpush3.bf16.msra.mxu1 %v8558_v8 }
 0xe29   : > { %7224 = vmatprep.subr.bf16.mxu1 %v8027_v63 }
 0xe2c   : > { %7225 = vmatpush3.bf16.msra.mxu1 %v8565_v9 }
 0xe2d   : > { %7226 = vmatprep.subr.bf16.mxu1 %v8027_v63 }
 0xe30   : > { %7227 = vmatpush3.bf16.msra.mxu1 %v8573_v10 }
 0xe31   : > { %7228 = vmatprep.subr.bf16.mxu1 %v8027_v63 }
 0xe34   : > { %7229 = vmatpush3.bf16.msra.mxu1 %v8580_v11 }
 0xe35   : > { %7230 = vmatprep.subr.bf16.mxu1 %v8027_v63 }
 0xe38   : > { %7231 = vmatpush3.bf16.msra.mxu1 %v8587_v12 }
 0xe39   : > { %7232 = vmatprep.subr.bf16.mxu1 %v8027_v63 }
 0xe3c   : > { %7233 = vmatpush3.bf16.msra.mxu1 %v8594_v13 }
 0xe3d   : > { %7258 = vmatprep.subr.bf16.mxu1 %v8027_v63 }
 0xedf   : > { %v3660_v26 = vpop.f32.mrf.mxu1 }
 0xee0   : > { %v3661_v47 = vadd.f32 %v8642_v42, %v3660_v26  ;;  %v9011_v26 = vld [vmem:[%s9549_s11 + $0x38] sm:$0xff]  }
 0xee1   : > { %v7196_v49 = vpop.f32.mrf.mxu1 }
 0xee2   : > { %v3666_v51 = vmul.f32 %v3661_v47, %v8637_v57  ;;  %v3753_v52 = vmul.f32 2.0, %v3661_v47 }
 0xee3   : > { %v3663_v53 = vpop.f32.mrf.mxu1 }
 0xee4   : > { %v3667_v54 = vadd.f32 %v3666_v51, %v8777_v45  ;;  %v3754_v55 = vadd.f32 %v3753_v52, %v3752_v50 }
 0xee5   : > { %v7197_v59 = vpop.f32.mrf.mxu1 }
 0xee6   : > { %v3668_v61 = vpack.c.bf16 %v3667_v54, %v3667_v54  ;;  %v9063_v59 = vld [vmem:[%s9549_s11 + $0x30] sm:$0xff]  }
 0xee8   : > { %7215 = vmatmul.mubr.bf16.vlgmr.msra.gmra.mxu0 %v3668_v61  ;;  %v9077_v61 = vld [vmem:[%s9549_s11 + $0x20] sm:$0xff]  }
 0xee9   : > { %7239 = vmatpush3.bf16.msra.mxu0 %v8908_v62  ;;  %7254 = vmatprep.mubr.msk.bf16.mxu0 %vm8028_vm0, %v8027_v63 }
 0xeea   : > { %7240 = vmatprep.subr.bf16.mxu0 %v8027_v63 }
 0xeed   : > { %7241 = vmatpush3.bf16.msra.mxu0 %v8917_v56 }
 0xeee   : > { %7242 = vmatprep.subr.bf16.mxu0 %v8027_v63 }
 0xef1   : > { %7243 = vmatpush3.bf16.msra.mxu0 %v8924_v0 }
 0xef2   : > { %7244 = vmatprep.subr.bf16.mxu0 %v8027_v63 }
 0xef5   : > { %7245 = vmatpush3.bf16.msra.mxu0 %v8931_v1 }
 0xef6   : > { %7246 = vmatprep.subr.bf16.mxu0 %v8027_v63 }
 0xef9   : > { %7247 = vmatpush3.bf16.msra.mxu0 %v8938_v2 }
 0xefa   : > { %7248 = vmatprep.subr.bf16.mxu0 %v8027_v63 }
 0xefd   : > { %7249 = vmatpush3.bf16.msra.mxu0 %v8945_v3 }
 0xefe   : > { %7250 = vmatprep.subr.bf16.mxu0 %v8027_v63 }
 0xf01   : > { %7251 = vmatpush3.bf16.msra.mxu0 %v8952_v4 }
 0xf02   : > { %7252 = vmatprep.subr.bf16.mxu0 %v8027_v63 }
 0xf05   : > { %7253 = vmatpush3.bf16.msra.mxu0 %v8500_v38 }
 0xf06   : > { %7278 = vmatprep.subr.bf16.mxu0 %v8027_v63 }
 0xfa8   : > { %v3703_v60 = vpop.f32.mrf.mxu0 }
 0xfa9   : > { %v3704_v5 = vadd.f32 %v8614_v48, %v3703_v60  ;;  %v9084_v60 = vld [vmem:[%s9549_s11 + $0x18] sm:$0xff]  }
 0xfaa   : > { %v7216_v16 = vpop.f32.mrf.mxu0 }
 0xfab   : > { %7961 = vtanh.f32 %v3704_v5  ;;  %v9091_v5 = vld [vmem:[%s9549_s11 + $0x10] sm:$0xff]   ;;  %v9098_v16 = vld [vmem:[%s9549_s11 + $0x8] sm:$0xff]  }
 0xfac   : > { %v3706_v17 = vpop.f32.mrf.mxu0 }
 0xfad   : > { %v9105_v17 = vld [vmem:[%s9549_s11] sm:$0xff]  }
 0xfae   : > { %v7217_v18 = vpop.f32.mrf.mxu0 }
 0xfb8   : > { %v7962_v19 = vpop.eup %7961 }
 0xfb9   : > { %v3710_v28 = vpack.c.bf16 %v7962_v19, %v7962_v19 }
 0xfbb   : > { %7235 = vmatmul.mubr.bf16.vlgmr.msra.gmra.mxu1 %v3710_v28 }
 0xfbc   : > { %7259 = vmatpush3.bf16.msra.mxu1 %v8507_v39  ;;  %7274 = vmatprep.mubr.msk.bf16.mxu1 %vm8028_vm0, %v8027_v63 }
 0xfbd   : > { %7260 = vmatprep.subr.bf16.mxu1 %v8027_v63 }
 0xfc0   : > { %7261 = vmatpush3.bf16.msra.mxu1 %v8552_v7 }
 0xfc1   : > { %7262 = vmatprep.subr.bf16.mxu1 %v8027_v63 }
 0xfc4   : > { %7263 = vmatpush3.bf16.msra.mxu1 %v8558_v8 }
 0xfc5   : > { %7264 = vmatprep.subr.bf16.mxu1 %v8027_v63 }
 0xfc8   : > { %7265 = vmatpush3.bf16.msra.mxu1 %v8565_v9 }
 0xfc9   : > { %7266 = vmatprep.subr.bf16.mxu1 %v8027_v63 }
 0xfcc   : > { %7267 = vmatpush3.bf16.msra.mxu1 %v8573_v10 }
 0xfcd   : > { %7268 = vmatprep.subr.bf16.mxu1 %v8027_v63 }
 0xfd0   : > { %7269 = vmatpush3.bf16.msra.mxu1 %v8580_v11 }
 0xfd1   : > { %7270 = vmatprep.subr.bf16.mxu1 %v8027_v63 }
 0xfd4   : > { %7271 = vmatpush3.bf16.msra.mxu1 %v8587_v12 }
 0xfd5   : > { %7272 = vmatprep.subr.bf16.mxu1 %v8027_v63 }
 0xfd8   : > { %7273 = vmatpush3.bf16.msra.mxu1 %v8594_v13 }
 0xfd9   : > { %7298 = vmatprep.subr.bf16.mxu1 %v8027_v63 }
0x107b   : > { %v3745_v38 = vpop.f32.mrf.mxu1 }
0x107c   : > { %v3746_v39 = vadd.f32 %v8642_v42, %v3745_v38 }
0x107d   : > { %v7236_v31 = vpop.f32.mrf.mxu1 }
0x107e   : > { %v3755_v35 = vadd.f32 %v3754_v55, %v3746_v39 }
0x107f   : > { %v3748_v36 = vpop.f32.mrf.mxu1 }
0x1080   : > { %v3756_v37 = vmul.f32 %v3755_v35, %v8772_v32 }
0x1081   : > { %v7237_v40 = vpop.f32.mrf.mxu1 }
0x1082   : > { %v8980_v41 = vadd.f32 %v3756_v37, %v8777_v45  ;;  %v9003_v45 = vld [vmem:[%s9545_s9] sm:$0xff]  }
0x1083   : > { %v9133_v37 = vld [vmem:[%s9551_s10] ss:$0 sm:$0xff] }
0x1084   : > { %v3758_v20 = vpack.c.bf16 %v8980_v41, %v8980_v41 }
0x1086   : > { %7255 = vmatmul.mubr.bf16.vlgmr.msra.gmra.mxu0 %v3758_v20 }
0x1087   : > { %7279 = vmatpush3.bf16.msra.mxu0 %v8908_v62  ;;  %7294 = vmatprep.mubr.msk.bf16.mxu0 %vm8028_vm0, %v8027_v63 }
0x1088   : > { %7280 = vmatprep.subr.bf16.mxu0 %v8027_v63 }
0x108b   : > { %7281 = vmatpush3.bf16.msra.mxu0 %v8917_v56 }
0x108c   : > { %7282 = vmatprep.subr.bf16.mxu0 %v8027_v63 }
0x108f   : > { %7283 = vmatpush3.bf16.msra.mxu0 %v8924_v0 }
0x1090   : > { %7284 = vmatprep.subr.bf16.mxu0 %v8027_v63 }
0x1093   : > { %7285 = vmatpush3.bf16.msra.mxu0 %v8931_v1 }
0x1094   : > { %7286 = vmatprep.subr.bf16.mxu0 %v8027_v63 }
0x1097   : > { %7287 = vmatpush3.bf16.msra.mxu0 %v8938_v2 }
0x1098   : > { %7288 = vmatprep.subr.bf16.mxu0 %v8027_v63 }
0x109b   : > { %7289 = vmatpush3.bf16.msra.mxu0 %v8945_v3 }
0x109c   : > { %7290 = vmatprep.subr.bf16.mxu0 %v8027_v63 }
0x109f   : > { %7291 = vmatpush3.bf16.msra.mxu0 %v8952_v4 }
0x10a0   : > { %7292 = vmatprep.subr.bf16.mxu0 %v8027_v63 }
0x10a3   : > { %7293 = vmatpush3.bf16.msra.mxu0 %v9003_v45 }
0x10a4   : > { %7318 = vmatprep.subr.bf16.mxu0 %v8027_v63 }
0x1146   : > { %v3793_v21 = vpop.f32.mrf.mxu0 }
0x1147   : > { %v3794_v22 = vadd.f32 %v8614_v48, %v3793_v21 }
0x1148   : > { %v7256_v23 = vpop.f32.mrf.mxu0 }
0x1149   : > { %7963 = vtanh.f32 %v3794_v22 }
0x114a   : > { %v3796_v24 = vpop.f32.mrf.mxu0 }
0x114c   : > { %v7257_v44 = vpop.f32.mrf.mxu0 }
0x1156   : > { %v7964_v46 = vpop.eup %7963 }
0x1157   : > { %v3800_v25 = vpack.c.bf16 %v7964_v46, %v7964_v46 }
0x1159   : > { %7275 = vmatmul.mubr.bf16.vlgmr.msra.gmra.mxu1 %v3800_v25  ;;  %v9157_v25 = vld [vmem:[%s9552_s12] ss:$0 sm:$0xff] }
0x115a   : > { %7299 = vmatpush3.bf16.msra.mxu1 %v9011_v26  ;;  %7314 = vmatprep.mubr.msk.bf16.mxu1 %vm8028_vm0, %v8027_v63 }
0x115b   : > { %7300 = vmatprep.subr.bf16.mxu1 %v8027_v63 }
0x115e   : > { %7301 = vmatpush3.bf16.msra.mxu1 %v8552_v7 }
0x115f   : > { %7302 = vmatprep.subr.bf16.mxu1 %v8027_v63 }
0x1162   : > { %7303 = vmatpush3.bf16.msra.mxu1 %v8558_v8 }
0x1163   : > { %7304 = vmatprep.subr.bf16.mxu1 %v8027_v63 }
0x1166   : > { %7305 = vmatpush3.bf16.msra.mxu1 %v8565_v9 }
0x1167   : > { %7306 = vmatprep.subr.bf16.mxu1 %v8027_v63 }
0x116a   : > { %7307 = vmatpush3.bf16.msra.mxu1 %v8573_v10 }
0x116b   : > { %7308 = vmatprep.subr.bf16.mxu1 %v8027_v63 }
0x116e   : > { %7309 = vmatpush3.bf16.msra.mxu1 %v8580_v11 }
0x116f   : > { %7310 = vmatprep.subr.bf16.mxu1 %v8027_v63 }
0x1172   : > { %7311 = vmatpush3.bf16.msra.mxu1 %v8587_v12 }
0x1173   : > { %7312 = vmatprep.subr.bf16.mxu1 %v8027_v63 }
0x1176   : > { %7313 = vmatpush3.bf16.msra.mxu1 %v8594_v13 }
0x1177   : > { %7338 = vmatprep.subr.bf16.mxu1 %v8027_v63 }
0x1219   : > { %v3835_v7 = vpop.f32.mrf.mxu1 }
0x121a   : > { %v9032_v8 = vadd.f32 %v8642_v42, %v3835_v7 }
0x121b   : > { %v7276_v9 = vpop.f32.mrf.mxu1 }
0x121c   : > { %v3841_v10 = vmul.f32 %v9032_v8, %v8645_v58 }
0x121d   : > { %v3838_v47 = vpop.f32.mrf.mxu1 }
0x121e   : > { %v3842_v11 = vadd.f32 %v3841_v10, %v8980_v41 }
0x121f   : > { %v7277_v49 = vpop.f32.mrf.mxu1 }
0x1220   : > { %v3843_v50 = vpack.c.bf16 %v3842_v11, %v3842_v11 }
0x1222   : > { %7295 = vmatmul.mubr.bf16.vlgmr.msra.gmra.mxu0 %v3843_v50 }
0x1223   : > { %7319 = vmatpush3.bf16.msra.mxu0 %v8908_v62  ;;  %7334 = vmatprep.mubr.msk.bf16.mxu0 %vm8028_vm0, %v8027_v63 }
0x1224   : > { %7320 = vmatprep.subr.bf16.mxu0 %v8027_v63 }
0x1227   : > { %7321 = vmatpush3.bf16.msra.mxu0 %v8917_v56 }
0x1228   : > { %7322 = vmatprep.subr.bf16.mxu0 %v8027_v63 }
0x122b   : > { %7323 = vmatpush3.bf16.msra.mxu0 %v8924_v0 }
0x122c   : > { %7324 = vmatprep.subr.bf16.mxu0 %v8027_v63 }
0x122f   : > { %7325 = vmatpush3.bf16.msra.mxu0 %v8931_v1 }
0x1230   : > { %7326 = vmatprep.subr.bf16.mxu0 %v8027_v63 }
0x1233   : > { %7327 = vmatpush3.bf16.msra.mxu0 %v8938_v2 }
0x1234   : > { %7328 = vmatprep.subr.bf16.mxu0 %v8027_v63 }
0x1237   : > { %7329 = vmatpush3.bf16.msra.mxu0 %v8945_v3 }
0x1238   : > { %7330 = vmatprep.subr.bf16.mxu0 %v8027_v63 }
0x123b   : > { %7331 = vmatpush3.bf16.msra.mxu0 %v8952_v4 }
0x123c   : > { %7332 = vmatprep.subr.bf16.mxu0 %v8027_v63 }
0x123f   : > { %7333 = vmatpush3.bf16.msra.mxu0 %v9003_v45 }
0x1240   : > { %7358 = vmatprep.subr.bf16.mxu0 %v8027_v63 }
0x12e2   : > { %v3878_v12 = vpop.f32.mrf.mxu0 }
0x12e3   : > { %v3879_v13 = vadd.f32 %v8614_v48, %v3878_v12  ;;  %v9070_v48 = vld [vmem:[%s9549_s11 + $0x28] sm:$0xff]  }
0x12e4   : > { %v7296_v51 = vpop.f32.mrf.mxu0 }
0x12e5   : > { %7965 = vtanh.f32 %v3879_v13 }
0x12e6   : > { %v3881_v52 = vpop.f32.mrf.mxu0 }
0x12e8   : > { %v7297_v53 = vpop.f32.mrf.mxu0 }
0x12f2   : > { %v7966_v54 = vpop.eup %7965 }
0x12f3   : > { %v3885_v55 = vpack.c.bf16 %v7966_v54, %v7966_v54 }
0x12f5   : > { %7315 = vmatmul.mubr.bf16.vlgmr.msra.gmra.mxu1 %v3885_v55 }
0x12f6   : > { %7339 = vmatpush3.bf16.msra.mxu1 %v9011_v26  ;;  %7354 = vmatprep.mubr.msk.bf16.mxu1 %vm8028_vm0, %v8027_v63 }
0x12f7   : > { %7340 = vmatprep.subr.bf16.mxu1 %v8027_v63 }
0x12fa   : > { %7341 = vmatpush3.bf16.msra.mxu1 %v9063_v59 }
0x12fb   : > { %7342 = vmatprep.subr.bf16.mxu1 %v8027_v63 }
0x12fe   : > { %7343 = vmatpush3.bf16.msra.mxu1 %v9070_v48 }
0x12ff   : > { %7344 = vmatprep.subr.bf16.mxu1 %v8027_v63 }
0x1302   : > { %7345 = vmatpush3.bf16.msra.mxu1 %v9077_v61 }
0x1303   : > { %7346 = vmatprep.subr.bf16.mxu1 %v8027_v63 }
0x1306   : > { %7347 = vmatpush3.bf16.msra.mxu1 %v9084_v60 }
0x1307   : > { %7348 = vmatprep.subr.bf16.mxu1 %v8027_v63 }
0x130a   : > { %7349 = vmatpush3.bf16.msra.mxu1 %v9091_v5 }
0x130b   : > { %7350 = vmatprep.subr.bf16.mxu1 %v8027_v63 }
0x130e   : > { %7351 = vmatpush3.bf16.msra.mxu1 %v9098_v16 }
0x130f   : > { %7352 = vmatprep.subr.bf16.mxu1 %v8027_v63 }
0x1312   : > { %7353 = vmatpush3.bf16.msra.mxu1 %v9105_v17 }
0x1313   : > { %7378 = vmatprep.subr.bf16.mxu1 %v8027_v63 }
0x13b5   : > { %v3920_v18 = vpop.f32.mrf.mxu1 }
0x13b6   : > { %v3921_v19 = vadd.f32 %v8642_v42, %v3920_v18 }
0x13b7   : > { %v7316_v28 = vpop.f32.mrf.mxu1 }
0x13b8   : > { %v3926_v38 = vmul.f32 %v3921_v19, %v8645_v58  ;;  %v4096_v44 = vmul.f32 2.0, %v3921_v19 }
0x13b9   : > { %v3923_v39 = vpop.f32.mrf.mxu1 }
0x13ba   : > { %v3927_v31 = vadd.f32 %v3926_v38, %v8980_v41  ;;  %v4097_v10 = vadd.f32 %v4096_v44, %v9032_v8 }
0x13bb   : > { %v7317_v35 = vpop.f32.mrf.mxu1 }
0x13bc   : > { %v3928_v36 = vpack.c.bf16 %v3927_v31, %v3927_v31 }
0x13be   : > { %7335 = vmatmul.mubr.bf16.vlgmr.msra.gmra.mxu0 %v3928_v36 }
0x13bf   : > { %7359 = vmatpush3.bf16.msra.mxu0 %v8908_v62  ;;  %7374 = vmatprep.mubr.msk.bf16.mxu0 %vm8028_vm0, %v8027_v63 }
0x13c0   : > { %7360 = vmatprep.subr.bf16.mxu0 %v8027_v63 }
0x13c3   : > { %7361 = vmatpush3.bf16.msra.mxu0 %v8917_v56 }
0x13c4   : > { %7362 = vmatprep.subr.bf16.mxu0 %v8027_v63 }
0x13c7   : > { %7363 = vmatpush3.bf16.msra.mxu0 %v8924_v0 }
0x13c8   : > { %7364 = vmatprep.subr.bf16.mxu0 %v8027_v63 }
0x13cb   : > { %7365 = vmatpush3.bf16.msra.mxu0 %v8931_v1 }
0x13cc   : > { %7366 = vmatprep.subr.bf16.mxu0 %v8027_v63 }
0x13cf   : > { %7367 = vmatpush3.bf16.msra.mxu0 %v8938_v2 }
0x13d0   : > { %7368 = vmatprep.subr.bf16.mxu0 %v8027_v63 }
0x13d3   : > { %7369 = vmatpush3.bf16.msra.mxu0 %v8945_v3 }
0x13d4   : > { %7370 = vmatprep.subr.bf16.mxu0 %v8027_v63 }
0x13d7   : > { %7371 = vmatpush3.bf16.msra.mxu0 %v8952_v4 }
0x13d8   : > { %7372 = vmatprep.subr.bf16.mxu0 %v8027_v63 }
0x13db   : > { %7373 = vmatpush3.bf16.msra.mxu0 %v9003_v45 }
0x13dc   : > { %7398 = vmatprep.subr.bf16.mxu0 %v8027_v63 }
0x147e   : > { %v3963_v42 = vpop.f32.mrf.mxu0 }
0x147f   : > { %v3964_v40 = vadd.f32 %v9133_v37, %v3963_v42 }
0x1480   : > { %v7336_v20 = vpop.f32.mrf.mxu0 }
0x1481   : > { %7967 = vtanh.f32 %v3964_v40 }
0x1482   : > { %v3966_v21 = vpop.f32.mrf.mxu0 }
0x1484   : > { %v7337_v22 = vpop.f32.mrf.mxu0 }
0x148e   : > { %v7968_v23 = vpop.eup %7967 }
0x148f   : > { %v3970_v24 = vpack.c.bf16 %v7968_v23, %v7968_v23 }
0x1491   : > { %7355 = vmatmul.mubr.bf16.vlgmr.msra.gmra.mxu1 %v3970_v24 }
0x1492   : > { %7379 = vmatpush3.bf16.msra.mxu1 %v9011_v26  ;;  %7394 = vmatprep.mubr.msk.bf16.mxu1 %vm8028_vm0, %v8027_v63 }
0x1493   : > { %7380 = vmatprep.subr.bf16.mxu1 %v8027_v63 }
0x1496   : > { %7381 = vmatpush3.bf16.msra.mxu1 %v9063_v59 }
0x1497   : > { %7382 = vmatprep.subr.bf16.mxu1 %v8027_v63 }
0x149a   : > { %7383 = vmatpush3.bf16.msra.mxu1 %v9070_v48 }
0x149b   : > { %7384 = vmatprep.subr.bf16.mxu1 %v8027_v63 }
0x149e   : > { %7385 = vmatpush3.bf16.msra.mxu1 %v9077_v61 }
0x149f   : > { %7386 = vmatprep.subr.bf16.mxu1 %v8027_v63 }
0x14a2   : > { %7387 = vmatpush3.bf16.msra.mxu1 %v9084_v60 }
0x14a3   : > { %7388 = vmatprep.subr.bf16.mxu1 %v8027_v63 }
0x14a6   : > { %7389 = vmatpush3.bf16.msra.mxu1 %v9091_v5 }
0x14a7   : > { %7390 = vmatprep.subr.bf16.mxu1 %v8027_v63 }
0x14aa   : > { %7391 = vmatpush3.bf16.msra.mxu1 %v9098_v16 }
0x14ab   : > { %7392 = vmatprep.subr.bf16.mxu1 %v8027_v63 }
0x14ae   : > { %7393 = vmatpush3.bf16.msra.mxu1 %v9105_v17 }
0x14af   : > { %7418 = vmatprep.subr.bf16.mxu1 %v8027_v63 }
0x1551   : > { %v4005_v46 = vpop.f32.mrf.mxu1 }
0x1552   : > { %v4006_v7 = vadd.f32 %v9157_v25, %v4005_v46 }
0x1553   : > { %v7356_v9 = vpop.f32.mrf.mxu1 }
0x1554   : > { %v4011_v47 = vmul.f32 %v4006_v7, %v8637_v57  ;;  %v4098_v11 = vmul.f32 2.0, %v4006_v7 }
0x1555   : > { %v4008_v49 = vpop.f32.mrf.mxu1 }
0x1556   : > { %v4012_v50 = vadd.f32 %v4011_v47, %v8980_v41  ;;  %v4099_v12 = vadd.f32 %v4098_v11, %v4097_v10 }
0x1557   : > { %v7357_v13 = vpop.f32.mrf.mxu1 }
0x1558   : > { %v4013_v51 = vpack.c.bf16 %v4012_v50, %v4012_v50 }
0x155a   : > { %7375 = vmatmul.mubr.bf16.vlgmr.msra.gmra.mxu0 %v4013_v51 }
0x155b   : > { %7399 = vmatpush3.bf16.msra.mxu0 %v8908_v62  ;;  %7414 = vmatprep.mubr.msk.bf16.mxu0 %vm8028_vm0, %v8027_v63 }
0x155c   : > { %7400 = vmatprep.subr.bf16.mxu0 %v8027_v63 }
0x155f   : > { %7401 = vmatpush3.bf16.msra.mxu0 %v8917_v56 }
0x1560   : > { %7402 = vmatprep.subr.bf16.mxu0 %v8027_v63 }
0x1563   : > { %7403 = vmatpush3.bf16.msra.mxu0 %v8924_v0 }
0x1564   : > { %7404 = vmatprep.subr.bf16.mxu0 %v8027_v63 }
0x1567   : > { %7405 = vmatpush3.bf16.msra.mxu0 %v8931_v1 }
0x1568   : > { %7406 = vmatprep.subr.bf16.mxu0 %v8027_v63 }
0x156b   : > { %7407 = vmatpush3.bf16.msra.mxu0 %v8938_v2 }
0x156c   : > { %7408 = vmatprep.subr.bf16.mxu0 %v8027_v63 }
0x156f   : > { %7409 = vmatpush3.bf16.msra.mxu0 %v8945_v3 }
0x1570   : > { %7410 = vmatprep.subr.bf16.mxu0 %v8027_v63 }
0x1573   : > { %7411 = vmatpush3.bf16.msra.mxu0 %v8952_v4 }
0x1574   : > { %7412 = vmatprep.subr.bf16.mxu0 %v8027_v63 }
0x1577   : > { %7413 = vmatpush3.bf16.msra.mxu0 %v9003_v45 }
0x1578   : > { %7438 = vmatprep.subr.bf16.mxu0 %v8027_v63 }
0x161a   : > { %v4048_v8 = vpop.f32.mrf.mxu0 }
0x161b   : > { %v4049_v52 = vadd.f32 %v9133_v37, %v4048_v8 }
0x161c   : > { %v7376_v53 = vpop.f32.mrf.mxu0 }
0x161d   : > { %7969 = vtanh.f32 %v4049_v52 }
0x161e   : > { %v4051_v54 = vpop.f32.mrf.mxu0 }
0x1620   : > { %v7377_v55 = vpop.f32.mrf.mxu0 }
0x162a   : > { %v7970_v18 = vpop.eup %7969 }
0x162b   : > { %v4055_v19 = vpack.c.bf16 %v7970_v18, %v7970_v18 }
0x162d   : > { %7395 = vmatmul.mubr.bf16.vlgmr.msra.gmra.mxu1 %v4055_v19 }
0x162e   : > { %7419 = vmatpush3.bf16.msra.mxu1 %v9011_v26  ;;  %7434 = vmatprep.mubr.msk.bf16.mxu1 %vm8028_vm0, %v8027_v63 }
0x162f   : > { %7420 = vmatprep.subr.bf16.mxu1 %v8027_v63 }
0x1632   : > { %7421 = vmatpush3.bf16.msra.mxu1 %v9063_v59 }
0x1633   : > { %7422 = vmatprep.subr.bf16.mxu1 %v8027_v63 }
0x1636   : > { %7423 = vmatpush3.bf16.msra.mxu1 %v9070_v48 }
0x1637   : > { %7424 = vmatprep.subr.bf16.mxu1 %v8027_v63 }
0x163a   : > { %7425 = vmatpush3.bf16.msra.mxu1 %v9077_v61 }
0x163b   : > { %7426 = vmatprep.subr.bf16.mxu1 %v8027_v63 }
0x163e   : > { %7427 = vmatpush3.bf16.msra.mxu1 %v9084_v60 }
0x163f   : > { %7428 = vmatprep.subr.bf16.mxu1 %v8027_v63 }
0x1642   : > { %7429 = vmatpush3.bf16.msra.mxu1 %v9091_v5 }
0x1643   : > { %7430 = vmatprep.subr.bf16.mxu1 %v8027_v63 }
0x1646   : > { %7431 = vmatpush3.bf16.msra.mxu1 %v9098_v16 }
0x1647   : > { %7432 = vmatprep.subr.bf16.mxu1 %v8027_v63 }
0x164a   : > { %7433 = vmatpush3.bf16.msra.mxu1 %v9105_v17 }
0x164b   : > { %7458 = vmatprep.subr.bf16.mxu1 %v8027_v63 }
0x16ed   : > { %v4090_v28 = vpop.f32.mrf.mxu1 }
0x16ee   : > { %v4091_v38 = vadd.f32 %v9157_v25, %v4090_v28 }
0x16ef   : > { %v7396_v39 = vpop.f32.mrf.mxu1 }
0x16f0   : > { %v4100_v31 = vadd.f32 %v4099_v12, %v4091_v38 }
0x16f1   : > { %v4093_v35 = vpop.f32.mrf.mxu1 }
0x16f2   : > { %v4101_v36 = vmul.f32 %v4100_v31, %v8772_v32 }
0x16f3   : > { %v7397_v42 = vpop.f32.mrf.mxu1 }
0x16f4   : > { %v9203_v40 = vadd.f32 %v4101_v36, %v8980_v41 }
0x16f6   : > { %v4103_v20 = vpack.c.bf16 %v9203_v40, %v9203_v40 }
0x16f8   : > { %7415 = vmatmul.mubr.bf16.vlgmr.msra.gmra.mxu0 %v4103_v20 }
0x16f9   : > { %7439 = vmatpush3.bf16.msra.mxu0 %v8908_v62  ;;  %7454 = vmatprep.mubr.msk.bf16.mxu0 %vm8028_vm0, %v8027_v63 }
0x16fa   : > { %7440 = vmatprep.subr.bf16.mxu0 %v8027_v63 }
0x16fd   : > { %7441 = vmatpush3.bf16.msra.mxu0 %v8917_v56 }
0x16fe   : > { %7442 = vmatprep.subr.bf16.mxu0 %v8027_v63 }
0x1701   : > { %7443 = vmatpush3.bf16.msra.mxu0 %v8924_v0 }
0x1702   : > { %7444 = vmatprep.subr.bf16.mxu0 %v8027_v63 }
0x1705   : > { %7445 = vmatpush3.bf16.msra.mxu0 %v8931_v1 }
0x1706   : > { %7446 = vmatprep.subr.bf16.mxu0 %v8027_v63 }
0x1709   : > { %7447 = vmatpush3.bf16.msra.mxu0 %v8938_v2 }
0x170a   : > { %7448 = vmatprep.subr.bf16.mxu0 %v8027_v63 }
0x170d   : > { %7449 = vmatpush3.bf16.msra.mxu0 %v8945_v3 }
0x170e   : > { %7450 = vmatprep.subr.bf16.mxu0 %v8027_v63 }
0x1711   : > { %7451 = vmatpush3.bf16.msra.mxu0 %v8952_v4 }
0x1712   : > { %7452 = vmatprep.subr.bf16.mxu0 %v8027_v63 }
0x1715   : > { %7453 = vmatpush3.bf16.msra.mxu0 %v9003_v45 }
0x1716   : > { %7478 = vmatprep.subr.bf16.mxu0 %v8027_v63 }
0x17b8   : > { %v4138_v41 = vpop.f32.mrf.mxu0 }
0x17b9   : > { %v4139_v21 = vadd.f32 %v9133_v37, %v4138_v41 }
0x17ba   : > { %v7416_v22 = vpop.f32.mrf.mxu0 }
0x17bb   : > { %7971 = vtanh.f32 %v4139_v21  ;;  %v4450_v21 = vadd.s32 2, %v8157_v34 }
0x17bc   : > { %v4141_v23 = vpop.f32.mrf.mxu0 }
0x17bd   : > { %v4455_v22 = vand.u32 3, %v4450_v21 }
0x17be   : > { %v7417_v24 = vpop.f32.mrf.mxu0 }
0x17c8   : > { %v7972_v44 = vpop.eup %7971 }
0x17c9   : > { %v4145_v46 = vpack.c.bf16 %v7972_v44, %v7972_v44 }
0x17cb   : > { %7435 = vmatmul.mubr.bf16.vlgmr.msra.gmra.mxu1 %v4145_v46 }
0x17cc   : > { %7459 = vmatpush3.bf16.msra.mxu1 %v9011_v26  ;;  %7474 = vmatprep.mubr.msk.bf16.mxu1 %vm8028_vm0, %v8027_v63 }
0x17cd   : > { %7460 = vmatprep.subr.bf16.mxu1 %v8027_v63 }
0x17d0   : > { %7461 = vmatpush3.bf16.msra.mxu1 %v9063_v59 }
0x17d1   : > { %7462 = vmatprep.subr.bf16.mxu1 %v8027_v63 }
0x17d4   : > { %7463 = vmatpush3.bf16.msra.mxu1 %v9070_v48 }
0x17d5   : > { %7464 = vmatprep.subr.bf16.mxu1 %v8027_v63 }
0x17d8   : > { %7465 = vmatpush3.bf16.msra.mxu1 %v9077_v61 }
0x17d9   : > { %7466 = vmatprep.subr.bf16.mxu1 %v8027_v63 }
0x17dc   : > { %7467 = vmatpush3.bf16.msra.mxu1 %v9084_v60 }
0x17dd   : > { %7468 = vmatprep.subr.bf16.mxu1 %v8027_v63 }
0x17e0   : > { %7469 = vmatpush3.bf16.msra.mxu1 %v9091_v5 }
0x17e1   : > { %7470 = vmatprep.subr.bf16.mxu1 %v8027_v63 }
0x17e4   : > { %7471 = vmatpush3.bf16.msra.mxu1 %v9098_v16 }
0x17e5   : > { %7472 = vmatprep.subr.bf16.mxu1 %v8027_v63 }
0x17e8   : > { %7473 = vmatpush3.bf16.msra.mxu1 %v9105_v17 }
0x17e9   : > { %7498 = vmatprep.subr.bf16.mxu1 %v8027_v63 }
0x188b   : > { %v4180_v7 = vpop.f32.mrf.mxu1 }
0x188c   : > { %v9245_v9 = vadd.f32 %v9157_v25, %v4180_v7 }
0x188d   : > { %v7436_v10 = vpop.f32.mrf.mxu1 }
0x188e   : > { %v4186_v47 = vmul.f32 %v9245_v9, %v8645_v58 }
0x188f   : > { %v4183_v11 = vpop.f32.mrf.mxu1 }
0x1890   : > { %v4187_v49 = vadd.f32 %v4186_v47, %v9203_v40 }
0x1891   : > { %v7437_v50 = vpop.f32.mrf.mxu1 }
0x1892   : > { %v4188_v12 = vpack.c.bf16 %v4187_v49, %v4187_v49 }
0x1894   : > { %7455 = vmatmul.mubr.bf16.vlgmr.msra.gmra.mxu0 %v4188_v12 }
0x1895   : > { %7479 = vmatpush3.bf16.msra.mxu0 %v8908_v62  ;;  %7494 = vmatprep.mubr.msk.bf16.mxu0 %vm8028_vm0, %v8027_v63 }
0x1896   : > { %7480 = vmatprep.subr.bf16.mxu0 %v8027_v63 }
0x1899   : > { %7481 = vmatpush3.bf16.msra.mxu0 %v8917_v56 }
0x189a   : > { %7482 = vmatprep.subr.bf16.mxu0 %v8027_v63 }
0x189d   : > { %7483 = vmatpush3.bf16.msra.mxu0 %v8924_v0 }
0x189e   : > { %7484 = vmatprep.subr.bf16.mxu0 %v8027_v63 }
0x18a1   : > { %7485 = vmatpush3.bf16.msra.mxu0 %v8931_v1 }
0x18a2   : > { %7486 = vmatprep.subr.bf16.mxu0 %v8027_v63 }
0x18a5   : > { %7487 = vmatpush3.bf16.msra.mxu0 %v8938_v2 }
0x18a6   : > { %7488 = vmatprep.subr.bf16.mxu0 %v8027_v63 }
0x18a9   : > { %7489 = vmatpush3.bf16.msra.mxu0 %v8945_v3 }
0x18aa   : > { %7490 = vmatprep.subr.bf16.mxu0 %v8027_v63 }
0x18ad   : > { %7491 = vmatpush3.bf16.msra.mxu0 %v8952_v4 }
0x18ae   : > { %7492 = vmatprep.subr.bf16.mxu0 %v8027_v63 }
0x18b1   : > { %7493 = vmatpush3.bf16.msra.mxu0 %v9003_v45 }
0x18b2   : > { %7518 = vmatprep.subr.bf16.mxu0 %v8027_v63 }
0x1954   : > { %v4223_v13 = vpop.f32.mrf.mxu0 }
0x1955   : > { %v4224_v51 = vadd.f32 %v9133_v37, %v4223_v13 }
0x1956   : > { %v7456_v8 = vpop.f32.mrf.mxu0 }
0x1957   : > { %7973 = vtanh.f32 %v4224_v51 }
0x1958   : > { %v4226_v52 = vpop.f32.mrf.mxu0 }
0x195a   : > { %v7457_v53 = vpop.f32.mrf.mxu0 }
0x1964   : > { %v7974_v54 = vpop.eup %7973 }
0x1965   : > { %v4230_v55 = vpack.c.bf16 %v7974_v54, %v7974_v54 }
0x1967   : > { %7475 = vmatmul.mubr.bf16.vlgmr.msra.gmra.mxu1 %v4230_v55 }
0x1968   : > { %7499 = vmatpush3.bf16.msra.mxu1 %v9011_v26  ;;  %7514 = vmatprep.mubr.msk.bf16.mxu1 %vm8028_vm0, %v8027_v63 }
0x1969   : > { %7500 = vmatprep.subr.bf16.mxu1 %v8027_v63 }
0x196c   : > { %7501 = vmatpush3.bf16.msra.mxu1 %v9063_v59 }
0x196d   : > { %7502 = vmatprep.subr.bf16.mxu1 %v8027_v63 }
0x1970   : > { %7503 = vmatpush3.bf16.msra.mxu1 %v9070_v48 }
0x1971   : > { %7504 = vmatprep.subr.bf16.mxu1 %v8027_v63 }
0x1974   : > { %7505 = vmatpush3.bf16.msra.mxu1 %v9077_v61 }
0x1975   : > { %7506 = vmatprep.subr.bf16.mxu1 %v8027_v63 }
0x1978   : > { %7507 = vmatpush3.bf16.msra.mxu1 %v9084_v60 }
0x1979   : > { %7508 = vmatprep.subr.bf16.mxu1 %v8027_v63 }
0x197c   : > { %7509 = vmatpush3.bf16.msra.mxu1 %v9091_v5 }
0x197d   : > { %7510 = vmatprep.subr.bf16.mxu1 %v8027_v63 }
0x1980   : > { %7511 = vmatpush3.bf16.msra.mxu1 %v9098_v16 }
0x1981   : > { %7512 = vmatprep.subr.bf16.mxu1 %v8027_v63 }
0x1984   : > { %7513 = vmatpush3.bf16.msra.mxu1 %v9105_v17 }
0x1985   : > { %7538 = vmatprep.subr.bf16.mxu1 %v8027_v63 }
0x1a27   : > { %v4265_v18 = vpop.f32.mrf.mxu1 }
0x1a28   : > { %v4266_v19 = vadd.f32 %v9157_v25, %v4265_v18 }
0x1a29   : > { %v7476_v28 = vpop.f32.mrf.mxu1 }
0x1a2a   : > { %v4271_v38 = vmul.f32 %v4266_v19, %v8645_v58 }
0x1a2b   : > { %v4268_v39 = vpop.f32.mrf.mxu1 }
0x1a2c   : > { %v4272_v31 = vadd.f32 %v4271_v38, %v9203_v40 }
0x1a2d   : > { %v7477_v35 = vpop.f32.mrf.mxu1 }
0x1a2e   : > { %v4273_v36 = vpack.c.bf16 %v4272_v31, %v4272_v31 }
0x1a30   : > { %7495 = vmatmul.mubr.bf16.vlgmr.msra.gmra.mxu0 %v4273_v36 }
0x1a31   : > { %7519 = vmatpush3.bf16.msra.mxu0 %v8908_v62  ;;  %7534 = vmatprep.mubr.msk.bf16.mxu0 %vm8028_vm0, %v8027_v63 }
0x1a32   : > { %7520 = vmatprep.subr.bf16.mxu0 %v8027_v63 }
0x1a35   : > { %7521 = vmatpush3.bf16.msra.mxu0 %v8917_v56 }
0x1a36   : > { %7522 = vmatprep.subr.bf16.mxu0 %v8027_v63 }
0x1a39   : > { %7523 = vmatpush3.bf16.msra.mxu0 %v8924_v0 }
0x1a3a   : > { %7524 = vmatprep.subr.bf16.mxu0 %v8027_v63 }
0x1a3d   : > { %7525 = vmatpush3.bf16.msra.mxu0 %v8931_v1 }
0x1a3e   : > { %7526 = vmatprep.subr.bf16.mxu0 %v8027_v63 }
0x1a41   : > { %7527 = vmatpush3.bf16.msra.mxu0 %v8938_v2 }
0x1a42   : > { %7528 = vmatprep.subr.bf16.mxu0 %v8027_v63 }
0x1a45   : > { %7529 = vmatpush3.bf16.msra.mxu0 %v8945_v3  ;;  %v4441_v3 = vmul.f32 2.0, %v4266_v19 }
0x1a46   : > { %7530 = vmatprep.subr.bf16.mxu0 %v8027_v63 }
0x1a49   : > { %7531 = vmatpush3.bf16.msra.mxu0 %v8952_v4 }
0x1a4a   : > { %7532 = vmatprep.subr.bf16.mxu0 %v8027_v63 }
0x1a4d   : > { %7533 = vmatpush3.bf16.msra.mxu0 %v9003_v45 }
0x1a4e   : > { %7558 = vmatprep.subr.mxu0 %v8027_v63 }
0x1af0   : > { %v4308_v58 = vpop.f32.mrf.mxu0 }
0x1af1   : > { %v4309_v62 = vadd.f32 %v9133_v37, %v4308_v58 }
0x1af2   : > { %v7496_v56 = vpop.f32.mrf.mxu0 }
0x1af3   : > { %7975 = vtanh.f32 %v4309_v62 }
0x1af4   : > { %v4311_v0 = vpop.f32.mrf.mxu0 }
0x1af6   : > { %v7497_v1 = vpop.f32.mrf.mxu0 }
0x1b00   : > { %v7976_v2 = vpop.eup %7975 }
0x1b01   : > { %v4315_v42 = vpack.c.bf16 %v7976_v2, %v7976_v2 }
0x1b03   : > { %7515 = vmatmul.mubr.bf16.vlgmr.msra.gmra.mxu1 %v4315_v42 }
0x1b04   : > { %7539 = vmatpush3.bf16.msra.mxu1 %v9011_v26  ;;  %7554 = vmatprep.mubr.msk.bf16.mxu1 %vm8028_vm0, %v8027_v63 }
0x1b05   : > { %7540 = vmatprep.subr.bf16.mxu1 %v8027_v63 }
0x1b08   : > { %7541 = vmatpush3.bf16.msra.mxu1 %v9063_v59  ;;  %v4442_v59 = vadd.f32 %v4441_v3, %v9245_v9 }
0x1b09   : > { %7542 = vmatprep.subr.bf16.mxu1 %v8027_v63 }
0x1b0c   : > { %7543 = vmatpush3.bf16.msra.mxu1 %v9070_v48 }
0x1b0d   : > { %7544 = vmatprep.subr.bf16.mxu1 %v8027_v63 }
0x1b10   : > { %7545 = vmatpush3.bf16.msra.mxu1 %v9077_v61 }
0x1b11   : > { %7546 = vmatprep.subr.bf16.mxu1 %v8027_v63 }
0x1b14   : > { %7547 = vmatpush3.bf16.msra.mxu1 %v9084_v60 }
0x1b15   : > { %7548 = vmatprep.subr.bf16.mxu1 %v8027_v63 }
0x1b18   : > { %7549 = vmatpush3.bf16.msra.mxu1 %v9091_v5 }
0x1b19   : > { %7550 = vmatprep.subr.bf16.mxu1 %v8027_v63 }
0x1b1c   : > { %7551 = vmatpush3.bf16.msra.mxu1 %v9098_v16 }
0x1b1d   : > { %7552 = vmatprep.subr.bf16.mxu1 %v8027_v63 }
0x1b20   : > { %7553 = vmatpush3.bf16.msra.mxu1 %v9105_v17  ;;  %v4449_v17 = vand.u32 127, %v858_v29 }
0x1b22   : > { %vm4463_vm7 = vcmp.eq.s32.totalorder %v4455_v22, %v4449_v17 }
0x1bc3   : > { %v4350_v4 = vpop.f32.mrf.mxu1 }
0x1bc4   : > { %v4351_v45 = vadd.f32 %v9157_v25, %v4350_v4 }
0x1bc5   : > { %v7516_v26 = vpop.f32.mrf.mxu1 }
0x1bc6   : > { %v4356_v48 = vmul.f32 %v4351_v45, %v8637_v57  ;;  %v4443_v61 = vmul.f32 2.0, %v4351_v45  ;;  %v6163_v57 = vsel %vm4463_vm7, 1.0, %v8027_v63 }
0x1bc7   : > { %v4353_v60 = vpop.f32.mrf.mxu1 }
0x1bc8   : > { %v4357_v5 = vadd.f32 %v4356_v48, %v9203_v40  ;;  %v4444_v20 = vadd.f32 %v4443_v61, %v4442_v59 }
0x1bc9   : > { %v7517_v41 = vpop.f32.mrf.mxu1 }
0x1bca   : > { %v4358_v16 = vpack.c.bf16 %v4357_v5, %v4357_v5 }
0x1bcc   : > { %7535 = vmatmul.mubr.bf16.vlgmr.msra.gmra.mxu0 %v4358_v16 }
0x1bcd   : > { %7559 = vmatpush3.msk.msra.mxu0 %vm2747_vm2, %v8514_v43  ;;  %7560 = vmatprep.mubr.msk.f32.mxu0 %vm8028_vm0, %v8027_v63 }
0x1bd4   : > { %7561 = vmatmul.mubr.msk.f32.vlgmr.msra.gmra.mxu0 %vm4466_vm6, %v6163_v57 }
0x1c8c   : > { %v4393_v23 = vpop.f32.mrf.mxu0 }
0x1c8d   : > { %v4394_v24 = vadd.f32 %v9133_v37, %v4393_v23 }
0x1c8e   : > { %v7536_v44 = vpop.f32.mrf.mxu0 }
0x1c8f   : > { %7977 = vtanh.f32 %v4394_v24 }
0x1c90   : > { %v4396_v43 = vpop.f32.mrf.mxu0 }
0x1c92   : > { %v7537_v46 = vpop.f32.mrf.mxu0 }
0x1c94   : > { %v9339_v29 = vpop.f32.mrf.mxu0 }
0x1c96   : > { %v7562_v34 = vpop.f32.mrf.mxu0 }
0x1c9c   : > { %v7978_v7 = vpop.eup %7977 }
0x1c9d   : > { %v4400_v9 = vpack.c.bf16 %v7978_v7, %v7978_v7 }
0x1c9f   : > { %7555 = vmatmul.mubr.bf16.vlgmr.msra.gmra.mxu1 %v4400_v9 }
0x1d5f   : > { %v4435_v10 = vpop.f32.mrf.mxu1 }
0x1d60   : > { %v4436_v47 = vadd.f32 %v9157_v25, %v4435_v10 }
0x1d61   : > { %v7556_v11 = vpop.f32.mrf.mxu1 }
0x1d62   : > { %v4445_v63 = vadd.f32 %v4444_v20, %v4436_v47 }
0x1d63   : > { %v4438_v49 = vpop.f32.mrf.mxu1 }
0x1d64   : > { %v4446_v50 = vmul.f32 %v4445_v63, %v8772_v32 }
0x1d65   : > { %v7557_v12 = vpop.f32.mrf.mxu1 }
0x1d66   : > { %v9344_v37 = vadd.f32 %v4446_v50, %v9203_v40 }
0x1d68   : > { %v4556_v13 = vmul.f32 %v8469_v27, %v9344_v37  ;;  %v4565_v51 = vmul.f32 %v9344_v37, %v8475_v30 }
0x1d6a   : > { %v4557_v8 = vsel %vm2747_vm2, %v4556_v13, 0.0  ;;  %v4566_v52 = vsel %vm2747_vm2, %v4565_v51, 0.0 }
0x1d6b   : > { %v4558_v25 = vrot.slane %v4557_v8, 4  ;;  %v4567_v53 = vrot.slane %v4566_v52, 4 }
0x1d6d   : > { %v4559_v54 = vadd.f32 %v4558_v25, %v4557_v8  ;;  %v4568_v55 = vadd.f32 %v4567_v53, %v4566_v52  ;;  %v9377_v8 = vpop.trf.xlu1  ;;  %v4626_v25 = vmul.f32 %v8602_v15, %v8475_v30 }
0x1d6f   : > { %v4560_v18 = vrot.slane %v4559_v54, 2  ;;  %v4569_v32 = vrot.slane %v4568_v55, 2 }
0x1d71   : > { %v4561_v19 = vadd.f32 %v4560_v18, %v4559_v54  ;;  %v4570_v28 = vadd.f32 %v4569_v32, %v4568_v55  ;;  %v9379_v52 = vpop.trf.xlu1  ;;  %v4627_v54 = vsel %vm2747_vm2, %v4626_v25, 0.0 }
0x1d72   : > { %v4628_v55 = vrot.slane %v4627_v54, 4 }
0x1d73   : > { %v4562_v40 = vrot.slane %v4561_v19, 1  ;;  %v4571_v38 = vrot.slane %v4570_v28, 1 }
0x1d74   : > { %v4629_v32 = vadd.f32 %v4628_v55, %v4627_v54 }
0x1d75   : > { %v4563_v39 = vadd.f32 %v4562_v40, %v4561_v19  ;;  %v4572_v31 = vadd.f32 %v4571_v38, %v4570_v28  ;;  %v9383_v53 = vpop.trf.xlu1 }
0x1d76   : > { %v4630_v19 = vrot.slane %v4629_v32, 2 }
0x1d77   : > { %v4564_v35 = vmul.f32 0.5, %v4563_v39  ;;  %v4573_v36 = vmul.f32 0.5, %v4572_v31 }
0x1d78   : > { %v4631_v40 = vadd.f32 %v4630_v19, %v4629_v32 }
0x1d79   : > { %v4574_v58 = vmul.f32 %v8469_v27, %v4564_v35  ;;  %v4575_v62 = vmul.f32 %v4573_v36, %v8475_v30  ;;  %v9386_v18 = vpop.trf.xlu1 }
0x1d7a   : > { %v4632_v39 = vrot.slane %v4631_v40, 1 }
0x1d7b   : > { %v4576_v56 = vadd.f32 %v4575_v62, %v4574_v58 }
0x1d7c   : > { %v9393_v35 = vadd.f32 %v4632_v39, %v4631_v40 }
0x1d7d   : > { %v4577_v0 = vsub.f32 %v9344_v37, %v4576_v56  ;;  %v9388_v28 = vpop.trf.xlu1 }
0x1d7e   : > { %v4707_v36 = vadd.f32 0.0001, %v9393_v35 }
0x1d7f   : > { %v4578_v1 = vmul.f32 %v4577_v0, %v4577_v0  ;;  %v5014_v2 = vmul.f32 %v4577_v0, %v8475_v30  ;;  %v4732_v42 = vmul.f32 %v8469_v27, %v4577_v0 }
0x1d80   : > { %vm4710_vm12 = vcmp.eq.f32.partialorder %v4707_v36, inf  ;;  %vm4712_vm13 = vcmp.eq.f32.partialorder %v4707_v36, 0.0 }
0x1d81   : > { %v4579_v3 = vmul.f32 %v8469_v27, %v4578_v1  ;;  %v4587_v4 = vmul.f32 %v4578_v1, %v8475_v30  ;;  %7589 = vmatprep.subr.msk.mxu0 %vm2747_vm2, %v5014_v2  ;;  %4733 = vxpose.xlu0.b32.start.end [1/1] (short) %v4732_v42, 128  ;;  %v9390_v38 = vpop.trf.xlu1 }
0x1d82   : > { %7563 = vmatprep.subr.msk.mxu1 %vm2747_vm2, %v4732_v42  ;;  %7590 = vmatpush3.msk.msra.mxu0 %vm2747_vm2, %v5014_v2 }
0x1d83   : > { %v4580_v45 = vsel %vm2747_vm2, %v4579_v3, 0.0  ;;  %v4588_v26 = vsel %vm2747_vm2, %v4587_v4, 0.0  ;;  %7564 = vmatpush3.msk.msra.mxu1 %vm2747_vm2, %v4732_v42  ;;  %7641 = vmatprep.subr.msk.mxu0 %vm2747_vm2, %v8599_v14 }
0x1d84   : > { %v4581_v59 = vrot.slane %v4580_v45, 4  ;;  %v4589_v27 = vrot.slane %v4588_v26, 4  ;;  %7615 = vmatprep.subr.msk.mxu1 %vm2747_vm2, %v8540_v6 }
0x1d85   : > { %v9395_v30 = vpop.trf.xlu1 }
0x1d86   : > { %v4582_v48 = vadd.f32 %v4581_v59, %v4580_v45  ;;  %v4590_v61 = vadd.f32 %v4589_v27, %v4588_v26 }
0x1d88   : > { %v4583_v60 = vrot.slane %v4582_v48, 2  ;;  %v4591_v5 = vrot.slane %v4590_v61, 2 }
0x1d89   : > { %v9401_v62 = vpop.trf.xlu1 }
0x1d8a   : > { %v4584_v20 = vadd.f32 %v4583_v60, %v4582_v48  ;;  %v4592_v41 = vadd.f32 %v4591_v5, %v4590_v61  ;;  %v4713_v48 = vand.u32 2147483648, %v4707_v36  ;;  %v4543_v60 = vsub.f32 %v9344_v37, %v9339_v29 }
0x1d8b   : > { %v5565_v37 = vmul.f32 %v8607_v33, %v8607_v33 }
0x1d8c   : > { %v4585_v16 = vrot.slane %v4584_v20, 1  ;;  %v4593_v17 = vrot.slane %v4592_v41, 1 }
0x1d8d   : > { %v9405_v0 = vpop.trf.xlu1 }
0x1d8e   : > { %v9369_v21 = vadd.f32 %v4585_v16, %v4584_v20  ;;  %v9371_v22 = vadd.f32 %v4593_v17, %v4592_v41  ;;  %v4544_v41 = vmul.f32 %v4543_v60, %v4543_v60 }
0x1d90   : > { %v4634_v57 = vadd.f32 0.0001, %v9369_v21  ;;  %v4659_v23 = vadd.f32 0.0001, %v9371_v22 }
0x1d91   : > { %v9408_v42 = vpop.trf.xlu1 }
0x1d92   : > { %7979 = vrsqrt.f32 %v4634_v57  ;;  %vm4637_vm8 = vcmp.eq.f32.partialorder %v4634_v57, inf  ;;  %v4640_v46 = vand.u32 2147483648, %v4634_v57  ;;  %vm4639_vm9 = vcmp.eq.f32.partialorder %v4634_v57, 0.0 }
0x1d93   : > { %7981 = vrsqrt.f32 %v4659_v23  ;;  %vm4662_vm10 = vcmp.eq.f32.partialorder %v4659_v23, inf  ;;  %v4665_v34 = vand.u32 2147483648, %v4659_v23  ;;  %vm4664_vm11 = vcmp.eq.f32.partialorder %v4659_v23, 0.0 }
0x1d94   : > { %7983 = vrsqrt.f32 %v4707_v36 }
0x1d95   : > { %v9412_v4 = vpop.trf.xlu1 }
0x1d99   : > { %v9415_v61 = vpop.trf.xlu1 }
0x1d9d   : > { %v5325_v17 = vpop.trf.xlu1 }
0x1d9f   : > { %v7980_v24 = vpop.eup %7979 }
0x1da0   : > { %v7982_v44 = vpop.eup %7981  ;;  %v4636_v43 = vmul.f32 %v7980_v24, %v4634_v57 }
0x1da1   : > { %v4661_v7 = vmul.f32 %v7982_v44, %v4659_v23 }
0x1da2   : > { %v4638_v9 = vsel %vm4637_vm8, %v4634_v57, %v4636_v43  ;;  %v5326_v43 = vpop.trf.xlu1 }
0x1da3   : > { %v4641_v10 = vsel %vm4639_vm9, %v4640_v46, %v4638_v9  ;;  %v4663_v47 = vsel %vm4662_vm10, %v4659_v23, %v4661_v7  ;;  %v4545_v23 = vsel %vm2747_vm2, %v4544_v41, 0.0  ;;  %v5566_v7 = vsel %vm4644_vm5, %v5565_v37, 0.0 }
0x1da4   : > { %v4642_v11 = vsub.f32 1.0, %v4641_v10  ;;  %v4666_v63 = vsel %vm4664_vm11, %v4665_v34, %v4663_v47  ;;  %v5001_v9 = vmul.f32 %v9369_v21, %v9369_v21  ;;  %v5847_v21 = vmul.f32 %v9393_v35, %v9393_v35 }
0x1da5   : > { %v4667_v49 = vsub.f32 1.0, %v4666_v63 }
0x1da6   : > { %v4643_v50 = vmax.f32 %v4642_v11, 0.0  ;;  %v5327_v34 = vpop.trf.xlu1  ;;  %v5002_v47 = vsel %vm4644_vm5, %v5001_v9, 0.0  ;;  %v5283_v11 = vmul.f32 %v9371_v22, %v9371_v22 }
0x1da7   : > { %v4668_v13 = vmax.f32 %v4667_v49, 0.0 }
0x1da8   : > { %v4645_v12 = vsel %vm4644_vm5, %v4643_v50, 0.0  ;;  %v5284_v49 = vsel %vm4644_vm5, %v5283_v11, 0.0 }
0x1da9   : > { %4646 = vadd.xlane.f32.xlu1 %v4645_v12  ;;  %v4669_v51 = vsel %vm4644_vm5, %v4668_v13, 0.0  ;;  %v5848_v12 = vsel %vm4644_vm5, %v5847_v21, 0.0 }
0x1daa   : > { %v5328_v63 = vpop.trf.xlu1 }
0x1dad   : > { %4670 = vadd.xlane.f32.xlu1 %v4669_v51 }
0x1dae   : > { %v5595_v22 = vpop.trf.xlu1 }
0x1db2   : > { %v5596_v25 = vpop.trf.xlu1 }
0x1dbe   : > { %5015 = vxpose.xlu0.b32.start.end [1/1] (short) %v5014_v2, 128 }
0x1dfd   : > { %v4749_v31 = vpop.trf.xlu0 }
0x1dfe   : > { %7565 = vmatprep.mubr.msk.f32.mxu1 %vm4466_vm6, %v4749_v31 }
0x1e01   : > { %v4750_v15 = vpop.trf.xlu0 }
0x1e02   : > { %7566 = vmatmul.mubr.msk.f32.vlgmr.msra.gmra.mxu1 %vm4466_vm6, %v4750_v15 }
0x1e03   : > { %7616 = vmatpush3.msk.msra.mxu1 %vm2747_vm2, %v8540_v6  ;;  %v7984_v6 = vpop.eup %7983 }
0x1e04   : > { %v4709_v45 = vmul.f32 %v7984_v6, %v4707_v36 }
0x1e05   : > { %v4751_v58 = vpop.trf.xlu0 }
0x1e06   : > { %7568 = vmatprep.mubr.msk.f32.mxu1 %vm4466_vm6, %v4751_v58  ;;  %v4711_v59 = vsel %vm4710_vm12, %v4707_v36, %v4709_v45 }
0x1e07   : > { %v4714_v5 = vsel %vm4712_vm13, %v4713_v48, %v4711_v59 }
0x1e08   : > { %v4715_v16 = vsub.f32 1.0, %v4714_v5 }
0x1e09   : > { %v4752_v56 = vpop.trf.xlu0 }
0x1e0a   : > { %7569 = vmatmul.mubr.msk.f32.gmra.mxu1 %vm4466_vm6, %v4752_v56  ;;  %v4716_v24 = vmax.f32 %v4715_v16, 0.0 }
0x1e0c   : > { %v4717_v29 = vsel %vm4644_vm5, %v4716_v24, 0.0 }
0x1e0d   : > { %v4753_v1 = vpop.trf.xlu0 }
0x1e0e   : > { %7571 = vmatprep.mubr.msk.f32.mxu1 %vm4466_vm6, %v4753_v1 }
0x1e11   : > { %v4754_v2 = vpop.trf.xlu0 }
0x1e12   : > { %7572 = vmatmul.mubr.msk.f32.gmra.mxu1 %vm4466_vm6, %v4754_v2 }
0x1e15   : > { %v4755_v3 = vpop.trf.xlu0 }
0x1e16   : > { %7574 = vmatprep.mubr.msk.f32.mxu1 %vm4466_vm6, %v4755_v3 }
0x1e19   : > { %v4756_v26 = vpop.trf.xlu0 }
0x1e1a   : > { %7575 = vmatmul.mubr.msk.f32.gmra.mxu1 %vm4466_vm6, %v4756_v26 }
0x1e1d   : > { %v4757_v27 = vpop.trf.xlu0 }
0x1e1e   : > { %7577 = vmatprep.mubr.msk.f32.mxu1 %vm4466_vm6, %v4757_v27 }
0x1e21   : > { %v4758_v20 = vpop.trf.xlu0 }
0x1e22   : > { %7578 = vmatmul.mubr.msk.f32.gmra.mxu1 %vm4466_vm6, %v4758_v20 }
0x1e25   : > { %v4759_v57 = vpop.trf.xlu0 }
0x1e26   : > { %7580 = vmatprep.mubr.msk.f32.mxu1 %vm4466_vm6, %v4759_v57 }
0x1e27   : > { %4546 = vadd.xlane.f32.xlu0 %v4545_v23 }
0x1e29   : > { %v4760_v44 = vpop.trf.xlu0 }
0x1e2a   : > { %7581 = vmatmul.mubr.msk.f32.gmra.mxu1 %vm4466_vm6, %v4760_v44 }
0x1e2b   : > { %4718 = vadd.xlane.f32.xlu0 %v4717_v29 }
0x1e2d   : > { %v4761_v46 = vpop.trf.xlu0 }
0x1e2e   : > { %7583 = vmatprep.mubr.msk.f32.mxu1 %vm4466_vm6, %v4761_v46 }
0x1e2f   : > { %5567 = vadd.xlane.f32.xlu0 %v5566_v7 }
0x1e31   : > { %v4762_v10 = vpop.trf.xlu0 }
0x1e32   : > { %7584 = vmatmul.mubr.msk.f32.gmra.mxu1 %vm4466_vm6, %v4762_v10 }
0x1e33   : > { %5003 = vadd.xlane.f32.xlu0 %v5002_v47 }
0x1e35   : > { %v4763_v33 = vpop.trf.xlu0 }
0x1e36   : > { %7586 = vmatprep.mubr.msk.f32.mxu1 %vm4466_vm6, %v4763_v33 }
0x1e37   : > { %5285 = vadd.xlane.f32.xlu0 %v5284_v49 }
0x1e39   : > { %v4764_v50 = vpop.trf.xlu0 }
0x1e3a   : > { %7587 = vmatmul.mubr.msk.f32.gmra.mxu1 %vm4466_vm6, %v4764_v50 }
0x1e3b   : > { %7617 = vmatprep.mubr.msk.f32.mxu1 %vm4466_vm6, %v9377_v8  ;;  %5849 = vadd.xlane.f32.xlu0 %v5848_v12 }
0x1e3d   : > { %v5031_v13 = vpop.trf.xlu0 }
0x1e3e   : > { %7591 = vmatprep.mubr.msk.f32.mxu0 %vm4466_vm6, %v5031_v13  ;;  %7618 = vmatmul.mubr.msk.f32.vlgmr.msra.gmra.mxu1 %vm4466_vm6, %v9379_v52  ;;  %v5597_v52 = vpop.trf.xlu1 }
0x1e3f   : > { %7620 = vmatprep.mubr.msk.f32.mxu1 %vm4466_vm6, %v9383_v53 }
0x1e41   : > { %v5032_v51 = vpop.trf.xlu0 }
0x1e42   : > { %7592 = vmatmul.mubr.msk.f32.vlgmr.msra.gmra.mxu0 %vm4466_vm6, %v5032_v51  ;;  %7621 = vmatmul.mubr.msk.f32.gmra.mxu1 %vm4466_vm6, %v9386_v18  ;;  %v5598_v54 = vpop.trf.xlu1 }
0x1e43   : > { %7642 = vmatpush3.msk.msra.mxu0 %vm2747_vm2, %v8599_v14  ;;  %7623 = vmatprep.mubr.msk.f32.mxu1 %vm4466_vm6, %v9388_v28 }
0x1e45   : > { %v5033_v8 = vpop.trf.xlu0 }
0x1e46   : > { %7594 = vmatprep.mubr.msk.f32.mxu0 %vm4466_vm6, %v5033_v8  ;;  %7624 = vmatmul.mubr.msk.f32.gmra.mxu1 %vm4466_vm6, %v9390_v38  ;;  %v5599_v18 = vpop.trf.xlu1 }
0x1e47   : > { %7626 = vmatprep.mubr.msk.f32.mxu1 %vm4466_vm6, %v9395_v30 }
0x1e49   : > { %v5034_v53 = vpop.trf.xlu0 }
0x1e4a   : > { %7595 = vmatmul.mubr.msk.f32.gmra.mxu0 %vm4466_vm6, %v5034_v53  ;;  %7627 = vmatmul.mubr.msk.f32.gmra.mxu1 %vm4466_vm6, %v9401_v62  ;;  %v5600_v28 = vpop.trf.xlu1 }
0x1e4b   : > { %7629 = vmatprep.mubr.msk.f32.mxu1 %vm4466_vm6, %v9405_v0 }
0x1e4d   : > { %v5035_v14 = vpop.trf.xlu0 }
0x1e4e   : > { %7597 = vmatprep.mubr.msk.f32.mxu0 %vm4466_vm6, %v5035_v14  ;;  %7630 = vmatmul.mubr.msk.f32.gmra.mxu1 %vm4466_vm6, %v9408_v42  ;;  %v5601_v38 = vpop.trf.xlu1 }
0x1e4f   : > { %7632 = vmatprep.mubr.msk.f32.mxu1 %vm4466_vm6, %v9412_v4 }
0x1e51   : > { %v5036_v55 = vpop.trf.xlu0 }
0x1e52   : > { %7598 = vmatmul.mubr.msk.f32.gmra.mxu0 %vm4466_vm6, %v5036_v55  ;;  %7633 = vmatmul.mubr.msk.f32.gmra.mxu1 %vm4466_vm6, %v9415_v61  ;;  %v5602_v35 = vpop.trf.xlu1 }
0x1e53   : > { %7635 = vmatprep.mubr.msk.f32.mxu1 %vm4466_vm6, %v5325_v17 }
0x1e55   : > { %v5037_v32 = vpop.trf.xlu0 }
0x1e56   : > { %7600 = vmatprep.mubr.msk.f32.mxu0 %vm4466_vm6, %v5037_v32  ;;  %7636 = vmatmul.mubr.msk.f32.gmra.mxu1 %vm4466_vm6, %v5326_v43  ;;  %v5603_v15 = vpop.trf.xlu1 }
0x1e57   : > { %7638 = vmatprep.mubr.msk.f32.mxu1 %vm4466_vm6, %v5327_v34 }
0x1e59   : > { %v5038_v19 = vpop.trf.xlu0 }
0x1e5a   : > { %7601 = vmatmul.mubr.msk.f32.gmra.mxu0 %vm4466_vm6, %v5038_v19  ;;  %7639 = vmatmul.mubr.msk.f32.gmra.mxu1 %vm4466_vm6, %v5328_v63  ;;  %v5604_v62 = vpop.trf.xlu1 }
0x1e5d   : > { %v5039_v40 = vpop.trf.xlu0 }
0x1e5e   : > { %7603 = vmatprep.mubr.msk.f32.mxu0 %vm4466_vm6, %v5039_v40  ;;  %v5605_v0 = vpop.trf.xlu1 }
0x1e61   : > { %v5040_v39 = vpop.trf.xlu0 }
0x1e62   : > { %7604 = vmatmul.mubr.msk.f32.gmra.mxu0 %vm4466_vm6, %v5040_v39  ;;  %v5606_v2 = vpop.trf.xlu1 }
0x1e65   : > { %v5041_v31 = vpop.trf.xlu0 }
0x1e66   : > { %7606 = vmatprep.mubr.msk.f32.mxu0 %vm4466_vm6, %v5041_v31  ;;  %v5607_v42 = vpop.trf.xlu1 }
0x1e69   : > { %v5042_v30 = vpop.trf.xlu0 }
0x1e6a   : > { %7607 = vmatmul.mubr.msk.f32.gmra.mxu0 %vm4466_vm6, %v5042_v30  ;;  %v5608_v6 = vpop.trf.xlu1 }
0x1e6d   : > { %v5043_v36 = vpop.trf.xlu0 }
0x1e6e   : > { %7609 = vmatprep.mubr.msk.f32.mxu0 %vm4466_vm6, %v5043_v36  ;;  %v5609_v3 = vpop.trf.xlu1 }
0x1e71   : > { %v5044_v58 = vpop.trf.xlu0 }
0x1e72   : > { %7610 = vmatmul.mubr.msk.f32.gmra.mxu0 %vm4466_vm6, %v5044_v58  ;;  %v5610_v4 = vpop.trf.xlu1 }
0x1e75   : > { %v5045_v56 = vpop.trf.xlu0 }
0x1e76   : > { %7612 = vmatprep.mubr.msk.f32.mxu0 %vm4466_vm6, %v5045_v56  ;;  %v4695_v45 = vpop.xlane.xlu1 %4694 }
0x1e77   : > { %v4696_v61 = vrot.slane %v4695_v45, 4 }
0x1e79   : > { %v5046_v1 = vpop.trf.xlu0  ;;  %v4697_v20 = vadd.f32 %v4696_v61, %v4695_v45 }
0x1e7a   : > { %7613 = vmatmul.mubr.msk.f32.gmra.mxu0 %vm4466_vm6, %v5046_v1  ;;  %v4647_v26 = vpop.xlane.xlu1 %4646 }
0x1e7b   : > { %7643 = vmatprep.mubr.msk.f32.mxu0 %vm4466_vm6, %v5595_v22  ;;  %v4648_v27 = vrot.slane %v4647_v26, 4  ;;  %v4698_v23 = vrot.slane %v4697_v20, 2 }
0x1e7d   : > { %v4649_v60 = vadd.f32 %v4648_v27, %v4647_v26  ;;  %v4699_v7 = vadd.f32 %v4698_v23, %v4697_v20 }
0x1e7e   : > { %7644 = vmatmul.mubr.msk.f32.vlgmr.msra.gmra.mxu0 %vm4466_vm6, %v5596_v25  ;;  %v4671_v59 = vpop.xlane.xlu1 %4670 }
0x1e7f   : > { %7646 = vmatprep.mubr.msk.f32.mxu0 %vm4466_vm6, %v5597_v52  ;;  %v4672_v48 = vrot.slane %v4671_v59, 4  ;;  %v4650_v41 = vrot.slane %v4649_v60, 2  ;;  %v4700_v63 = vrot.slane %v4699_v7, 1 }
0x1e81   : > { %v4673_v5 = vadd.f32 %v4672_v48, %v4671_v59  ;;  %v4651_v43 = vadd.f32 %v4650_v41, %v4649_v60  ;;  %v4701_v13 = vadd.f32 %v4700_v63, %v4699_v7 }
0x1e82   : > { %7647 = vmatmul.mubr.msk.f32.gmra.mxu0 %vm4466_vm6, %v5598_v54 }
0x1e83   : > { %7649 = vmatprep.mubr.msk.f32.mxu0 %vm4466_vm6, %v5599_v18  ;;  %v4674_v17 = vrot.slane %v4673_v5, 2  ;;  %v4652_v10 = vrot.slane %v4651_v43, 1 }
0x1e85   : > { %v4675_v46 = vadd.f32 %v4674_v17, %v4673_v5  ;;  %v4653_v50 = vadd.f32 %v4652_v10, %v4651_v43 }
0x1e86   : > { %7650 = vmatmul.mubr.msk.f32.gmra.mxu0 %vm4466_vm6, %v5600_v28 }
0x1e87   : > { %7652 = vmatprep.mubr.msk.f32.mxu0 %vm4466_vm6, %v5601_v38  ;;  %v4676_v33 = vrot.slane %v4675_v46, 1 }
0x1e89   : > { %v4677_v12 = vadd.f32 %v4676_v33, %v4675_v46 }
0x1e8a   : > { %7653 = vmatmul.mubr.msk.f32.gmra.mxu0 %vm4466_vm6, %v5602_v35 }
0x1e8b   : > { %7655 = vmatprep.mubr.msk.f32.mxu0 %vm4466_vm6, %v5603_v15 }
0x1e8e   : > { %7656 = vmatmul.mubr.msk.f32.gmra.mxu0 %vm4466_vm6, %v5604_v62 }
0x1e8f   : > { %7658 = vmatprep.mubr.msk.f32.mxu0 %vm4466_vm6, %v5605_v0 }
0x1e92   : > { %7659 = vmatmul.mubr.msk.f32.gmra.mxu0 %vm4466_vm6, %v5606_v2 }
0x1e93   : > { %7661 = vmatprep.mubr.msk.f32.mxu0 %vm4466_vm6, %v5607_v42 }
0x1e96   : > { %7662 = vmatmul.mubr.msk.f32.gmra.mxu0 %vm4466_vm6, %v5608_v6 }
0x1e97   : > { %7664 = vmatprep.mubr.msk.f32.mxu0 %vm4466_vm6, %v5609_v3 }
0x1e9a   : > { %7665 = vmatmul.mubr.msk.f32.gmra.mxu0 %vm4466_vm6, %v5610_v4 }
0x1eb0   : > { %v4547_v16 = vpop.xlane.xlu0 %4546 }
0x1eb1   : > { %v4548_v57 = vrot.slane %v4547_v16, 4 }
0x1eb3   : > { %v4549_v24 = vadd.f32 %v4548_v57, %v4547_v16 }
0x1eb4   : > { %v4719_v44 = vpop.xlane.xlu0 %4718 }
0x1eb5   : > { %v4550_v29 = vrot.slane %v4549_v24, 2  ;;  %v4720_v37 = vrot.slane %v4719_v44, 4 }
0x1eb7   : > { %v4721_v9 = vadd.f32 %v4720_v37, %v4719_v44  ;;  %v4551_v34 = vadd.f32 %v4550_v29, %v4549_v24 }
0x1eb9   : > { %v4722_v47 = vrot.slane %v4721_v9, 2  ;;  %v4552_v11 = vrot.slane %v4551_v34, 1 }
0x1ebb   : > { %v4553_v49 = vadd.f32 %v4552_v11, %v4551_v34  ;;  %v4723_v21 = vadd.f32 %v4722_v47, %v4721_v9 }
0x1ebd   : > { %7667 = vpush %v4553_v49  ;;  %v4724_v22 = vrot.slane %v4723_v21, 1 }
0x1ebe   : > { %7669 = vpush %v4653_v50 }
0x1ebf   : > { %7671 = vpush %v4677_v12  ;;  %v4725_v51 = vadd.f32 %v4724_v22, %v4723_v21 }
0x1ec0   : > { %7673 = vpush %v4701_v13 }
0x1ec1   : > { %7675 = vpush %v4725_v51 }
0x1ec2   : > { %v7567_v25 = vpop.f32.mrf.mxu1 }
0x1ec3   : > { %v4962_v55 = vmul.f32 %v7567_v25, %v7567_v25 }
0x1ec4   : > { %v4882_v8 = vpop.f32.mrf.mxu1 }
0x1ec5   : > { %v4961_v14 = vmul.f32 %v4882_v8, %v4882_v8 }
0x1ec7   : > { %v4977_v32 = vadd.f32 %v4962_v55, %v4961_v14 }
0x1eca   : > { %v7570_v52 = vpop.f32.mrf.mxu1 }
0x1ecb   : > { %v4964_v38 = vmul.f32 %v7570_v52, %v7570_v52 }
0x1ecc   : > { %v4892_v53 = vpop.f32.mrf.mxu1 }
0x1ecd   : > { %v4963_v18 = vmul.f32 %v4892_v53, %v4892_v53 }
0x1ecf   : > { %v4978_v28 = vadd.f32 %v4977_v32, %v4963_v18 }
0x1ed1   : > { %v4979_v31 = vadd.f32 %v4978_v28, %v4964_v38 }
0x1ed2   : > { %v7573_v54 = vpop.f32.mrf.mxu1 }
0x1ed3   : > { %v4966_v36 = vmul.f32 %v7573_v54, %v7573_v54 }
0x1ed4   : > { %v4902_v19 = vpop.f32.mrf.mxu1 }
0x1ed5   : > { %v4965_v39 = vmul.f32 %v4902_v19, %v4902_v19 }
0x1ed7   : > { %v4980_v30 = vadd.f32 %v4979_v31, %v4965_v39 }
0x1ed9   : > { %v4981_v62 = vadd.f32 %v4980_v30, %v4966_v36 }
0x1eda   : > { %v7576_v40 = vpop.f32.mrf.mxu1 }
0x1edb   : > { %v4968_v1 = vmul.f32 %v7576_v40, %v7576_v40 }
0x1edc   : > { %v4912_v35 = vpop.f32.mrf.mxu1 }
0x1edd   : > { %v4967_v58 = vmul.f32 %v4912_v35, %v4912_v35 }
0x1edf   : > { %v4982_v0 = vadd.f32 %v4981_v62, %v4967_v58 }
0x1ee1   : > { %v4983_v6 = vadd.f32 %v4982_v0, %v4968_v1 }
0x1ee2   : > { %v7579_v15 = vpop.f32.mrf.mxu1 }
0x1ee3   : > { %v4970_v45 = vmul.f32 %v7579_v15, %v7579_v15 }
0x1ee4   : > { %v4922_v56 = vpop.f32.mrf.mxu1 }
0x1ee5   : > { %v4969_v2 = vmul.f32 %v4922_v56, %v4922_v56 }
0x1ee7   : > { %v4984_v4 = vadd.f32 %v4983_v6, %v4969_v2 }
0x1ee9   : > { %v4985_v59 = vadd.f32 %v4984_v4, %v4970_v45 }
0x1eea   : > { %v7582_v42 = vpop.f32.mrf.mxu1 }
0x1eeb   : > { %v4972_v60 = vmul.f32 %v7582_v42, %v7582_v42 }
0x1eec   : > { %v4932_v3 = vpop.f32.mrf.mxu1 }
0x1eed   : > { %v4971_v26 = vmul.f32 %v4932_v3, %v4932_v3 }
0x1eee   : > { %s9503_s14 = spop %7667 }
0x1eef   : > { %v4986_v48 = vadd.f32 %v4985_v59, %v4971_v26  ;;  %s7670_s15 = spop %7669  ;;  %s4555_s11 = smul.f32 0.00390625, %s9503_s14 }
0x1ef0   : > { %s7672_s16 = spop %7671  ;;  %s4657_s18 = smul.f32 0.0078125, %s7670_s15 }
0x1ef1   : > { %v4987_v20 = vadd.f32 %v4986_v48, %v4972_v60  ;;  %s7674_s17 = spop %7673  ;;  %s4681_s20 = smul.f32 0.0078125, %s7672_s16 }
0x1ef2   : > { %v7585_v27 = vpop.f32.mrf.mxu1  ;;  %s7676_s19 = spop %7675  ;;  %s4705_s28 = smul.f32 0.0078125, %s7674_s17 }
0x1ef3   : > { %v4974_v17 = vmul.f32 %v7585_v27, %v7585_v27  ;;  %s4682_s24 = sadd.f32 %s4681_s20, %s4657_s18  ;;  %s4729_s2 = smul.f32 0.0078125, %s7676_s19 }
0x1ef4   : > { %v4942_v61 = vpop.f32.mrf.mxu1 }
0x1ef5   : > { %v4973_v5 = vmul.f32 %v4942_v61, %v4942_v61  ;;  %s4706_s30 = sadd.f32 %s4705_s28, %s4682_s24 }
0x1ef7   : > { %v4988_v41 = vadd.f32 %v4987_v20, %v4973_v5  ;;  %s4730_s6 = sadd.f32 %s4729_s2, %s4706_s30 }
0x1ef9   : > { %v4989_v24 = vadd.f32 %v4988_v41, %v4974_v17  ;;  %s4731_s9 = smul.f32 0.5, %s4730_s6 }
0x1efa   : > { %v7588_v16 = vpop.f32.mrf.mxu1 }
0x1efb   : > { %v4976_v43 = vmul.f32 %v7588_v16, %v7588_v16  ;;  %s5861_s20 = sadd.f32 %s4731_s9, %s4555_s11 }
0x1efc   : > { %v4952_v57 = vpop.f32.mrf.mxu1 }
0x1efd   : > { %v4975_v23 = vmul.f32 %v4952_v57, %v4952_v57 }
0x1efe   : > { %v7619_v44 = vpop.f32.mrf.mxu1 }
0x1eff   : > { %v4990_v29 = vadd.f32 %v4989_v24, %v4975_v23  ;;  %v5526_v47 = vmul.f32 %v7619_v44, %v7619_v44 }
0x1f00   : > { %v5446_v46 = vpop.f32.mrf.mxu1 }
0x1f01   : > { %v4991_v37 = vadd.f32 %v4990_v29, %v4976_v43  ;;  %v5525_v10 = vmul.f32 %v5446_v46, %v5446_v46 }
0x1f02   : > { %v7622_v7 = vpop.f32.mrf.mxu1  ;;  %v7593_v9 = vpop.f32.mrf.mxu0 }
0x1f03   : > { %4992 = vadd.xlane.f32.xlu1 %v4991_v37  ;;  %v5541_v49 = vadd.f32 %v5526_v47, %v5525_v10  ;;  %v5528_v22 = vmul.f32 %v7622_v7, %v7622_v7  ;;  %v5244_v14 = vmul.f32 %v7593_v9, %v7593_v9 }
0x1f04   : > { %v5456_v34 = vpop.f32.mrf.mxu1  ;;  %v5164_v33 = vpop.f32.mrf.mxu0 }
0x1f05   : > { %v5527_v11 = vmul.f32 %v5456_v34, %v5456_v34  ;;  %v5243_v51 = vmul.f32 %v5164_v33, %v5164_v33 }
0x1f06   : > { %v7625_v63 = vpop.f32.mrf.mxu1 }
0x1f07   : > { %v5542_v50 = vadd.f32 %v5541_v49, %v5527_v11  ;;  %v5259_v55 = vadd.f32 %v5244_v14, %v5243_v51  ;;  %v5530_v28 = vmul.f32 %v7625_v63, %v7625_v63 }
0x1f08   : > { %v5466_v12 = vpop.f32.mrf.mxu1 }
0x1f09   : > { %v5529_v25 = vmul.f32 %v5466_v12, %v5466_v12  ;;  %v5543_v8 = vadd.f32 %v5542_v50, %v5528_v22 }
0x1f0a   : > { %v7596_v21 = vpop.f32.mrf.mxu0  ;;  %v7628_v52 = vpop.f32.mrf.mxu1 }
0x1f0b   : > { %v5544_v18 = vadd.f32 %v5543_v8, %v5529_v25  ;;  %v5246_v39 = vmul.f32 %v7596_v21, %v7596_v21  ;;  %v5532_v2 = vmul.f32 %v7628_v52, %v7628_v52 }
0x1f0c   : > { %v5174_v13 = vpop.f32.mrf.mxu0  ;;  %v5476_v32 = vpop.f32.mrf.mxu1 }
0x1f0d   : > { %v5245_v54 = vmul.f32 %v5174_v13, %v5174_v13  ;;  %v5531_v31 = vmul.f32 %v5476_v32, %v5476_v32  ;;  %v5545_v35 = vadd.f32 %v5544_v18, %v5530_v28 }
0x1f0e   : > { %v7631_v15 = vpop.f32.mrf.mxu1 }
0x1f0f   : > { %v5260_v40 = vadd.f32 %v5259_v55, %v5245_v54  ;;  %v5546_v62 = vadd.f32 %v5545_v35, %v5531_v31  ;;  %v5534_v41 = vmul.f32 %v7631_v15, %v7631_v15 }
0x1f10   : > { %v5486_v0 = vpop.f32.mrf.mxu1 }
0x1f11   : > { %v5261_v36 = vadd.f32 %v5260_v40, %v5246_v39  ;;  %v5533_v3 = vmul.f32 %v5486_v0, %v5486_v0  ;;  %v5547_v4 = vadd.f32 %v5546_v62, %v5532_v2 }
0x1f12   : > { %v7599_v53 = vpop.f32.mrf.mxu0  ;;  %v7634_v26 = vpop.f32.mrf.mxu1 }
0x1f13   : > { %v5248_v42 = vmul.f32 %v7599_v53, %v7599_v53  ;;  %v5548_v48 = vadd.f32 %v5547_v4, %v5533_v3  ;;  %v5536_v34 = vmul.f32 %v7634_v26, %v7634_v26 }
0x1f14   : > { %v5184_v19 = vpop.f32.mrf.mxu0  ;;  %v5496_v5 = vpop.f32.mrf.mxu1 }
0x1f15   : > { %v5247_v30 = vmul.f32 %v5184_v19, %v5184_v19  ;;  %v5535_v57 = vmul.f32 %v5496_v5, %v5496_v5  ;;  %v5549_v23 = vadd.f32 %v5548_v48, %v5534_v41 }
0x1f16   : > { %v7637_v44 = vpop.f32.mrf.mxu1 }
0x1f17   : > { %v5262_v56 = vadd.f32 %v5261_v36, %v5247_v30  ;;  %v5550_v37 = vadd.f32 %v5549_v23, %v5535_v57  ;;  %v5538_v25 = vmul.f32 %v7637_v44, %v7637_v44 }
0x1f18   : > { %v5506_v7 = vpop.f32.mrf.mxu1 }
0x1f19   : > { %v5263_v45 = vadd.f32 %v5262_v56, %v5248_v42  ;;  %v5537_v11 = vmul.f32 %v5506_v7, %v5506_v7  ;;  %v5551_v33 = vadd.f32 %v5550_v37, %v5536_v34 }
0x1f1a   : > { %v7602_v38 = vpop.f32.mrf.mxu0  ;;  %v7640_v21 = vpop.f32.mrf.mxu1 }
0x1f1b   : > { %v5250_v61 = vmul.f32 %v7602_v38, %v7602_v38  ;;  %v5552_v12 = vadd.f32 %v5551_v33, %v5537_v11  ;;  %v5540_v35 = vmul.f32 %v7640_v21, %v7640_v21 }
0x1f1c   : > { %v5194_v58 = vpop.f32.mrf.mxu0  ;;  %v5516_v13 = vpop.f32.mrf.mxu1 }
0x1f1d   : > { %v5249_v6 = vmul.f32 %v5194_v58, %v5194_v58  ;;  %v5539_v53 = vmul.f32 %v5516_v13, %v5516_v13  ;;  %v5553_v14 = vadd.f32 %v5552_v12, %v5538_v25  ;;  %v5568_v12 = vpop.xlane.xlu0 %5567 }
0x1f1f   : > { %v5264_v27 = vadd.f32 %v5263_v45, %v5249_v6  ;;  %v5554_v40 = vadd.f32 %v5553_v14, %v5539_v53 }
0x1f21   : > { %v5265_v16 = vadd.f32 %v5264_v27, %v5250_v61  ;;  %v5555_v62 = vadd.f32 %v5554_v40, %v5540_v35 }
0x1f22   : > { %v7605_v1 = vpop.f32.mrf.mxu0 }
0x1f23   : > { %v5252_v43 = vmul.f32 %v7605_v1, %v7605_v1 }
0x1f24   : > { %v5204_v59 = vpop.f32.mrf.mxu0 }
0x1f25   : > { %v5251_v60 = vmul.f32 %v5204_v59, %v5204_v59 }
0x1f27   : > { %v5266_v24 = vadd.f32 %v5265_v16, %v5251_v60 }
0x1f29   : > { %v5267_v46 = vadd.f32 %v5266_v24, %v5252_v43 }
0x1f2a   : > { %v7608_v20 = vpop.f32.mrf.mxu0 }
0x1f2b   : > { %v5254_v63 = vmul.f32 %v7608_v20, %v7608_v20 }
0x1f2c   : > { %v5214_v17 = vpop.f32.mrf.mxu0 }
0x1f2d   : > { %v5253_v29 = vmul.f32 %v5214_v17, %v5214_v17 }
0x1f2f   : > { %v5268_v10 = vadd.f32 %v5267_v46, %v5253_v29 }
0x1f31   : > { %v5269_v50 = vadd.f32 %v5268_v10, %v5254_v63 }
0x1f32   : > { %v7611_v9 = vpop.f32.mrf.mxu0 }
0x1f33   : > { %v5256_v8 = vmul.f32 %v7611_v9, %v7611_v9 }
0x1f34   : > { %v5224_v47 = vpop.f32.mrf.mxu0 }
0x1f35   : > { %v5255_v49 = vmul.f32 %v5224_v47, %v5224_v47 }
0x1f37   : > { %v5270_v22 = vadd.f32 %v5269_v50, %v5255_v49 }
0x1f39   : > { %v5271_v55 = vadd.f32 %v5270_v22, %v5256_v8  ;;  %v5004_v22 = vpop.xlane.xlu0 %5003 }
0x1f3a   : > { %v7614_v51 = vpop.f32.mrf.mxu0  ;;  %v5005_v13 = vrot.slane %v5004_v22, 4 }
0x1f3b   : > { %v5258_v32 = vmul.f32 %v7614_v51, %v7614_v51 }
0x1f3c   : > { %v5234_v52 = vpop.f32.mrf.mxu0  ;;  %v5006_v51 = vadd.f32 %v5005_v13, %v5004_v22 }
0x1f3d   : > { %v5257_v54 = vmul.f32 %v5234_v52, %v5234_v52  ;;  %v5286_v40 = vpop.xlane.xlu0 %5285 }
0x1f3e   : > { %v7645_v18 = vpop.f32.mrf.mxu0  ;;  %v5007_v25 = vrot.slane %v5006_v51, 2 }
0x1f3f   : > { %v5272_v19 = vadd.f32 %v5271_v55, %v5257_v54  ;;  %v5808_v30 = vmul.f32 %v7645_v18, %v7645_v18 }
0x1f40   : > { %v5728_v28 = vpop.f32.mrf.mxu0  ;;  %v5008_v14 = vadd.f32 %v5007_v25, %v5006_v51 }
0x1f41   : > { %v5807_v38 = vmul.f32 %v5728_v28, %v5728_v28  ;;  %v5273_v39 = vadd.f32 %v5272_v19, %v5258_v32 }
0x1f42   : > { %v7648_v31 = vpop.f32.mrf.mxu0  ;;  %v5009_v18 = vrot.slane %v5008_v14, 1 }
0x1f43   : > { %5274 = vadd.xlane.f32.xlu1 %v5273_v39  ;;  %v5823_v36 = vadd.f32 %v5808_v30, %v5807_v38  ;;  %v5810_v0 = vmul.f32 %v7648_v31, %v7648_v31  ;;  %v5287_v38 = vrot.slane %v5286_v40, 4  ;;  %v5569_v39 = vrot.slane %v5568_v12, 4 }
0x1f44   : > { %v5738_v15 = vpop.f32.mrf.mxu0  ;;  %v5010_v28 = vadd.f32 %v5009_v18, %v5008_v14 }
0x1f45   : > { %v5809_v58 = vmul.f32 %v5738_v15, %v5738_v15  ;;  %v5288_v31 = vadd.f32 %v5287_v38, %v5286_v40  ;;  %v5570_v35 = vadd.f32 %v5569_v39, %v5568_v12 }
0x1f46   : > { %v7651_v56 = vpop.f32.mrf.mxu0 }
0x1f47   : > { %v5824_v1 = vadd.f32 %v5823_v36, %v5809_v58  ;;  %5556 = vadd.xlane.f32.xlu1 %v5555_v62  ;;  %v5812_v4 = vmul.f32 %v7651_v56, %v7651_v56  ;;  %v5289_v30 = vrot.slane %v5288_v31, 2  ;;  %v5571_v62 = vrot.slane %v5570_v35, 2 }
0x1f48   : > { %v5748_v2 = vpop.f32.mrf.mxu0 }
0x1f49   : > { %v5811_v42 = vmul.f32 %v5748_v2, %v5748_v2  ;;  %v5825_v6 = vadd.f32 %v5824_v1, %v5810_v0  ;;  %v5290_v0 = vadd.f32 %v5289_v30, %v5288_v31 }
0x1f4a   : > { %v7654_v3 = vpop.f32.mrf.mxu0 }
0x1f4b   : > { %v5826_v45 = vadd.f32 %v5825_v6, %v5811_v42  ;;  %v5814_v61 = vmul.f32 %v7654_v3, %v7654_v3  ;;  %v5291_v3 = vrot.slane %v5290_v0, 1 }
0x1f4c   : > { %v5758_v26 = vpop.f32.mrf.mxu0 }
0x1f4d   : > { %v5813_v59 = vmul.f32 %v5758_v26, %v5758_v26  ;;  %v5827_v27 = vadd.f32 %v5826_v45, %v5812_v4  ;;  %v5572_v4 = vadd.f32 %v5571_v62, %v5570_v35 }
0x1f4e   : > { %v7657_v48 = vpop.f32.mrf.mxu0 }
0x1f4f   : > { %v5828_v60 = vadd.f32 %v5827_v27, %v5813_v59  ;;  %v5816_v17 = vmul.f32 %v7657_v48, %v7657_v48  ;;  %v5292_v48 = vadd.f32 %v5291_v3, %v5290_v0 }
0x1f50   : > { %v5768_v5 = vpop.f32.mrf.mxu0 }
0x1f51   : > { %v5815_v20 = vmul.f32 %v5768_v5, %v5768_v5  ;;  %v5829_v41 = vadd.f32 %v5828_v60, %v5814_v61  ;;  %v5573_v61 = vrot.slane %v5572_v4, 1 }
0x1f52   : > { %v7660_v16 = vpop.f32.mrf.mxu0 }
0x1f53   : > { %v5830_v57 = vadd.f32 %v5829_v41, %v5815_v20  ;;  %v5818_v29 = vmul.f32 %v7660_v16, %v7660_v16  ;;  %v5574_v20 = vadd.f32 %v5573_v61, %v5572_v4  ;;  %v5850_v41 = vpop.xlane.xlu0 %5849 }
0x1f54   : > { %v5778_v23 = vpop.f32.mrf.mxu0  ;;  %v5851_v16 = vrot.slane %v5850_v41, 4 }
0x1f55   : > { %v5817_v24 = vmul.f32 %v5778_v23, %v5778_v23  ;;  %v5831_v44 = vadd.f32 %v5830_v57, %v5816_v17 }
0x1f56   : > { %v7663_v43 = vpop.f32.mrf.mxu0  ;;  %v5852_v17 = vadd.f32 %v5851_v16, %v5850_v41 }
0x1f57   : > { %v5832_v37 = vadd.f32 %v5831_v44, %v5817_v24  ;;  %v5820_v10 = vmul.f32 %v7663_v43, %v7663_v43 }
0x1f58   : > { %v5788_v46 = vpop.f32.mrf.mxu0  ;;  %v5853_v57 = vrot.slane %v5852_v17, 2 }
0x1f59   : > { %v5819_v7 = vmul.f32 %v5788_v46, %v5788_v46  ;;  %v5833_v9 = vadd.f32 %v5832_v37, %v5818_v29 }
0x1f5a   : > { %v7666_v34 = vpop.f32.mrf.mxu0  ;;  %v5854_v43 = vadd.f32 %v5853_v57, %v5852_v17 }
0x1f5b   : > { %v5834_v47 = vadd.f32 %v5833_v9, %v5819_v7  ;;  %v5822_v49 = vmul.f32 %v7666_v34, %v7666_v34 }
0x1f5c   : > { %v5798_v11 = vpop.f32.mrf.mxu0  ;;  %v5855_v46 = vrot.slane %v5854_v43, 1 }
0x1f5d   : > { %v5821_v33 = vmul.f32 %v5798_v11, %v5798_v11  ;;  %v5835_v63 = vadd.f32 %v5834_v47, %v5820_v10 }
0x1f5e   : > { %v5856_v34 = vadd.f32 %v5855_v46, %v5854_v43 }
0x1f5f   : > { %v5836_v21 = vadd.f32 %v5835_v63, %v5821_v33 }
0x1f61   : > { %v5837_v50 = vadd.f32 %v5836_v21, %v5822_v49 }
0x1f63   : > { %5838 = vadd.xlane.f32.xlu1 %v5837_v50 }
0x1f8c   : > { %v4993_v8 = vpop.xlane.xlu1 %4992 }
0x1f8d   : > { %v4994_v52 = vrot.slane %v4993_v8, 4 }
0x1f8f   : > { %v4995_v53 = vadd.f32 %v4994_v52, %v4993_v8 }
0x1f91   : > { %v4996_v54 = vrot.slane %v4995_v53, 2 }
0x1f93   : > { %v4997_v55 = vadd.f32 %v4996_v54, %v4995_v53 }
0x1f95   : > { %v4998_v32 = vrot.slane %v4997_v55, 1 }
0x1f97   : > { %v4999_v19 = vadd.f32 %v4998_v32, %v4997_v55 }
0x1f99   : > { %7677 = vpush %v4999_v19 }
0x1f9a   : > { %7679 = vpush %v5010_v28 }
0x1fca   : > { %s7678_s21 = spop %7677 }
0x1fcb   : > { %s7680_s22 = spop %7679 }
0x1fcc   : > { %v5275_v15 = vpop.xlane.xlu1 %5274  ;;  %s5012_s3 = ssub.f32 %s7678_s21, %s7680_s22 }
0x1fcd   : > { %v5276_v36 = vrot.slane %v5275_v15, 4 }
0x1fcf   : > { %v5277_v58 = vadd.f32 %v5276_v36, %v5275_v15 }
0x1fd0   : > { %v5557_v56 = vpop.xlane.xlu1 %5556 }
0x1fd1   : > { %v5278_v1 = vrot.slane %v5277_v58, 2  ;;  %v5558_v2 = vrot.slane %v5557_v56, 4 }
0x1fd3   : > { %v5559_v42 = vadd.f32 %v5558_v2, %v5557_v56  ;;  %v5279_v6 = vadd.f32 %v5278_v1, %v5277_v58 }
0x1fd5   : > { %v5560_v45 = vrot.slane %v5559_v42, 2  ;;  %v5280_v26 = vrot.slane %v5279_v6, 1 }
0x1fd7   : > { %v5281_v59 = vadd.f32 %v5280_v26, %v5279_v6  ;;  %v5561_v27 = vadd.f32 %v5560_v45, %v5559_v42 }
0x1fd9   : > { %7681 = vpush %v5281_v59  ;;  %v5562_v60 = vrot.slane %v5561_v27, 1 }
0x1fda   : > { %7683 = vpush %v5292_v48 }
0x1fdb   : > { %v5563_v5 = vadd.f32 %v5562_v60, %v5561_v27 }
0x1fdd   : > { %7685 = vpush %v5563_v5 }
0x1fde   : > { %7687 = vpush %v5574_v20 }
0x1fec   : > { %v5839_v23 = vpop.xlane.xlu1 %5838 }
0x1fed   : > { %v5840_v24 = vrot.slane %v5839_v23, 4 }
0x1fef   : > { %v5841_v44 = vadd.f32 %v5840_v24, %v5839_v23 }
0x1ff1   : > { %v5842_v29 = vrot.slane %v5841_v44, 2 }
0x1ff3   : > { %v5843_v37 = vadd.f32 %v5842_v29, %v5841_v44 }
0x1ff5   : > { %v5844_v7 = vrot.slane %v5843_v37, 1 }
0x1ff7   : > { %v5845_v9 = vadd.f32 %v5844_v7, %v5843_v37 }
0x1ff9   : > { %7689 = vpush %v5845_v9 }
0x1ffa   : > { %7691 = vpush %v5856_v34 }
0x200a   : > { %s7682_s23 = spop %7681 }
0x200b   : > { %s7684_s27 = spop %7683 }
0x200c   : > { %s5294_s1 = ssub.f32 %s7682_s23, %s7684_s27 }
0x200e   : > { %s7686_s29 = spop %7685  ;;  %s5295_s5 = sadd.f32 %s5294_s1, %s5012_s3 }
0x200f   : > { %s7688_s0 = spop %7687 }
0x2010   : > { %s5576_s4 = ssub.f32 %s7686_s29, %s7688_s0 }
0x2012   : > { %s5577_s15 = sadd.f32 %s5576_s4, %s5295_s5 }
0x202a   : > { %s7690_s7 = spop %7689 }
0x202b   : > { %s7692_s8 = spop %7691 }
0x202c   : > { %s5858_s16 = ssub.f32 %s7690_s7, %s7692_s8 }
0x202e   : > { %s5859_s10 = sadd.f32 %s5858_s16, %s5577_s15 }
0x2030   : > { %s5860_s18 = smul.f32 0.0078125, %s5859_s10 }
0x2032   : > { %s5862_s17 = smul.f32 0.1, %s5860_s18 }
0x2034   : > { %s5863_s12 = sadd.f32 %s5862_s17, %s5861_s20 }
0x2036   : > { %5865 = sst [smem:[#allocation3]] %s5863_s12 }
0x2037 PF: > { %p7697_p7 = scmp.eq.s32.totalorder %s8107_s26, 1  ;;  %s8030_s19 = smov [#allocation3]  }
0x2039   : > { %7694 = dma.smem_to_hbm (%p7697_p7), %s8030_s19, 16, %s9526_s13, [#allocation4]  }
0x203a   : > { %8018 = dma.done.wait (%p7697_p7), [#allocation4], 16  }
0x203b   : > { %8020 = vsyncadd (%p7697_p7), [#allocation4], 4294967280 }
0x203c   : > { %5879 = sfence }
0x203d PF: > { %s24_s25 = sadd.s32 1, %s8023_s25  }
0x203e   : > { %p21_p8 = scmp.ge.s32.totalorder %s24_s25, 4  }
0x2040   :  { %23 = sbr.rel (!%p21_p8) target bundleno = 15 (0xf), region = 111 }
0x2045   :  { %5885 = vsyncpa [#allocation4], 1 }
0x2046   :  { %5887 = vsyncpa [#allocation4 + $0x1], 1 }

</bundles_post_ra>
